<compile_context>
chip_gen: v5e
topology: v5e:2x2
jax: 0.10.0
libtpu: 0.0.40
codegen_flags: <defaults>
</compile_context>

<pallas_src>
import functools

import jax
import jax.numpy as jnp
from jax.experimental import pallas as pl
from jax.experimental.pallas import tpu as pltpu


# --------------------------- weight packing (wrapper) ------------------------

def _pack_conv3x3(w, w_in, w_out, stride):
    """w: (3, 3, Cin, Cout) HWIO -> (3, w_in*Cin, w_out*Cout).

    M_kh[u*Cin+ci, j*Cout+co] = w[kh, kw, ci, co] where u = j*stride + kw - 1,
    clipped to [0, w_in) -- i.e. zero padding along W is folded into the
    matrix, so a full 3x3 conv is   out_rows = sum_kh shifted_rows(kh) @ M_kh.
    """
    u = jnp.arange(w_in)[:, None]
    j = jnp.arange(w_out)[None, :]
    mats = []
    for kh in range(3):
        m = jnp.zeros((w_in * w.shape[2], w_out * w.shape[3]), w.dtype)
        for kw in range(3):
            sel = (u == j * stride + kw - 1).astype(w.dtype)
            m = m + jnp.kron(sel, w[kh, kw])
        mats.append(m)
    return jnp.stack(mats)


def _pack_conv1x1(ws, w_in, w_out, stride):
    """ws: (Cin, Cout) -> (w_in*Cin, w_out*Cout) strided point-wise projection."""
    u = jnp.arange(w_in)[:, None]
    j = jnp.arange(w_out)[None, :]
    sel = (u == j * stride).astype(ws.dtype)
    return jnp.kron(sel, ws)


def _pack_bias(b, w_out):
    """b: (Cout,) -> (1, w_out*Cout) tiled along the packed lane dimension."""
    return jnp.tile(b.reshape(1, -1), (1, w_out))


def _shift_matrices(nb, ho, dtype):
    """0/1 row-shift matrices with batch-segment boundary masking folded in.

    (sdn @ x)[i] = x[i-1] except on segment-first rows (i % ho == 0) where it
    is 0; sup is the opposite shift.  They implement the H zero-padding of a
    3x3 conv on the batched (nb*ho, W*C) slab entirely in vregs/MXU, so the
    activation never round-trips through a padded VMEM scratch and no garbage
    rows cross a batch-segment boundary.  Values are copied verbatim, so the
    shift is exact in bf16.
    """
    m = nb * ho
    i = jnp.arange(m)[:, None]
    j = jnp.arange(m)[None, :]
    sdn = ((j == i - 1) & ((i % ho) != 0)).astype(dtype)
    sup = ((j == i + 1) & ((i % ho) != (ho - 1))).astype(dtype)
    return sdn, sup


def _pick_batch_tile(n, ho, target_rows=128):
    """Images per grid step: pack batch into the matmul M dimension (better MXU
    row utilization) while keeping M <= target_rows (vreg pressure / spills)
    and the grid length >= 2 (so both v7x TensorCores get work)."""
    best = 1
    for nb in range(1, n + 1):
        if n % nb:
            continue
        if nb * ho > target_rows:
            break
        if n // nb >= 2:
            best = nb
    return best


# --------------------------------- kernel ------------------------------------

def _resblock6_kernel(*refs, nb, h, ho, stride, has_shortcut):
    """Fused 6-block residual stack for nb batch elements.

    Refs (in order): x (nb*h, W*Cin) f32, sdn/sup (nb*ho, nb*ho) bf16,
    m1a/b1a/m2a/b2a (block-0 packed convs), [msa/bsa packed 1x1 shortcut],
    m1r/b1r/m2r/b2r (blocks 1..5 packed convs), out (nb*ho, Wo*Cout),
    [rpad0 VMEM scratch, only when stride != 1].
    """
    x_ref, sdn_ref, sup_ref, m1a_ref, b1a_ref, m2a_ref, b2a_ref = refs[:7]
    k = 7
    if has_shortcut:
        msa_ref, bsa_ref = refs[7:9]
        k = 9
    m1r_ref, b1r_ref, m2r_ref, b2r_ref, out_ref = refs[k:k + 5]
    rpad0 = refs[k + 5] if stride != 1 else None

    f32 = jnp.float32
    bf16 = jnp.bfloat16
    sdn = sdn_ref[...]            # loaded once, reused by all 12 convs
    sup = sup_ref[...]

    def shift(xb, s):
        # Exact 0/1-matrix row shift (MXU); boundary masking already folded in.
        return jnp.dot(s, xb, preferred_element_type=f32).astype(bf16)

    def conv3x3(x_f32, mat, bias):
        """3x3 conv, stride 1, SAME padding, on a row-packed (nb*ho, W*C) slab:
        three bf16 MXU matmuls (one per kernel row) with f32 accumulation."""
        xb = x_f32.astype(bf16)
        acc = jnp.dot(shift(xb, sdn), mat(0), preferred_element_type=f32)
        acc = acc + jnp.dot(xb, mat(1), preferred_element_type=f32)
        acc = acc + jnp.dot(shift(xb, sup), mat(2), preferred_element_type=f32)
        return acc + bias

    # ------------------------------- block 0 --------------------------------
    if stride == 1:
        x = x_ref[...]                                     # (nb*h, W*Cin) f32
        y1 = jnp.maximum(
            conv3x3(x, lambda kh: m1a_ref[kh], b1a_ref[...]), 0.0)
        if has_shortcut:
            sc = jnp.dot(x.astype(bf16), msa_ref[...],
                         preferred_element_type=f32) + bsa_ref[...]
        else:
            sc = x                                         # cin == cout here
    else:
        # Strided first conv: per-image H-padded scratch + strided row reads.
        # (stride != 1 always comes with the 1x1 projection shortcut.)
        wcin = x_ref.shape[1]
        zrow = jnp.zeros((1, wcin), f32)
        rpad0[0:1, :] = zrow
        rpad0[h + 1:h + 2, :] = zrow
        y1s, scs = [], []
        for b in range(nb):
            rpad0[1:1 + h, :] = x_ref[pl.ds(b * h, h), :]
            acc = None
            for kh in range(3):
                rows = rpad0[pl.ds(kh, ho, stride), :].astype(bf16)
                t = jnp.dot(rows, m1a_ref[kh], preferred_element_type=f32)
                acc = t if acc is None else acc + t
            y1s.append(jnp.maximum(acc + b1a_ref[...], 0.0))
            xs = rpad0[pl.ds(1, ho, stride), :].astype(bf16)
            scs.append(jnp.dot(xs, msa_ref[...],
                               preferred_element_type=f32) + bsa_ref[...])
        y1 = y1s[0] if nb == 1 else jnp.concatenate(y1s, axis=0)
        sc = scs[0] if nb == 1 else jnp.concatenate(scs, axis=0)

    y2 = conv3x3(y1, lambda kh: m2a_ref[kh], b2a_ref[...])
    act = jnp.maximum(y2 + sc, 0.0)                        # (nb*ho, Wo*Cout) f32

    # ------------------- blocks 1..5 (identity shortcuts) -------------------
    for i in range(m1r_ref.shape[0]):
        y1 = jnp.maximum(
            conv3x3(act, lambda kh, i=i: m1r_ref[i, kh], b1r_ref[i]), 0.0)
        y2 = conv3x3(y1, lambda kh, i=i: m2r_ref[i, kh], b2r_ref[i])
        act = jnp.maximum(y2 + act, 0.0)

    out_ref[...] = act.astype(out_ref.dtype)               # aligned, lane-dense


# --------------------------------- wrapper -----------------------------------

def resblock6(x_nhwc, params, stride, target_rows=128):
    """x_nhwc: (N, H, W, Cin) float32.  Returns (N, Ho, Wo, Cout)."""
    n, h, w, cin = x_nhwc.shape
    cout = params[0]["w1"].shape[-1]
    ho = (h - 1) // stride + 1
    wo = (w - 1) // stride + 1
    has_shortcut = "ws" in params[0]
    if not has_shortcut:
        assert stride == 1 and cin == cout   # identity shortcut only then

    nb = _pick_batch_tile(n, ho, target_rows)
    bf16 = jnp.bfloat16
    sdn, sup = _shift_matrices(nb, ho, bf16)

    p0 = params[0]
    args = [x_nhwc.reshape(n * h, w * cin), sdn, sup,
            _pack_conv3x3(p0["w1"], w, wo, stride).astype(bf16),
            _pack_bias(p0["b1"], wo),
            _pack_conv3x3(p0["w2"], wo, wo, 1).astype(bf16),
            _pack_bias(p0["b2"], wo)]
    if has_shortcut:
        args += [_pack_conv1x1(p0["ws"], w, wo, stride).astype(bf16),
                 _pack_bias(p0["bs"], wo)]
    args += [
        jnp.stack([_pack_conv3x3(p["w1"], wo, wo, 1)
                   for p in params[1:]]).astype(bf16),
        jnp.stack([_pack_bias(p["b1"], wo) for p in params[1:]]),
        jnp.stack([_pack_conv3x3(p["w2"], wo, wo, 1)
                   for p in params[1:]]).astype(bf16),
        jnp.stack([_pack_bias(p["b2"], wo) for p in params[1:]]),
    ]

    # Weights / shift matrices are grid-invariant (constant index_map), so the
    # pipeline fetches them once and keeps them resident in VMEM.
    def const_spec(a):
        nd = a.ndim
        return pl.BlockSpec(a.shape, lambda i, nd=nd: (0,) * nd)

    in_specs = [pl.BlockSpec((nb * h, w * cin), lambda i: (i, 0))]
    in_specs += [const_spec(a) for a in args[1:]]

    scratch = []
    if stride != 1:
        scratch = [pltpu.VMEM((h + 2, w * cin), jnp.float32)]

    kernel = functools.partial(_resblock6_kernel, nb=nb, h=h, ho=ho,
                               stride=stride, has_shortcut=has_shortcut)

    # Advisory cost estimate (actual packed-matmul FLOPs, bytes moved).
    wc_in, wc_out = w * cin, wo * cout
    flops = 2 * n * ho * (3 * wc_in * wc_out
                          + (wc_in * wc_out if has_shortcut else 0)
                          + (3 + 10 * 3) * wc_out * wc_out)
    bytes_accessed = (sum(int(a.size) * a.dtype.itemsize for a in args)
                      + n * ho * wc_out * x_nhwc.dtype.itemsize)

    out = pl.pallas_call(
        kernel,
        out_shape=jax.ShapeDtypeStruct((n * ho, wc_out), x_nhwc.dtype),
        grid=(n // nb,),
        in_specs=in_specs,
        out_specs=pl.BlockSpec((nb * ho, wc_out), lambda i: (i, 0)),
        scratch_shapes=scratch,
        compiler_params=pltpu.CompilerParams(
            dimension_semantics=("parallel",)),
        cost_estimate=pl.CostEstimate(flops=flops, transcendentals=0,
                                      bytes_accessed=bytes_accessed),
    )(*args)
    return out.reshape(n, ho, wo, cout)


# ------------------------- parameter initialization --------------------------

def _init_conv(key, kh, kw, cin, cout):
    kw_, kb_ = jax.random.split(key)
    fan_in = cin * kh * kw
    bound = 1.0 / jnp.sqrt(fan_in)
    w = jax.random.uniform(kw_, (kh, kw, cin, cout), jnp.float32, -bound, bound)
    b = jax.random.uniform(kb_, (cout,), jnp.float32, -bound, bound)
    return w, b


def init_resblock6_params(key, in_channels, out_channels, stride):
    params = []
    cin, s = in_channels, stride
    for _ in range(6):
        key, k1, k2, k3 = jax.random.split(key, 4)
        p = {}
        p["w1"], p["b1"] = _init_conv(k1, 3, 3, cin, out_channels)
        p["w2"], p["b2"] = _init_conv(k2, 3, 3, out_channels, out_channels)
        if s != 1 or cin != out_channels:
            ws, bs = _init_conv(k3, 1, 1, cin, out_channels)
            p["ws"], p["bs"] = ws.reshape(cin, out_channels), bs
        params.append(p)
        cin, s = out_channels, 1
    return params


# ----------------------------- plain-JAX reference ---------------------------

def _conv_ref(x, w, b, stride, pad, operand_dtype=None):
    if operand_dtype is not None:   # mirror the kernel's bf16 MXU operands
        x = x.astype(operand_dtype)
        w = w.astype(operand_dtype)
    y = jax.lax.conv_general_dilated(
        x, w, window_strides=(stride, stride),
        padding=((pad, pad), (pad, pad)),
        dimension_numbers=("NHWC", "HWIO", "NHWC"),
        preferred_element_type=jnp.float32)
    return y + b.reshape(1, 1, 1, -1)


def _resblock_ref(x, p, stride, operand_dtype=None):
    y = jax.nn.relu(_conv_ref(x, p["w1"], p["b1"], stride, 1, operand_dtype))
    y = _conv_ref(y, p["w2"], p["b2"], 1, 1, operand_dtype)
    if "ws" in p:
        cin, cout = p["ws"].shape
        sc = _conv_ref(x, p["ws"].reshape(1, 1, cin, cout), p["bs"], stride, 0,
                       operand_dtype)
    else:
        sc = x
    return jax.nn.relu(y + sc)


def resblock6_ref(x, params, stride, operand_dtype=None):
    y = _resblock_ref(x, params[0], stride, operand_dtype)
    for p in params[1:]:
        y = _resblock_ref(y, p, 1, operand_dtype)
    return y


# ------------------------------------ main ------------------------------------

if __name__ == "__main__":
    key = jax.random.PRNGKey(0)
    kx, kp = jax.random.split(key)

    # Small ResNet-32-style shapes; N=4 exercises batch-packing (nb=2 images
    # per grid step -> matmul M=32) while keeping grid length 2.
    N, Cin, H, W = 4, 4, 16, 16
    Cout, stride = 8, 1

    # PyTorch-style NCHW input, transposed to the kernel's NHWC layout.
    x_nchw = jax.random.normal(kx, (N, Cin, H, W), jnp.float32)
    x_nhwc = jnp.transpose(x_nchw, (0, 2, 3, 1))

    params = init_resblock6_params(kp, Cin, Cout, stride)

    y = jax.block_until_ready(resblock6(x_nhwc, params, stride))
    assert y.shape == (N, H // stride, W // stride, Cout)

    # Primary correctness check: reference with the same bf16 MXU-operand
    # quantization (weights + conv-input activations), f32 accumulation.
    y_bf16 = resblock6_ref(x_nhwc, params, stride, operand_dtype=jnp.bfloat16)
    assert jnp.allclose(y, y_bf16, rtol=2e-3, atol=2e-3), (
        float(jnp.max(jnp.abs(y - y_bf16))))

    # Fidelity check vs the strict f32 module: documented bf16-operand
    # tolerance for the 6-deep residual stack.
    y_f32 = resblock6_ref(x_nhwc, params, stride)
    assert jnp.allclose(y, y_f32, rtol=1e-1, atol=1e-1), (
        float(jnp.max(jnp.abs(y - y_f32))))

    print("KERNEL_OK")
</pallas_src>

<mosaic_0001>
module attributes {stable_mosaic.version = 11 : i64} {
  func.func @_resblock6_kernel(%arg0: i32, %arg1: memref<32x64xf32, #tpu.memory_space<vmem>>, %arg2: memref<32x32xbf16, #tpu.memory_space<vmem>>, %arg3: memref<32x32xbf16, #tpu.memory_space<vmem>>, %arg4: memref<3x64x128xbf16, #tpu.memory_space<vmem>>, %arg5: memref<1x128xf32, #tpu.memory_space<vmem>>, %arg6: memref<3x128x128xbf16, #tpu.memory_space<vmem>>, %arg7: memref<1x128xf32, #tpu.memory_space<vmem>>, %arg8: memref<64x128xbf16, #tpu.memory_space<vmem>>, %arg9: memref<1x128xf32, #tpu.memory_space<vmem>>, %arg10: memref<5x3x128x128xbf16, #tpu.memory_space<vmem>>, %arg11: memref<5x1x128xf32, #tpu.memory_space<vmem>>, %arg12: memref<5x3x128x128xbf16, #tpu.memory_space<vmem>>, %arg13: memref<5x1x128xf32, #tpu.memory_space<vmem>>, %arg14: memref<32x128xf32, #tpu.memory_space<vmem>>) attributes {dimension_semantics = [#tpu.dimension_semantics<parallel>], iteration_bounds = array<i64: 2>, scalar_prefetch = 0 : i64, scratch_operands = 0 : i64, tpu.core_type = #tpu.core_type<tc>, window_params = [{transform_indices = @transform_0, window_bounds = array<i64: 32, 64>}, {pipeline_mode = #tpu.pipeline_mode<synchronous>, transform_indices = @transform_1, window_bounds = array<i64: 32, 32>}, {pipeline_mode = #tpu.pipeline_mode<synchronous>, transform_indices = @transform_2, window_bounds = array<i64: 32, 32>}, {pipeline_mode = #tpu.pipeline_mode<synchronous>, transform_indices = @transform_3, window_bounds = array<i64: 3, 64, 128>}, {pipeline_mode = #tpu.pipeline_mode<synchronous>, transform_indices = @transform_4, window_bounds = array<i64: 1, 128>}, {pipeline_mode = #tpu.pipeline_mode<synchronous>, transform_indices = @transform_5, window_bounds = array<i64: 3, 128, 128>}, {pipeline_mode = #tpu.pipeline_mode<synchronous>, transform_indices = @transform_6, window_bounds = array<i64: 1, 128>}, {pipeline_mode = #tpu.pipeline_mode<synchronous>, transform_indices = @transform_7, window_bounds = array<i64: 64, 128>}, {pipeline_mode = #tpu.pipeline_mode<synchronous>, transform_indices = @transform_8, window_bounds = array<i64: 1, 128>}, {pipeline_mode = #tpu.pipeline_mode<synchronous>, transform_indices = @transform_9, window_bounds = array<i64: 5, 3, 128, 128>}, {pipeline_mode = #tpu.pipeline_mode<synchronous>, transform_indices = @transform_10, window_bounds = array<i64: 5, 1, 128>}, {pipeline_mode = #tpu.pipeline_mode<synchronous>, transform_indices = @transform_11, window_bounds = array<i64: 5, 3, 128, 128>}, {pipeline_mode = #tpu.pipeline_mode<synchronous>, transform_indices = @transform_12, window_bounds = array<i64: 5, 1, 128>}, {transform_indices = @transform_13, window_bounds = array<i64: 32, 128>}]} {
    %c0 = arith.constant 0 : index
    %c0_0 = arith.constant 0 : index
    %0 = vector.load %arg2[%c0, %c0_0] : memref<32x32xbf16, #tpu.memory_space<vmem>>, vector<32x32xbf16>
    %c0_1 = arith.constant 0 : index
    %c0_2 = arith.constant 0 : index
    %1 = vector.load %arg3[%c0_1, %c0_2] : memref<32x32xbf16, #tpu.memory_space<vmem>>, vector<32x32xbf16>
    %c0_3 = arith.constant 0 : index
    %c0_4 = arith.constant 0 : index
    %2 = vector.load %arg1[%c0_3, %c0_4] : memref<32x64xf32, #tpu.memory_space<vmem>>, vector<32x64xf32>
    %c0_5 = arith.constant 0 : index
    %c0_6 = arith.constant 0 : index
    %3 = vector.load %arg5[%c0_5, %c0_6] : memref<1x128xf32, #tpu.memory_space<vmem>>, vector<1x128xf32>
    %4 = arith.truncf %2 : vector<32x64xf32> to vector<32x64xbf16>
    %cst = arith.constant dense<0.000000e+00> : vector<32x64xf32>
    %5 = tpu.matmul %0, %4, %cst {dimension_numbers = #tpu.dot_dimension_numbers<[1], [0], [0], [1], [0, 0, 1, 1], [], []>} : vector<32x32xbf16>, vector<32x64xbf16>, vector<32x64xf32> -> vector<32x64xf32>
    %6 = arith.truncf %5 : vector<32x64xf32> to vector<32x64xbf16>
    %c0_7 = arith.constant 0 : index
    %c0_8 = arith.constant 0 : index
    %c0_9 = arith.constant 0 : index
    %7 = vector.load %arg4[%c0_7, %c0_8, %c0_9] : memref<3x64x128xbf16, #tpu.memory_space<vmem>>, vector<1x64x128xbf16>
    %8 = vector.shape_cast %7 : vector<1x64x128xbf16> to vector<64x128xbf16>
    %cst_10 = arith.constant dense<0.000000e+00> : vector<32x128xf32>
    %9 = tpu.matmul %6, %8, %cst_10 {dimension_numbers = #tpu.dot_dimension_numbers<[1], [0], [0], [1], [0, 0, 1, 1], [], []>} : vector<32x64xbf16>, vector<64x128xbf16>, vector<32x128xf32> -> vector<32x128xf32>
    %c1 = arith.constant 1 : index
    %c0_11 = arith.constant 0 : index
    %c0_12 = arith.constant 0 : index
    %10 = vector.load %arg4[%c1, %c0_11, %c0_12] : memref<3x64x128xbf16, #tpu.memory_space<vmem>>, vector<1x64x128xbf16>
    %11 = vector.shape_cast %10 : vector<1x64x128xbf16> to vector<64x128xbf16>
    %cst_13 = arith.constant dense<0.000000e+00> : vector<32x128xf32>
    %12 = tpu.matmul %4, %11, %cst_13 {dimension_numbers = #tpu.dot_dimension_numbers<[1], [0], [0], [1], [0, 0, 1, 1], [], []>} : vector<32x64xbf16>, vector<64x128xbf16>, vector<32x128xf32> -> vector<32x128xf32>
    %13 = arith.addf %9, %12 : vector<32x128xf32>
    %cst_14 = arith.constant dense<0.000000e+00> : vector<32x64xf32>
    %14 = tpu.matmul %1, %4, %cst_14 {dimension_numbers = #tpu.dot_dimension_numbers<[1], [0], [0], [1], [0, 0, 1, 1], [], []>} : vector<32x32xbf16>, vector<32x64xbf16>, vector<32x64xf32> -> vector<32x64xf32>
    %15 = arith.truncf %14 : vector<32x64xf32> to vector<32x64xbf16>
    %c2 = arith.constant 2 : index
    %c0_15 = arith.constant 0 : index
    %c0_16 = arith.constant 0 : index
    %16 = vector.load %arg4[%c2, %c0_15, %c0_16] : memref<3x64x128xbf16, #tpu.memory_space<vmem>>, vector<1x64x128xbf16>
    %17 = vector.shape_cast %16 : vector<1x64x128xbf16> to vector<64x128xbf16>
    %cst_17 = arith.constant dense<0.000000e+00> : vector<32x128xf32>
    %18 = tpu.matmul %15, %17, %cst_17 {dimension_numbers = #tpu.dot_dimension_numbers<[1], [0], [0], [1], [0, 0, 1, 1], [], []>} : vector<32x64xbf16>, vector<64x128xbf16>, vector<32x128xf32> -> vector<32x128xf32>
    %19 = arith.addf %13, %18 : vector<32x128xf32>
    %20 = vector.broadcast %3 : vector<1x128xf32> to vector<32x128xf32>
    %21 = arith.addf %19, %20 : vector<32x128xf32>
    %cst_18 = arith.constant 0.000000e+00 : f32
    %22 = vector.broadcast %cst_18 : f32 to vector<32x128xf32>
    %23 = arith.maximumf %21, %22 : vector<32x128xf32>
    %24 = arith.truncf %2 : vector<32x64xf32> to vector<32x64xbf16>
    %c0_19 = arith.constant 0 : index
    %c0_20 = arith.constant 0 : index
    %25 = vector.load %arg8[%c0_19, %c0_20] : memref<64x128xbf16, #tpu.memory_space<vmem>>, vector<64x128xbf16>
    %cst_21 = arith.constant dense<0.000000e+00> : vector<32x128xf32>
    %26 = tpu.matmul %24, %25, %cst_21 {dimension_numbers = #tpu.dot_dimension_numbers<[1], [0], [0], [1], [0, 0, 1, 1], [], []>} : vector<32x64xbf16>, vector<64x128xbf16>, vector<32x128xf32> -> vector<32x128xf32>
    %c0_22 = arith.constant 0 : index
    %c0_23 = arith.constant 0 : index
    %27 = vector.load %arg9[%c0_22, %c0_23] : memref<1x128xf32, #tpu.memory_space<vmem>>, vector<1x128xf32>
    %28 = vector.broadcast %27 : vector<1x128xf32> to vector<32x128xf32>
    %29 = arith.addf %26, %28 : vector<32x128xf32>
    %c0_24 = arith.constant 0 : index
    %c0_25 = arith.constant 0 : index
    %30 = vector.load %arg7[%c0_24, %c0_25] : memref<1x128xf32, #tpu.memory_space<vmem>>, vector<1x128xf32>
    %31 = arith.truncf %23 : vector<32x128xf32> to vector<32x128xbf16>
    %cst_26 = arith.constant dense<0.000000e+00> : vector<32x128xf32>
    %32 = tpu.matmul %0, %31, %cst_26 {dimension_numbers = #tpu.dot_dimension_numbers<[1], [0], [0], [1], [0, 0, 1, 1], [], []>} : vector<32x32xbf16>, vector<32x128xbf16>, vector<32x128xf32> -> vector<32x128xf32>
    %33 = arith.truncf %32 : vector<32x128xf32> to vector<32x128xbf16>
    %c0_27 = arith.constant 0 : index
    %c0_28 = arith.constant 0 : index
    %c0_29 = arith.constant 0 : index
    %34 = vector.load %arg6[%c0_27, %c0_28, %c0_29] : memref<3x128x128xbf16, #tpu.memory_space<vmem>>, vector<1x128x128xbf16>
    %35 = vector.shape_cast %34 : vector<1x128x128xbf16> to vector<128x128xbf16>
    %cst_30 = arith.constant dense<0.000000e+00> : vector<32x128xf32>
    %36 = tpu.matmul %33, %35, %cst_30 {dimension_numbers = #tpu.dot_dimension_numbers<[1], [0], [0], [1], [0, 0, 1, 1], [], []>} : vector<32x128xbf16>, vector<128x128xbf16>, vector<32x128xf32> -> vector<32x128xf32>
    %c1_31 = arith.constant 1 : index
    %c0_32 = arith.constant 0 : index
    %c0_33 = arith.constant 0 : index
    %37 = vector.load %arg6[%c1_31, %c0_32, %c0_33] : memref<3x128x128xbf16, #tpu.memory_space<vmem>>, vector<1x128x128xbf16>
    %38 = vector.shape_cast %37 : vector<1x128x128xbf16> to vector<128x128xbf16>
    %cst_34 = arith.constant dense<0.000000e+00> : vector<32x128xf32>
    %39 = tpu.matmul %31, %38, %cst_34 {dimension_numbers = #tpu.dot_dimension_numbers<[1], [0], [0], [1], [0, 0, 1, 1], [], []>} : vector<32x128xbf16>, vector<128x128xbf16>, vector<32x128xf32> -> vector<32x128xf32>
    %40 = arith.addf %36, %39 : vector<32x128xf32>
    %cst_35 = arith.constant dense<0.000000e+00> : vector<32x128xf32>
    %41 = tpu.matmul %1, %31, %cst_35 {dimension_numbers = #tpu.dot_dimension_numbers<[1], [0], [0], [1], [0, 0, 1, 1], [], []>} : vector<32x32xbf16>, vector<32x128xbf16>, vector<32x128xf32> -> vector<32x128xf32>
    %42 = arith.truncf %41 : vector<32x128xf32> to vector<32x128xbf16>
    %c2_36 = arith.constant 2 : index
    %c0_37 = arith.constant 0 : index
    %c0_38 = arith.constant 0 : index
    %43 = vector.load %arg6[%c2_36, %c0_37, %c0_38] : memref<3x128x128xbf16, #tpu.memory_space<vmem>>, vector<1x128x128xbf16>
    %44 = vector.shape_cast %43 : vector<1x128x128xbf16> to vector<128x128xbf16>
    %cst_39 = arith.constant dense<0.000000e+00> : vector<32x128xf32>
    %45 = tpu.matmul %42, %44, %cst_39 {dimension_numbers = #tpu.dot_dimension_numbers<[1], [0], [0], [1], [0, 0, 1, 1], [], []>} : vector<32x128xbf16>, vector<128x128xbf16>, vector<32x128xf32> -> vector<32x128xf32>
    %46 = arith.addf %40, %45 : vector<32x128xf32>
    %47 = vector.broadcast %30 : vector<1x128xf32> to vector<32x128xf32>
    %48 = arith.addf %46, %47 : vector<32x128xf32>
    %49 = arith.addf %48, %29 : vector<32x128xf32>
    %cst_40 = arith.constant 0.000000e+00 : f32
    %50 = vector.broadcast %cst_40 : f32 to vector<32x128xf32>
    %51 = arith.maximumf %49, %50 : vector<32x128xf32>
    %c0_41 = arith.constant 0 : index
    %c0_42 = arith.constant 0 : index
    %c0_43 = arith.constant 0 : index
    %52 = vector.load %arg11[%c0_41, %c0_42, %c0_43] : memref<5x1x128xf32, #tpu.memory_space<vmem>>, vector<1x1x128xf32>
    %53 = vector.shape_cast %52 : vector<1x1x128xf32> to vector<1x128xf32>
    %54 = arith.truncf %51 : vector<32x128xf32> to vector<32x128xbf16>
    %cst_44 = arith.constant dense<0.000000e+00> : vector<32x128xf32>
    %55 = tpu.matmul %0, %54, %cst_44 {dimension_numbers = #tpu.dot_dimension_numbers<[1], [0], [0], [1], [0, 0, 1, 1], [], []>} : vector<32x32xbf16>, vector<32x128xbf16>, vector<32x128xf32> -> vector<32x128xf32>
    %56 = arith.truncf %55 : vector<32x128xf32> to vector<32x128xbf16>
    %c0_45 = arith.constant 0 : index
    %c0_46 = arith.constant 0 : index
    %c0_47 = arith.constant 0 : index
    %c0_48 = arith.constant 0 : index
    %57 = vector.load %arg10[%c0_45, %c0_46, %c0_47, %c0_48] : memref<5x3x128x128xbf16, #tpu.memory_space<vmem>>, vector<1x1x128x128xbf16>
    %58 = vector.shape_cast %57 : vector<1x1x128x128xbf16> to vector<128x128xbf16>
    %cst_49 = arith.constant dense<0.000000e+00> : vector<32x128xf32>
    %59 = tpu.matmul %56, %58, %cst_49 {dimension_numbers = #tpu.dot_dimension_numbers<[1], [0], [0], [1], [0, 0, 1, 1], [], []>} : vector<32x128xbf16>, vector<128x128xbf16>, vector<32x128xf32> -> vector<32x128xf32>
    %c0_50 = arith.constant 0 : index
    %c1_51 = arith.constant 1 : index
    %c0_52 = arith.constant 0 : index
    %c0_53 = arith.constant 0 : index
    %60 = vector.load %arg10[%c0_50, %c1_51, %c0_52, %c0_53] : memref<5x3x128x128xbf16, #tpu.memory_space<vmem>>, vector<1x1x128x128xbf16>
    %61 = vector.shape_cast %60 : vector<1x1x128x128xbf16> to vector<128x128xbf16>
    %cst_54 = arith.constant dense<0.000000e+00> : vector<32x128xf32>
    %62 = tpu.matmul %54, %61, %cst_54 {dimension_numbers = #tpu.dot_dimension_numbers<[1], [0], [0], [1], [0, 0, 1, 1], [], []>} : vector<32x128xbf16>, vector<128x128xbf16>, vector<32x128xf32> -> vector<32x128xf32>
    %63 = arith.addf %59, %62 : vector<32x128xf32>
    %cst_55 = arith.constant dense<0.000000e+00> : vector<32x128xf32>
    %64 = tpu.matmul %1, %54, %cst_55 {dimension_numbers = #tpu.dot_dimension_numbers<[1], [0], [0], [1], [0, 0, 1, 1], [], []>} : vector<32x32xbf16>, vector<32x128xbf16>, vector<32x128xf32> -> vector<32x128xf32>
    %65 = arith.truncf %64 : vector<32x128xf32> to vector<32x128xbf16>
    %c0_56 = arith.constant 0 : index
    %c2_57 = arith.constant 2 : index
    %c0_58 = arith.constant 0 : index
    %c0_59 = arith.constant 0 : index
    %66 = vector.load %arg10[%c0_56, %c2_57, %c0_58, %c0_59] : memref<5x3x128x128xbf16, #tpu.memory_space<vmem>>, vector<1x1x128x128xbf16>
    %67 = vector.shape_cast %66 : vector<1x1x128x128xbf16> to vector<128x128xbf16>
    %cst_60 = arith.constant dense<0.000000e+00> : vector<32x128xf32>
    %68 = tpu.matmul %65, %67, %cst_60 {dimension_numbers = #tpu.dot_dimension_numbers<[1], [0], [0], [1], [0, 0, 1, 1], [], []>} : vector<32x128xbf16>, vector<128x128xbf16>, vector<32x128xf32> -> vector<32x128xf32>
    %69 = arith.addf %63, %68 : vector<32x128xf32>
    %70 = vector.broadcast %53 : vector<1x128xf32> to vector<32x128xf32>
    %71 = arith.addf %69, %70 : vector<32x128xf32>
    %cst_61 = arith.constant 0.000000e+00 : f32
    %72 = vector.broadcast %cst_61 : f32 to vector<32x128xf32>
    %73 = arith.maximumf %71, %72 : vector<32x128xf32>
    %c0_62 = arith.constant 0 : index
    %c0_63 = arith.constant 0 : index
    %c0_64 = arith.constant 0 : index
    %74 = vector.load %arg13[%c0_62, %c0_63, %c0_64] : memref<5x1x128xf32, #tpu.memory_space<vmem>>, vector<1x1x128xf32>
    %75 = vector.shape_cast %74 : vector<1x1x128xf32> to vector<1x128xf32>
    %76 = arith.truncf %73 : vector<32x128xf32> to vector<32x128xbf16>
    %cst_65 = arith.constant dense<0.000000e+00> : vector<32x128xf32>
    %77 = tpu.matmul %0, %76, %cst_65 {dimension_numbers = #tpu.dot_dimension_numbers<[1], [0], [0], [1], [0, 0, 1, 1], [], []>} : vector<32x32xbf16>, vector<32x128xbf16>, vector<32x128xf32> -> vector<32x128xf32>
    %78 = arith.truncf %77 : vector<32x128xf32> to vector<32x128xbf16>
    %c0_66 = arith.constant 0 : index
    %c0_67 = arith.constant 0 : index
    %c0_68 = arith.constant 0 : index
    %c0_69 = arith.constant 0 : index
    %79 = vector.load %arg12[%c0_66, %c0_67, %c0_68, %c0_69] : memref<5x3x128x128xbf16, #tpu.memory_space<vmem>>, vector<1x1x128x128xbf16>
    %80 = vector.shape_cast %79 : vector<1x1x128x128xbf16> to vector<128x128xbf16>
    %cst_70 = arith.constant dense<0.000000e+00> : vector<32x128xf32>
    %81 = tpu.matmul %78, %80, %cst_70 {dimension_numbers = #tpu.dot_dimension_numbers<[1], [0], [0], [1], [0, 0, 1, 1], [], []>} : vector<32x128xbf16>, vector<128x128xbf16>, vector<32x128xf32> -> vector<32x128xf32>
    %c0_71 = arith.constant 0 : index
    %c1_72 = arith.constant 1 : index
    %c0_73 = arith.constant 0 : index
    %c0_74 = arith.constant 0 : index
    %82 = vector.load %arg12[%c0_71, %c1_72, %c0_73, %c0_74] : memref<5x3x128x128xbf16, #tpu.memory_space<vmem>>, vector<1x1x128x128xbf16>
    %83 = vector.shape_cast %82 : vector<1x1x128x128xbf16> to vector<128x128xbf16>
    %cst_75 = arith.constant dense<0.000000e+00> : vector<32x128xf32>
    %84 = tpu.matmul %76, %83, %cst_75 {dimension_numbers = #tpu.dot_dimension_numbers<[1], [0], [0], [1], [0, 0, 1, 1], [], []>} : vector<32x128xbf16>, vector<128x128xbf16>, vector<32x128xf32> -> vector<32x128xf32>
    %85 = arith.addf %81, %84 : vector<32x128xf32>
    %cst_76 = arith.constant dense<0.000000e+00> : vector<32x128xf32>
    %86 = tpu.matmul %1, %76, %cst_76 {dimension_numbers = #tpu.dot_dimension_numbers<[1], [0], [0], [1], [0, 0, 1, 1], [], []>} : vector<32x32xbf16>, vector<32x128xbf16>, vector<32x128xf32> -> vector<32x128xf32>
    %87 = arith.truncf %86 : vector<32x128xf32> to vector<32x128xbf16>
    %c0_77 = arith.constant 0 : index
    %c2_78 = arith.constant 2 : index
    %c0_79 = arith.constant 0 : index
    %c0_80 = arith.constant 0 : index
    %88 = vector.load %arg12[%c0_77, %c2_78, %c0_79, %c0_80] : memref<5x3x128x128xbf16, #tpu.memory_space<vmem>>, vector<1x1x128x128xbf16>
    %89 = vector.shape_cast %88 : vector<1x1x128x128xbf16> to vector<128x128xbf16>
    %cst_81 = arith.constant dense<0.000000e+00> : vector<32x128xf32>
    %90 = tpu.matmul %87, %89, %cst_81 {dimension_numbers = #tpu.dot_dimension_numbers<[1], [0], [0], [1], [0, 0, 1, 1], [], []>} : vector<32x128xbf16>, vector<128x128xbf16>, vector<32x128xf32> -> vector<32x128xf32>
    %91 = arith.addf %85, %90 : vector<32x128xf32>
    %92 = vector.broadcast %75 : vector<1x128xf32> to vector<32x128xf32>
    %93 = arith.addf %91, %92 : vector<32x128xf32>
    %94 = arith.addf %93, %51 : vector<32x128xf32>
    %cst_82 = arith.constant 0.000000e+00 : f32
    %95 = vector.broadcast %cst_82 : f32 to vector<32x128xf32>
    %96 = arith.maximumf %94, %95 : vector<32x128xf32>
    %c1_83 = arith.constant 1 : index
    %c0_84 = arith.constant 0 : index
    %c0_85 = arith.constant 0 : index
    %97 = vector.load %arg11[%c1_83, %c0_84, %c0_85] : memref<5x1x128xf32, #tpu.memory_space<vmem>>, vector<1x1x128xf32>
    %98 = vector.shape_cast %97 : vector<1x1x128xf32> to vector<1x128xf32>
    %99 = arith.truncf %96 : vector<32x128xf32> to vector<32x128xbf16>
    %cst_86 = arith.constant dense<0.000000e+00> : vector<32x128xf32>
    %100 = tpu.matmul %0, %99, %cst_86 {dimension_numbers = #tpu.dot_dimension_numbers<[1], [0], [0], [1], [0, 0, 1, 1], [], []>} : vector<32x32xbf16>, vector<32x128xbf16>, vector<32x128xf32> -> vector<32x128xf32>
    %101 = arith.truncf %100 : vector<32x128xf32> to vector<32x128xbf16>
    %c1_87 = arith.constant 1 : index
    %c0_88 = arith.constant 0 : index
    %c0_89 = arith.constant 0 : index
    %c0_90 = arith.constant 0 : index
    %102 = vector.load %arg10[%c1_87, %c0_88, %c0_89, %c0_90] : memref<5x3x128x128xbf16, #tpu.memory_space<vmem>>, vector<1x1x128x128xbf16>
    %103 = vector.shape_cast %102 : vector<1x1x128x128xbf16> to vector<128x128xbf16>
    %cst_91 = arith.constant dense<0.000000e+00> : vector<32x128xf32>
    %104 = tpu.matmul %101, %103, %cst_91 {dimension_numbers = #tpu.dot_dimension_numbers<[1], [0], [0], [1], [0, 0, 1, 1], [], []>} : vector<32x128xbf16>, vector<128x128xbf16>, vector<32x128xf32> -> vector<32x128xf32>
    %c1_92 = arith.constant 1 : index
    %c1_93 = arith.constant 1 : index
    %c0_94 = arith.constant 0 : index
    %c0_95 = arith.constant 0 : index
    %105 = vector.load %arg10[%c1_92, %c1_93, %c0_94, %c0_95] : memref<5x3x128x128xbf16, #tpu.memory_space<vmem>>, vector<1x1x128x128xbf16>
    %106 = vector.shape_cast %105 : vector<1x1x128x128xbf16> to vector<128x128xbf16>
    %cst_96 = arith.constant dense<0.000000e+00> : vector<32x128xf32>
    %107 = tpu.matmul %99, %106, %cst_96 {dimension_numbers = #tpu.dot_dimension_numbers<[1], [0], [0], [1], [0, 0, 1, 1], [], []>} : vector<32x128xbf16>, vector<128x128xbf16>, vector<32x128xf32> -> vector<32x128xf32>
    %108 = arith.addf %104, %107 : vector<32x128xf32>
    %cst_97 = arith.constant dense<0.000000e+00> : vector<32x128xf32>
    %109 = tpu.matmul %1, %99, %cst_97 {dimension_numbers = #tpu.dot_dimension_numbers<[1], [0], [0], [1], [0, 0, 1, 1], [], []>} : vector<32x32xbf16>, vector<32x128xbf16>, vector<32x128xf32> -> vector<32x128xf32>
    %110 = arith.truncf %109 : vector<32x128xf32> to vector<32x128xbf16>
    %c1_98 = arith.constant 1 : index
    %c2_99 = arith.constant 2 : index
    %c0_100 = arith.constant 0 : index
    %c0_101 = arith.constant 0 : index
    %111 = vector.load %arg10[%c1_98, %c2_99, %c0_100, %c0_101] : memref<5x3x128x128xbf16, #tpu.memory_space<vmem>>, vector<1x1x128x128xbf16>
    %112 = vector.shape_cast %111 : vector<1x1x128x128xbf16> to vector<128x128xbf16>
    %cst_102 = arith.constant dense<0.000000e+00> : vector<32x128xf32>
    %113 = tpu.matmul %110, %112, %cst_102 {dimension_numbers = #tpu.dot_dimension_numbers<[1], [0], [0], [1], [0, 0, 1, 1], [], []>} : vector<32x128xbf16>, vector<128x128xbf16>, vector<32x128xf32> -> vector<32x128xf32>
    %114 = arith.addf %108, %113 : vector<32x128xf32>
    %115 = vector.broadcast %98 : vector<1x128xf32> to vector<32x128xf32>
    %116 = arith.addf %114, %115 : vector<32x128xf32>
    %cst_103 = arith.constant 0.000000e+00 : f32
    %117 = vector.broadcast %cst_103 : f32 to vector<32x128xf32>
    %118 = arith.maximumf %116, %117 : vector<32x128xf32>
    %c1_104 = arith.constant 1 : index
    %c0_105 = arith.constant 0 : index
    %c0_106 = arith.constant 0 : index
    %119 = vector.load %arg13[%c1_104, %c0_105, %c0_106] : memref<5x1x128xf32, #tpu.memory_space<vmem>>, vector<1x1x128xf32>
    %120 = vector.shape_cast %119 : vector<1x1x128xf32> to vector<1x128xf32>
    %121 = arith.truncf %118 : vector<32x128xf32> to vector<32x128xbf16>
    %cst_107 = arith.constant dense<0.000000e+00> : vector<32x128xf32>
    %122 = tpu.matmul %0, %121, %cst_107 {dimension_numbers = #tpu.dot_dimension_numbers<[1], [0], [0], [1], [0, 0, 1, 1], [], []>} : vector<32x32xbf16>, vector<32x128xbf16>, vector<32x128xf32> -> vector<32x128xf32>
    %123 = arith.truncf %122 : vector<32x128xf32> to vector<32x128xbf16>
    %c1_108 = arith.constant 1 : index
    %c0_109 = arith.constant 0 : index
    %c0_110 = arith.constant 0 : index
    %c0_111 = arith.constant 0 : index
    %124 = vector.load %arg12[%c1_108, %c0_109, %c0_110, %c0_111] : memref<5x3x128x128xbf16, #tpu.memory_space<vmem>>, vector<1x1x128x128xbf16>
    %125 = vector.shape_cast %124 : vector<1x1x128x128xbf16> to vector<128x128xbf16>
    %cst_112 = arith.constant dense<0.000000e+00> : vector<32x128xf32>
    %126 = tpu.matmul %123, %125, %cst_112 {dimension_numbers = #tpu.dot_dimension_numbers<[1], [0], [0], [1], [0, 0, 1, 1], [], []>} : vector<32x128xbf16>, vector<128x128xbf16>, vector<32x128xf32> -> vector<32x128xf32>
    %c1_113 = arith.constant 1 : index
    %c1_114 = arith.constant 1 : index
    %c0_115 = arith.constant 0 : index
    %c0_116 = arith.constant 0 : index
    %127 = vector.load %arg12[%c1_113, %c1_114, %c0_115, %c0_116] : memref<5x3x128x128xbf16, #tpu.memory_space<vmem>>, vector<1x1x128x128xbf16>
    %128 = vector.shape_cast %127 : vector<1x1x128x128xbf16> to vector<128x128xbf16>
    %cst_117 = arith.constant dense<0.000000e+00> : vector<32x128xf32>
    %129 = tpu.matmul %121, %128, %cst_117 {dimension_numbers = #tpu.dot_dimension_numbers<[1], [0], [0], [1], [0, 0, 1, 1], [], []>} : vector<32x128xbf16>, vector<128x128xbf16>, vector<32x128xf32> -> vector<32x128xf32>
    %130 = arith.addf %126, %129 : vector<32x128xf32>
    %cst_118 = arith.constant dense<0.000000e+00> : vector<32x128xf32>
    %131 = tpu.matmul %1, %121, %cst_118 {dimension_numbers = #tpu.dot_dimension_numbers<[1], [0], [0], [1], [0, 0, 1, 1], [], []>} : vector<32x32xbf16>, vector<32x128xbf16>, vector<32x128xf32> -> vector<32x128xf32>
    %132 = arith.truncf %131 : vector<32x128xf32> to vector<32x128xbf16>
    %c1_119 = arith.constant 1 : index
    %c2_120 = arith.constant 2 : index
    %c0_121 = arith.constant 0 : index
    %c0_122 = arith.constant 0 : index
    %133 = vector.load %arg12[%c1_119, %c2_120, %c0_121, %c0_122] : memref<5x3x128x128xbf16, #tpu.memory_space<vmem>>, vector<1x1x128x128xbf16>
    %134 = vector.shape_cast %133 : vector<1x1x128x128xbf16> to vector<128x128xbf16>
    %cst_123 = arith.constant dense<0.000000e+00> : vector<32x128xf32>
    %135 = tpu.matmul %132, %134, %cst_123 {dimension_numbers = #tpu.dot_dimension_numbers<[1], [0], [0], [1], [0, 0, 1, 1], [], []>} : vector<32x128xbf16>, vector<128x128xbf16>, vector<32x128xf32> -> vector<32x128xf32>
    %136 = arith.addf %130, %135 : vector<32x128xf32>
    %137 = vector.broadcast %120 : vector<1x128xf32> to vector<32x128xf32>
    %138 = arith.addf %136, %137 : vector<32x128xf32>
    %139 = arith.addf %138, %96 : vector<32x128xf32>
    %cst_124 = arith.constant 0.000000e+00 : f32
    %140 = vector.broadcast %cst_124 : f32 to vector<32x128xf32>
    %141 = arith.maximumf %139, %140 : vector<32x128xf32>
    %c2_125 = arith.constant 2 : index
    %c0_126 = arith.constant 0 : index
    %c0_127 = arith.constant 0 : index
    %142 = vector.load %arg11[%c2_125, %c0_126, %c0_127] : memref<5x1x128xf32, #tpu.memory_space<vmem>>, vector<1x1x128xf32>
    %143 = vector.shape_cast %142 : vector<1x1x128xf32> to vector<1x128xf32>
    %144 = arith.truncf %141 : vector<32x128xf32> to vector<32x128xbf16>
    %cst_128 = arith.constant dense<0.000000e+00> : vector<32x128xf32>
    %145 = tpu.matmul %0, %144, %cst_128 {dimension_numbers = #tpu.dot_dimension_numbers<[1], [0], [0], [1], [0, 0, 1, 1], [], []>} : vector<32x32xbf16>, vector<32x128xbf16>, vector<32x128xf32> -> vector<32x128xf32>
    %146 = arith.truncf %145 : vector<32x128xf32> to vector<32x128xbf16>
    %c2_129 = arith.constant 2 : index
    %c0_130 = arith.constant 0 : index
    %c0_131 = arith.constant 0 : index
    %c0_132 = arith.constant 0 : index
    %147 = vector.load %arg10[%c2_129, %c0_130, %c0_131, %c0_132] : memref<5x3x128x128xbf16, #tpu.memory_space<vmem>>, vector<1x1x128x128xbf16>
    %148 = vector.shape_cast %147 : vector<1x1x128x128xbf16> to vector<128x128xbf16>
    %cst_133 = arith.constant dense<0.000000e+00> : vector<32x128xf32>
    %149 = tpu.matmul %146, %148, %cst_133 {dimension_numbers = #tpu.dot_dimension_numbers<[1], [0], [0], [1], [0, 0, 1, 1], [], []>} : vector<32x128xbf16>, vector<128x128xbf16>, vector<32x128xf32> -> vector<32x128xf32>
    %c2_134 = arith.constant 2 : index
    %c1_135 = arith.constant 1 : index
    %c0_136 = arith.constant 0 : index
    %c0_137 = arith.constant 0 : index
    %150 = vector.load %arg10[%c2_134, %c1_135, %c0_136, %c0_137] : memref<5x3x128x128xbf16, #tpu.memory_space<vmem>>, vector<1x1x128x128xbf16>
    %151 = vector.shape_cast %150 : vector<1x1x128x128xbf16> to vector<128x128xbf16>
    %cst_138 = arith.constant dense<0.000000e+00> : vector<32x128xf32>
    %152 = tpu.matmul %144, %151, %cst_138 {dimension_numbers = #tpu.dot_dimension_numbers<[1], [0], [0], [1], [0, 0, 1, 1], [], []>} : vector<32x128xbf16>, vector<128x128xbf16>, vector<32x128xf32> -> vector<32x128xf32>
    %153 = arith.addf %149, %152 : vector<32x128xf32>
    %cst_139 = arith.constant dense<0.000000e+00> : vector<32x128xf32>
    %154 = tpu.matmul %1, %144, %cst_139 {dimension_numbers = #tpu.dot_dimension_numbers<[1], [0], [0], [1], [0, 0, 1, 1], [], []>} : vector<32x32xbf16>, vector<32x128xbf16>, vector<32x128xf32> -> vector<32x128xf32>
    %155 = arith.truncf %154 : vector<32x128xf32> to vector<32x128xbf16>
    %c2_140 = arith.constant 2 : index
    %c2_141 = arith.constant 2 : index
    %c0_142 = arith.constant 0 : index
    %c0_143 = arith.constant 0 : index
    %156 = vector.load %arg10[%c2_140, %c2_141, %c0_142, %c0_143] : memref<5x3x128x128xbf16, #tpu.memory_space<vmem>>, vector<1x1x128x128xbf16>
    %157 = vector.shape_cast %156 : vector<1x1x128x128xbf16> to vector<128x128xbf16>
    %cst_144 = arith.constant dense<0.000000e+00> : vector<32x128xf32>
    %158 = tpu.matmul %155, %157, %cst_144 {dimension_numbers = #tpu.dot_dimension_numbers<[1], [0], [0], [1], [0, 0, 1, 1], [], []>} : vector<32x128xbf16>, vector<128x128xbf16>, vector<32x128xf32> -> vector<32x128xf32>
    %159 = arith.addf %153, %158 : vector<32x128xf32>
    %160 = vector.broadcast %143 : vector<1x128xf32> to vector<32x128xf32>
    %161 = arith.addf %159, %160 : vector<32x128xf32>
    %cst_145 = arith.constant 0.000000e+00 : f32
    %162 = vector.broadcast %cst_145 : f32 to vector<32x128xf32>
    %163 = arith.maximumf %161, %162 : vector<32x128xf32>
    %c2_146 = arith.constant 2 : index
    %c0_147 = arith.constant 0 : index
    %c0_148 = arith.constant 0 : index
    %164 = vector.load %arg13[%c2_146, %c0_147, %c0_148] : memref<5x1x128xf32, #tpu.memory_space<vmem>>, vector<1x1x128xf32>
    %165 = vector.shape_cast %164 : vector<1x1x128xf32> to vector<1x128xf32>
    %166 = arith.truncf %163 : vector<32x128xf32> to vector<32x128xbf16>
    %cst_149 = arith.constant dense<0.000000e+00> : vector<32x128xf32>
    %167 = tpu.matmul %0, %166, %cst_149 {dimension_numbers = #tpu.dot_dimension_numbers<[1], [0], [0], [1], [0, 0, 1, 1], [], []>} : vector<32x32xbf16>, vector<32x128xbf16>, vector<32x128xf32> -> vector<32x128xf32>
    %168 = arith.truncf %167 : vector<32x128xf32> to vector<32x128xbf16>
    %c2_150 = arith.constant 2 : index
    %c0_151 = arith.constant 0 : index
    %c0_152 = arith.constant 0 : index
    %c0_153 = arith.constant 0 : index
    %169 = vector.load %arg12[%c2_150, %c0_151, %c0_152, %c0_153] : memref<5x3x128x128xbf16, #tpu.memory_space<vmem>>, vector<1x1x128x128xbf16>
    %170 = vector.shape_cast %169 : vector<1x1x128x128xbf16> to vector<128x128xbf16>
    %cst_154 = arith.constant dense<0.000000e+00> : vector<32x128xf32>
    %171 = tpu.matmul %168, %170, %cst_154 {dimension_numbers = #tpu.dot_dimension_numbers<[1], [0], [0], [1], [0, 0, 1, 1], [], []>} : vector<32x128xbf16>, vector<128x128xbf16>, vector<32x128xf32> -> vector<32x128xf32>
    %c2_155 = arith.constant 2 : index
    %c1_156 = arith.constant 1 : index
    %c0_157 = arith.constant 0 : index
    %c0_158 = arith.constant 0 : index
    %172 = vector.load %arg12[%c2_155, %c1_156, %c0_157, %c0_158] : memref<5x3x128x128xbf16, #tpu.memory_space<vmem>>, vector<1x1x128x128xbf16>
    %173 = vector.shape_cast %172 : vector<1x1x128x128xbf16> to vector<128x128xbf16>
    %cst_159 = arith.constant dense<0.000000e+00> : vector<32x128xf32>
    %174 = tpu.matmul %166, %173, %cst_159 {dimension_numbers = #tpu.dot_dimension_numbers<[1], [0], [0], [1], [0, 0, 1, 1], [], []>} : vector<32x128xbf16>, vector<128x128xbf16>, vector<32x128xf32> -> vector<32x128xf32>
    %175 = arith.addf %171, %174 : vector<32x128xf32>
    %cst_160 = arith.constant dense<0.000000e+00> : vector<32x128xf32>
    %176 = tpu.matmul %1, %166, %cst_160 {dimension_numbers = #tpu.dot_dimension_numbers<[1], [0], [0], [1], [0, 0, 1, 1], [], []>} : vector<32x32xbf16>, vector<32x128xbf16>, vector<32x128xf32> -> vector<32x128xf32>
    %177 = arith.truncf %176 : vector<32x128xf32> to vector<32x128xbf16>
    %c2_161 = arith.constant 2 : index
    %c2_162 = arith.constant 2 : index
    %c0_163 = arith.constant 0 : index
    %c0_164 = arith.constant 0 : index
    %178 = vector.load %arg12[%c2_161, %c2_162, %c0_163, %c0_164] : memref<5x3x128x128xbf16, #tpu.memory_space<vmem>>, vector<1x1x128x128xbf16>
    %179 = vector.shape_cast %178 : vector<1x1x128x128xbf16> to vector<128x128xbf16>
    %cst_165 = arith.constant dense<0.000000e+00> : vector<32x128xf32>
    %180 = tpu.matmul %177, %179, %cst_165 {dimension_numbers = #tpu.dot_dimension_numbers<[1], [0], [0], [1], [0, 0, 1, 1], [], []>} : vector<32x128xbf16>, vector<128x128xbf16>, vector<32x128xf32> -> vector<32x128xf32>
    %181 = arith.addf %175, %180 : vector<32x128xf32>
    %182 = vector.broadcast %165 : vector<1x128xf32> to vector<32x128xf32>
    %183 = arith.addf %181, %182 : vector<32x128xf32>
    %184 = arith.addf %183, %141 : vector<32x128xf32>
    %cst_166 = arith.constant 0.000000e+00 : f32
    %185 = vector.broadcast %cst_166 : f32 to vector<32x128xf32>
    %186 = arith.maximumf %184, %185 : vector<32x128xf32>
    %c3 = arith.constant 3 : index
    %c0_167 = arith.constant 0 : index
    %c0_168 = arith.constant 0 : index
    %187 = vector.load %arg11[%c3, %c0_167, %c0_168] : memref<5x1x128xf32, #tpu.memory_space<vmem>>, vector<1x1x128xf32>
    %188 = vector.shape_cast %187 : vector<1x1x128xf32> to vector<1x128xf32>
    %189 = arith.truncf %186 : vector<32x128xf32> to vector<32x128xbf16>
    %cst_169 = arith.constant dense<0.000000e+00> : vector<32x128xf32>
    %190 = tpu.matmul %0, %189, %cst_169 {dimension_numbers = #tpu.dot_dimension_numbers<[1], [0], [0], [1], [0, 0, 1, 1], [], []>} : vector<32x32xbf16>, vector<32x128xbf16>, vector<32x128xf32> -> vector<32x128xf32>
    %191 = arith.truncf %190 : vector<32x128xf32> to vector<32x128xbf16>
    %c3_170 = arith.constant 3 : index
    %c0_171 = arith.constant 0 : index
    %c0_172 = arith.constant 0 : index
    %c0_173 = arith.constant 0 : index
    %192 = vector.load %arg10[%c3_170, %c0_171, %c0_172, %c0_173] : memref<5x3x128x128xbf16, #tpu.memory_space<vmem>>, vector<1x1x128x128xbf16>
    %193 = vector.shape_cast %192 : vector<1x1x128x128xbf16> to vector<128x128xbf16>
    %cst_174 = arith.constant dense<0.000000e+00> : vector<32x128xf32>
    %194 = tpu.matmul %191, %193, %cst_174 {dimension_numbers = #tpu.dot_dimension_numbers<[1], [0], [0], [1], [0, 0, 1, 1], [], []>} : vector<32x128xbf16>, vector<128x128xbf16>, vector<32x128xf32> -> vector<32x128xf32>
    %c3_175 = arith.constant 3 : index
    %c1_176 = arith.constant 1 : index
    %c0_177 = arith.constant 0 : index
    %c0_178 = arith.constant 0 : index
    %195 = vector.load %arg10[%c3_175, %c1_176, %c0_177, %c0_178] : memref<5x3x128x128xbf16, #tpu.memory_space<vmem>>, vector<1x1x128x128xbf16>
    %196 = vector.shape_cast %195 : vector<1x1x128x128xbf16> to vector<128x128xbf16>
    %cst_179 = arith.constant dense<0.000000e+00> : vector<32x128xf32>
    %197 = tpu.matmul %189, %196, %cst_179 {dimension_numbers = #tpu.dot_dimension_numbers<[1], [0], [0], [1], [0, 0, 1, 1], [], []>} : vector<32x128xbf16>, vector<128x128xbf16>, vector<32x128xf32> -> vector<32x128xf32>
    %198 = arith.addf %194, %197 : vector<32x128xf32>
    %cst_180 = arith.constant dense<0.000000e+00> : vector<32x128xf32>
    %199 = tpu.matmul %1, %189, %cst_180 {dimension_numbers = #tpu.dot_dimension_numbers<[1], [0], [0], [1], [0, 0, 1, 1], [], []>} : vector<32x32xbf16>, vector<32x128xbf16>, vector<32x128xf32> -> vector<32x128xf32>
    %200 = arith.truncf %199 : vector<32x128xf32> to vector<32x128xbf16>
    %c3_181 = arith.constant 3 : index
    %c2_182 = arith.constant 2 : index
    %c0_183 = arith.constant 0 : index
    %c0_184 = arith.constant 0 : index
    %201 = vector.load %arg10[%c3_181, %c2_182, %c0_183, %c0_184] : memref<5x3x128x128xbf16, #tpu.memory_space<vmem>>, vector<1x1x128x128xbf16>
    %202 = vector.shape_cast %201 : vector<1x1x128x128xbf16> to vector<128x128xbf16>
    %cst_185 = arith.constant dense<0.000000e+00> : vector<32x128xf32>
    %203 = tpu.matmul %200, %202, %cst_185 {dimension_numbers = #tpu.dot_dimension_numbers<[1], [0], [0], [1], [0, 0, 1, 1], [], []>} : vector<32x128xbf16>, vector<128x128xbf16>, vector<32x128xf32> -> vector<32x128xf32>
    %204 = arith.addf %198, %203 : vector<32x128xf32>
    %205 = vector.broadcast %188 : vector<1x128xf32> to vector<32x128xf32>
    %206 = arith.addf %204, %205 : vector<32x128xf32>
    %cst_186 = arith.constant 0.000000e+00 : f32
    %207 = vector.broadcast %cst_186 : f32 to vector<32x128xf32>
    %208 = arith.maximumf %206, %207 : vector<32x128xf32>
    %c3_187 = arith.constant 3 : index
    %c0_188 = arith.constant 0 : index
    %c0_189 = arith.constant 0 : index
    %209 = vector.load %arg13[%c3_187, %c0_188, %c0_189] : memref<5x1x128xf32, #tpu.memory_space<vmem>>, vector<1x1x128xf32>
    %210 = vector.shape_cast %209 : vector<1x1x128xf32> to vector<1x128xf32>
    %211 = arith.truncf %208 : vector<32x128xf32> to vector<32x128xbf16>
    %cst_190 = arith.constant dense<0.000000e+00> : vector<32x128xf32>
    %212 = tpu.matmul %0, %211, %cst_190 {dimension_numbers = #tpu.dot_dimension_numbers<[1], [0], [0], [1], [0, 0, 1, 1], [], []>} : vector<32x32xbf16>, vector<32x128xbf16>, vector<32x128xf32> -> vector<32x128xf32>
    %213 = arith.truncf %212 : vector<32x128xf32> to vector<32x128xbf16>
    %c3_191 = arith.constant 3 : index
    %c0_192 = arith.constant 0 : index
    %c0_193 = arith.constant 0 : index
    %c0_194 = arith.constant 0 : index
    %214 = vector.load %arg12[%c3_191, %c0_192, %c0_193, %c0_194] : memref<5x3x128x128xbf16, #tpu.memory_space<vmem>>, vector<1x1x128x128xbf16>
    %215 = vector.shape_cast %214 : vector<1x1x128x128xbf16> to vector<128x128xbf16>
    %cst_195 = arith.constant dense<0.000000e+00> : vector<32x128xf32>
    %216 = tpu.matmul %213, %215, %cst_195 {dimension_numbers = #tpu.dot_dimension_numbers<[1], [0], [0], [1], [0, 0, 1, 1], [], []>} : vector<32x128xbf16>, vector<128x128xbf16>, vector<32x128xf32> -> vector<32x128xf32>
    %c3_196 = arith.constant 3 : index
    %c1_197 = arith.constant 1 : index
    %c0_198 = arith.constant 0 : index
    %c0_199 = arith.constant 0 : index
    %217 = vector.load %arg12[%c3_196, %c1_197, %c0_198, %c0_199] : memref<5x3x128x128xbf16, #tpu.memory_space<vmem>>, vector<1x1x128x128xbf16>
    %218 = vector.shape_cast %217 : vector<1x1x128x128xbf16> to vector<128x128xbf16>
    %cst_200 = arith.constant dense<0.000000e+00> : vector<32x128xf32>
    %219 = tpu.matmul %211, %218, %cst_200 {dimension_numbers = #tpu.dot_dimension_numbers<[1], [0], [0], [1], [0, 0, 1, 1], [], []>} : vector<32x128xbf16>, vector<128x128xbf16>, vector<32x128xf32> -> vector<32x128xf32>
    %220 = arith.addf %216, %219 : vector<32x128xf32>
    %cst_201 = arith.constant dense<0.000000e+00> : vector<32x128xf32>
    %221 = tpu.matmul %1, %211, %cst_201 {dimension_numbers = #tpu.dot_dimension_numbers<[1], [0], [0], [1], [0, 0, 1, 1], [], []>} : vector<32x32xbf16>, vector<32x128xbf16>, vector<32x128xf32> -> vector<32x128xf32>
    %222 = arith.truncf %221 : vector<32x128xf32> to vector<32x128xbf16>
    %c3_202 = arith.constant 3 : index
    %c2_203 = arith.constant 2 : index
    %c0_204 = arith.constant 0 : index
    %c0_205 = arith.constant 0 : index
    %223 = vector.load %arg12[%c3_202, %c2_203, %c0_204, %c0_205] : memref<5x3x128x128xbf16, #tpu.memory_space<vmem>>, vector<1x1x128x128xbf16>
    %224 = vector.shape_cast %223 : vector<1x1x128x128xbf16> to vector<128x128xbf16>
    %cst_206 = arith.constant dense<0.000000e+00> : vector<32x128xf32>
    %225 = tpu.matmul %222, %224, %cst_206 {dimension_numbers = #tpu.dot_dimension_numbers<[1], [0], [0], [1], [0, 0, 1, 1], [], []>} : vector<32x128xbf16>, vector<128x128xbf16>, vector<32x128xf32> -> vector<32x128xf32>
    %226 = arith.addf %220, %225 : vector<32x128xf32>
    %227 = vector.broadcast %210 : vector<1x128xf32> to vector<32x128xf32>
    %228 = arith.addf %226, %227 : vector<32x128xf32>
    %229 = arith.addf %228, %186 : vector<32x128xf32>
    %cst_207 = arith.constant 0.000000e+00 : f32
    %230 = vector.broadcast %cst_207 : f32 to vector<32x128xf32>
    %231 = arith.maximumf %229, %230 : vector<32x128xf32>
    %c4 = arith.constant 4 : index
    %c0_208 = arith.constant 0 : index
    %c0_209 = arith.constant 0 : index
    %232 = vector.load %arg11[%c4, %c0_208, %c0_209] : memref<5x1x128xf32, #tpu.memory_space<vmem>>, vector<1x1x128xf32>
    %233 = vector.shape_cast %232 : vector<1x1x128xf32> to vector<1x128xf32>
    %234 = arith.truncf %231 : vector<32x128xf32> to vector<32x128xbf16>
    %cst_210 = arith.constant dense<0.000000e+00> : vector<32x128xf32>
    %235 = tpu.matmul %0, %234, %cst_210 {dimension_numbers = #tpu.dot_dimension_numbers<[1], [0], [0], [1], [0, 0, 1, 1], [], []>} : vector<32x32xbf16>, vector<32x128xbf16>, vector<32x128xf32> -> vector<32x128xf32>
    %236 = arith.truncf %235 : vector<32x128xf32> to vector<32x128xbf16>
    %c4_211 = arith.constant 4 : index
    %c0_212 = arith.constant 0 : index
    %c0_213 = arith.constant 0 : index
    %c0_214 = arith.constant 0 : index
    %237 = vector.load %arg10[%c4_211, %c0_212, %c0_213, %c0_214] : memref<5x3x128x128xbf16, #tpu.memory_space<vmem>>, vector<1x1x128x128xbf16>
    %238 = vector.shape_cast %237 : vector<1x1x128x128xbf16> to vector<128x128xbf16>
    %cst_215 = arith.constant dense<0.000000e+00> : vector<32x128xf32>
    %239 = tpu.matmul %236, %238, %cst_215 {dimension_numbers = #tpu.dot_dimension_numbers<[1], [0], [0], [1], [0, 0, 1, 1], [], []>} : vector<32x128xbf16>, vector<128x128xbf16>, vector<32x128xf32> -> vector<32x128xf32>
    %c4_216 = arith.constant 4 : index
    %c1_217 = arith.constant 1 : index
    %c0_218 = arith.constant 0 : index
    %c0_219 = arith.constant 0 : index
    %240 = vector.load %arg10[%c4_216, %c1_217, %c0_218, %c0_219] : memref<5x3x128x128xbf16, #tpu.memory_space<vmem>>, vector<1x1x128x128xbf16>
    %241 = vector.shape_cast %240 : vector<1x1x128x128xbf16> to vector<128x128xbf16>
    %cst_220 = arith.constant dense<0.000000e+00> : vector<32x128xf32>
    %242 = tpu.matmul %234, %241, %cst_220 {dimension_numbers = #tpu.dot_dimension_numbers<[1], [0], [0], [1], [0, 0, 1, 1], [], []>} : vector<32x128xbf16>, vector<128x128xbf16>, vector<32x128xf32> -> vector<32x128xf32>
    %243 = arith.addf %239, %242 : vector<32x128xf32>
    %cst_221 = arith.constant dense<0.000000e+00> : vector<32x128xf32>
    %244 = tpu.matmul %1, %234, %cst_221 {dimension_numbers = #tpu.dot_dimension_numbers<[1], [0], [0], [1], [0, 0, 1, 1], [], []>} : vector<32x32xbf16>, vector<32x128xbf16>, vector<32x128xf32> -> vector<32x128xf32>
    %245 = arith.truncf %244 : vector<32x128xf32> to vector<32x128xbf16>
    %c4_222 = arith.constant 4 : index
    %c2_223 = arith.constant 2 : index
    %c0_224 = arith.constant 0 : index
    %c0_225 = arith.constant 0 : index
    %246 = vector.load %arg10[%c4_222, %c2_223, %c0_224, %c0_225] : memref<5x3x128x128xbf16, #tpu.memory_space<vmem>>, vector<1x1x128x128xbf16>
    %247 = vector.shape_cast %246 : vector<1x1x128x128xbf16> to vector<128x128xbf16>
    %cst_226 = arith.constant dense<0.000000e+00> : vector<32x128xf32>
    %248 = tpu.matmul %245, %247, %cst_226 {dimension_numbers = #tpu.dot_dimension_numbers<[1], [0], [0], [1], [0, 0, 1, 1], [], []>} : vector<32x128xbf16>, vector<128x128xbf16>, vector<32x128xf32> -> vector<32x128xf32>
    %249 = arith.addf %243, %248 : vector<32x128xf32>
    %250 = vector.broadcast %233 : vector<1x128xf32> to vector<32x128xf32>
    %251 = arith.addf %249, %250 : vector<32x128xf32>
    %cst_227 = arith.constant 0.000000e+00 : f32
    %252 = vector.broadcast %cst_227 : f32 to vector<32x128xf32>
    %253 = arith.maximumf %251, %252 : vector<32x128xf32>
    %c4_228 = arith.constant 4 : index
    %c0_229 = arith.constant 0 : index
    %c0_230 = arith.constant 0 : index
    %254 = vector.load %arg13[%c4_228, %c0_229, %c0_230] : memref<5x1x128xf32, #tpu.memory_space<vmem>>, vector<1x1x128xf32>
    %255 = vector.shape_cast %254 : vector<1x1x128xf32> to vector<1x128xf32>
    %256 = arith.truncf %253 : vector<32x128xf32> to vector<32x128xbf16>
    %cst_231 = arith.constant dense<0.000000e+00> : vector<32x128xf32>
    %257 = tpu.matmul %0, %256, %cst_231 {dimension_numbers = #tpu.dot_dimension_numbers<[1], [0], [0], [1], [0, 0, 1, 1], [], []>} : vector<32x32xbf16>, vector<32x128xbf16>, vector<32x128xf32> -> vector<32x128xf32>
    %258 = arith.truncf %257 : vector<32x128xf32> to vector<32x128xbf16>
    %c4_232 = arith.constant 4 : index
    %c0_233 = arith.constant 0 : index
    %c0_234 = arith.constant 0 : index
    %c0_235 = arith.constant 0 : index
    %259 = vector.load %arg12[%c4_232, %c0_233, %c0_234, %c0_235] : memref<5x3x128x128xbf16, #tpu.memory_space<vmem>>, vector<1x1x128x128xbf16>
    %260 = vector.shape_cast %259 : vector<1x1x128x128xbf16> to vector<128x128xbf16>
    %cst_236 = arith.constant dense<0.000000e+00> : vector<32x128xf32>
    %261 = tpu.matmul %258, %260, %cst_236 {dimension_numbers = #tpu.dot_dimension_numbers<[1], [0], [0], [1], [0, 0, 1, 1], [], []>} : vector<32x128xbf16>, vector<128x128xbf16>, vector<32x128xf32> -> vector<32x128xf32>
    %c4_237 = arith.constant 4 : index
    %c1_238 = arith.constant 1 : index
    %c0_239 = arith.constant 0 : index
    %c0_240 = arith.constant 0 : index
    %262 = vector.load %arg12[%c4_237, %c1_238, %c0_239, %c0_240] : memref<5x3x128x128xbf16, #tpu.memory_space<vmem>>, vector<1x1x128x128xbf16>
    %263 = vector.shape_cast %262 : vector<1x1x128x128xbf16> to vector<128x128xbf16>
    %cst_241 = arith.constant dense<0.000000e+00> : vector<32x128xf32>
    %264 = tpu.matmul %256, %263, %cst_241 {dimension_numbers = #tpu.dot_dimension_numbers<[1], [0], [0], [1], [0, 0, 1, 1], [], []>} : vector<32x128xbf16>, vector<128x128xbf16>, vector<32x128xf32> -> vector<32x128xf32>
    %265 = arith.addf %261, %264 : vector<32x128xf32>
    %cst_242 = arith.constant dense<0.000000e+00> : vector<32x128xf32>
    %266 = tpu.matmul %1, %256, %cst_242 {dimension_numbers = #tpu.dot_dimension_numbers<[1], [0], [0], [1], [0, 0, 1, 1], [], []>} : vector<32x32xbf16>, vector<32x128xbf16>, vector<32x128xf32> -> vector<32x128xf32>
    %267 = arith.truncf %266 : vector<32x128xf32> to vector<32x128xbf16>
    %c4_243 = arith.constant 4 : index
    %c2_244 = arith.constant 2 : index
    %c0_245 = arith.constant 0 : index
    %c0_246 = arith.constant 0 : index
    %268 = vector.load %arg12[%c4_243, %c2_244, %c0_245, %c0_246] : memref<5x3x128x128xbf16, #tpu.memory_space<vmem>>, vector<1x1x128x128xbf16>
    %269 = vector.shape_cast %268 : vector<1x1x128x128xbf16> to vector<128x128xbf16>
    %cst_247 = arith.constant dense<0.000000e+00> : vector<32x128xf32>
    %270 = tpu.matmul %267, %269, %cst_247 {dimension_numbers = #tpu.dot_dimension_numbers<[1], [0], [0], [1], [0, 0, 1, 1], [], []>} : vector<32x128xbf16>, vector<128x128xbf16>, vector<32x128xf32> -> vector<32x128xf32>
    %271 = arith.addf %265, %270 : vector<32x128xf32>
    %272 = vector.broadcast %255 : vector<1x128xf32> to vector<32x128xf32>
    %273 = arith.addf %271, %272 : vector<32x128xf32>
    %274 = arith.addf %273, %231 : vector<32x128xf32>
    %cst_248 = arith.constant 0.000000e+00 : f32
    %275 = vector.broadcast %cst_248 : f32 to vector<32x128xf32>
    %276 = arith.maximumf %274, %275 : vector<32x128xf32>
    %c0_249 = arith.constant 0 : index
    %c0_250 = arith.constant 0 : index
    %277 = vector.load %arg14[%c0_249, %c0_250] : memref<32x128xf32, #tpu.memory_space<vmem>>, vector<32x128xf32>
    tpu.vector_store %arg14[%c0_249, %c0_250], %276 {strides = array<i32>} : memref<32x128xf32, #tpu.memory_space<vmem>>, vector<32x128xf32>,
    return
  }
  func.func @transform_0(%arg0: i32) -> (i32, i32) {
    %c0_i32 = arith.constant 0 : i32
    %c0_i32_0 = arith.constant 0 : i32
    return %arg0, %c0_i32 : i32, i32
  }
  func.func @transform_1(%arg0: i32) -> (i32, i32) {
    %c0_i32 = arith.constant 0 : i32
    %c0_i32_0 = arith.constant 0 : i32
    %c0_i32_1 = arith.constant 0 : i32
    return %c0_i32, %c0_i32_0 : i32, i32
  }
  func.func @transform_2(%arg0: i32) -> (i32, i32) {
    %c0_i32 = arith.constant 0 : i32
    %c0_i32_0 = arith.constant 0 : i32
    %c0_i32_1 = arith.constant 0 : i32
    return %c0_i32, %c0_i32_0 : i32, i32
  }
  func.func @transform_3(%arg0: i32) -> (i32, i32, i32) {
    %c0_i32 = arith.constant 0 : i32
    %c0_i32_0 = arith.constant 0 : i32
    %c0_i32_1 = arith.constant 0 : i32
    %c0_i32_2 = arith.constant 0 : i32
    return %c0_i32, %c0_i32_0, %c0_i32_1 : i32, i32, i32
  }
  func.func @transform_4(%arg0: i32) -> (i32, i32) {
    %c0_i32 = arith.constant 0 : i32
    %c0_i32_0 = arith.constant 0 : i32
    %c0_i32_1 = arith.constant 0 : i32
    return %c0_i32, %c0_i32_0 : i32, i32
  }
  func.func @transform_5(%arg0: i32) -> (i32, i32, i32) {
    %c0_i32 = arith.constant 0 : i32
    %c0_i32_0 = arith.constant 0 : i32
    %c0_i32_1 = arith.constant 0 : i32
    %c0_i32_2 = arith.constant 0 : i32
    return %c0_i32, %c0_i32_0, %c0_i32_1 : i32, i32, i32
  }
  func.func @transform_6(%arg0: i32) -> (i32, i32) {
    %c0_i32 = arith.constant 0 : i32
    %c0_i32_0 = arith.constant 0 : i32
    %c0_i32_1 = arith.constant 0 : i32
    return %c0_i32, %c0_i32_0 : i32, i32
  }
  func.func @transform_7(%arg0: i32) -> (i32, i32) {
    %c0_i32 = arith.constant 0 : i32
    %c0_i32_0 = arith.constant 0 : i32
    %c0_i32_1 = arith.constant 0 : i32
    return %c0_i32, %c0_i32_0 : i32, i32
  }
  func.func @transform_8(%arg0: i32) -> (i32, i32) {
    %c0_i32 = arith.constant 0 : i32
    %c0_i32_0 = arith.constant 0 : i32
    %c0_i32_1 = arith.constant 0 : i32
    return %c0_i32, %c0_i32_0 : i32, i32
  }
  func.func @transform_9(%arg0: i32) -> (i32, i32, i32, i32) {
    %c0_i32 = arith.constant 0 : i32
    %c0_i32_0 = arith.constant 0 : i32
    %c0_i32_1 = arith.constant 0 : i32
    %c0_i32_2 = arith.constant 0 : i32
    %c0_i32_3 = arith.constant 0 : i32
    return %c0_i32, %c0_i32_0, %c0_i32_1, %c0_i32_2 : i32, i32, i32, i32
  }
  func.func @transform_10(%arg0: i32) -> (i32, i32, i32) {
    %c0_i32 = arith.constant 0 : i32
    %c0_i32_0 = arith.constant 0 : i32
    %c0_i32_1 = arith.constant 0 : i32
    %c0_i32_2 = arith.constant 0 : i32
    return %c0_i32, %c0_i32_0, %c0_i32_1 : i32, i32, i32
  }
  func.func @transform_11(%arg0: i32) -> (i32, i32, i32, i32) {
    %c0_i32 = arith.constant 0 : i32
    %c0_i32_0 = arith.constant 0 : i32
    %c0_i32_1 = arith.constant 0 : i32
    %c0_i32_2 = arith.constant 0 : i32
    %c0_i32_3 = arith.constant 0 : i32
    return %c0_i32, %c0_i32_0, %c0_i32_1, %c0_i32_2 : i32, i32, i32, i32
  }
  func.func @transform_12(%arg0: i32) -> (i32, i32, i32) {
    %c0_i32 = arith.constant 0 : i32
    %c0_i32_0 = arith.constant 0 : i32
    %c0_i32_1 = arith.constant 0 : i32
    %c0_i32_2 = arith.constant 0 : i32
    return %c0_i32, %c0_i32_0, %c0_i32_1 : i32, i32, i32
  }
  func.func @transform_13(%arg0: i32) -> (i32, i32) {
    %c0_i32 = arith.constant 0 : i32
    %c0_i32_0 = arith.constant 0 : i32
    return %arg0, %c0_i32 : i32, i32
  }
}

</mosaic_0001>

<bundles_post_ra>
// kernel: tpu_custom_call.1
= control target key start
LH: loop header
LB: loop body
LE: loop exit
PB: predicated region body
PF: predicated region fallthrough
CT: control target
= control target key end

     0   :  { %s7358_s0 = inlined_call_operand.hbm [shape: f32[64,64], index: 0, kind: input, shape index: {}]   ;;  %s7359_s1 = inlined_call_operand.hbm [shape: bf16[32,32], index: 1, kind: input, shape index: {}]   ;;  %s7360_s2 = inlined_call_operand.hbm [shape: bf16[32,32], index: 2, kind: input, shape index: {}]   ;;  %s7361_s3 = inlined_call_operand.hbm [shape: bf16[3,64,128], index: 3, kind: input, shape index: {}]   ;;  %s7362_s4 = inlined_call_operand.hbm [shape: f32[1,128], index: 4, kind: input, shape index: {}]   ;;  %s7363_s5 = inlined_call_operand.hbm [shape: bf16[3,128,128], index: 5, kind: input, shape index: {}]   ;;  %s7364_s6 = inlined_call_operand.hbm [shape: f32[1,128], index: 6, kind: input, shape index: {}]   ;;  %s7365_s7 = inlined_call_operand.hbm [shape: bf16[64,128], index: 7, kind: input, shape index: {}]   ;;  %s7366_s8 = inlined_call_operand.hbm [shape: f32[1,128], index: 8, kind: input, shape index: {}]   ;;  %s7367_s9 = inlined_call_operand.hbm [shape: bf16[5,3,128,128], index: 9, kind: input, shape index: {}]   ;;  %s7368_s10 = inlined_call_operand.vmem [shape: f32[5,1,128], index: 10, kind: input, shape index: {}]   ;;  %s7369_s11 = inlined_call_operand.hbm [shape: bf16[5,3,128,128], index: 11, kind: input, shape index: {}]   ;;  %s7370_s12 = inlined_call_operand.vmem [shape: f32[5,1,128], index: 12, kind: input, shape index: {}]   ;;  %s7371_s13 = inlined_call_operand.hbm [shape: f32[64,128], index: 13, kind: output, shape index: {}]  }
   0x1   :  { %7373 = sst [smem:[#allocation28_spill]] %s7359_s1 }
   0x2   :  { %7374 = sst [smem:[#allocation29_spill]] %s7360_s2 }
   0x3   :  { %7375 = sst [smem:[#allocation30_spill]] %s7361_s3 }
   0x4   :  { %7376 = sst [smem:[#allocation31_spill]] %s7362_s4 }
   0x5   :  { %7377 = sst [smem:[#allocation32_spill]] %s7363_s5 }
   0x6   :  { %7378 = sst [smem:[#allocation33_spill]] %s7364_s6 }
   0x7   :  { %7379 = sst [smem:[#allocation34_spill]] %s7365_s7 }
   0x8   :  { %7380 = sst [smem:[#allocation35_spill]] %s7371_s13 }
   0x9   :  { %18 = vsyncpa [#allocation3], 0 }
   0xa   :  { %20 = vsyncpa [#allocation3 + $0x1], 0 }
   0xb   :  { %21 = vsyncpa [#allocation6], 0 }
   0xc   :  { %22 = vsyncpa [#allocation9], 0 }
   0xd   :  { %23 = vsyncpa [#allocation12], 0 }
   0xe   :  { %24 = vsyncpa [#allocation15], 0 }
   0xf   :  { %25 = vsyncpa [#allocation18], 0 }
  0x10   :  { %26 = vsyncpa [#allocation4], 0 }
  0x11   :  { %28 = vsyncpa [#allocation4 + $0x1], 0  ;;  %s6806_s25 = smov 0   ;;  %s6808_s26 = smov 0  }
  0x12   :  { %s6810_s27 = smov 0   ;;  %s6812_s28 = smov 0  }
  0x13 LB: > { %s7381_s1 = sld [smem:[#allocation28_spill]]  ;;  %s6830_s15 = sadd.s32 4294967295, %s6718_s28   ;;  %s6718_s28 = sphi %s6812_s28, %s7400_s28   ;;  %s6714_s27 = sphi %s6810_s27, %s7399_s27   ;;  %s6710_s26 = sphi %s6808_s26, %s7398_s26   ;;  %s6706_s25 = sphi %s6806_s25, %s7397_s25  }
  0x14   : > { %p4607_p0 = scmp.ge.s32.totalorder %s6718_s28, 1  ;;  %p55_p1 = scmp.eq.s32.totalorder %s6830_s15, 0 }
  0x15   : > { %p343_p2 = scmp.lt.s32.totalorder %s6718_s28, 3  ;;  %s6720_s17 = smov [#allocation5]  }
  0x16   : > { %s356_s18 = sshll.u32 %s6720_s17, 4  ;;  %s7383_s3 = sld [smem:[#allocation30_spill]]  ;;  %s357_s18 = int_to_ptr.vmem [resolvable:$true] %s356_s18 }
  0x17   : > { %p6835_p3 = pnand %p4607_p0, %p343_p2  ;;  %s7385_s5 = sld [smem:[#allocation32_spill]] }
  0x18   : > { %s6721_s30 = smov [#allocation8]   ;;  %s6723_s13 = smov 4  }
  0x19   : > { %s354_s14 = sshll.u32 %s7381_s1, 4  ;;  %p6172_p4 = pneg %p6835_p3  ;;  %s355_s14 = int_to_ptr.hbm [resolvable:$true] %s354_s14 }
  0x1a   : > { %s384_s17 = sshll.u32 %s6721_s30, 4  ;;  %s6722_s1 = smov 64   ;;  %s385_s17 = int_to_ptr.vmem [resolvable:$true] %s384_s17 }
  0x1b   : > { %p6847_p6 = pnand %p6172_p4, %p55_p1  ;;  %s7386_s7 = sld [smem:[#allocation34_spill]] }
  0x1c   : > { %s382_s21 = sshll.u32 %s7383_s3, 4  ;;  %s6724_s24 = smov [#allocation11]   ;;  %s383_s21 = int_to_ptr.hbm [resolvable:$true] %s382_s21 }
  0x1d   : > { %s408_s29 = sshll.u32 %s7385_s5, 4  ;;  %s410_s30 = sshll.u32 %s6724_s24, 4  ;;  %s409_s29 = int_to_ptr.hbm [resolvable:$true] %s408_s29  ;;  %s411_s30 = int_to_ptr.vmem [resolvable:$true] %s410_s30 }
  0x1e   : > { %6175 = dma.hbm_to_vmem [thread:$0]  (!%p6847_p6), %s355_s14, 256, %s357_s18, [#allocation6], %s6722_s1, %s6722_s1, %s6723_s13  }
  0x1f   : > { %6181 = dma.hbm_to_vmem [thread:$0]  (!%p6847_p6), %s383_s21, 1536, %s385_s17, [#allocation9], %s6722_s1, %s6722_s1, %s6723_s13  }
  0x20   : > { %6187 = dma.hbm_to_vmem [thread:$0]  (!%p6847_p6), %s409_s29, 3072, %s411_s30, [#allocation12], %s6722_s1, %s6722_s1, %s6723_s13  }
  0x21   : > { %s434_s23 = sshll.u32 %s7386_s7, 4  ;;  %s6725_s14 = smov [#allocation14]   ;;  %s435_s23 = int_to_ptr.hbm [resolvable:$true] %s434_s23 }
  0x22   : > { %s436_s18 = sshll.u32 %s6725_s14, 4  ;;  %s460_s21 = sshll.u32 %s7367_s9, 4  ;;  %s437_s18 = int_to_ptr.vmem [resolvable:$true] %s436_s18  ;;  %s461_s21 = int_to_ptr.hbm [resolvable:$true] %s460_s21 }
  0x23   : > { %6193 = dma.hbm_to_vmem [thread:$0]  (!%p6847_p6), %s435_s23, 512, %s437_s18, [#allocation15], %s6722_s1, %s6722_s1, %s6723_s13  }
  0x24   : > { %s7387_s2 = sld [smem:[#allocation29_spill]]  ;;  %s6726_s24 = smov [#allocation17]  }
  0x25   : > { %s462_s29 = sshll.u32 %s6726_s24, 4  ;;  %s6727_s3 = smov [#allocation7]   ;;  %s463_s29 = int_to_ptr.vmem [resolvable:$true] %s462_s29 }
  0x26   : > { %6199 = dma.hbm_to_vmem [thread:$0]  (!%p6847_p6), %s461_s21, 15360, %s463_s29, [#allocation18], %s6722_s1, %s6722_s1, %s6723_s13  }
  0x27   : > { %s370_s5 = sshll.u32 %s6727_s3, 4  ;;  %s7388_s4 = sld [smem:[#allocation31_spill]]  ;;  %s371_s5 = int_to_ptr.vmem [resolvable:$true] %s370_s5 }
  0x28   : > { %s7389_s6 = sld [smem:[#allocation33_spill]]  ;;  %s6728_s24 = smov [#allocation10]  }
  0x29   : > { %s399_s21 = sshll.u32 %s6728_s24, 4  ;;  %s6729_s29 = smov [#allocation13]   ;;  %s400_s21 = int_to_ptr.vmem [resolvable:$true] %s399_s21 }
  0x2a   : > { %s368_s20 = sshll.u32 %s7387_s2, 4  ;;  %s425_s3 = sshll.u32 %s6729_s29, 4  ;;  %s369_s20 = int_to_ptr.hbm [resolvable:$true] %s368_s20  ;;  %s426_s3 = int_to_ptr.vmem [resolvable:$true] %s425_s3 }
  0x2b   : > { %6178 = dma.hbm_to_vmem [thread:$0]  (!%p6847_p6), %s369_s20, 256, %s371_s5, [#allocation6], %s6722_s1, %s6722_s1, %s6723_s13  }
  0x2c   : > { %s449_s20 = sshll.u32 %s7366_s8, 4  ;;  %s6730_s17 = smov [#allocation16]   ;;  %s450_s20 = int_to_ptr.hbm [resolvable:$true] %s449_s20 }
  0x2d   : > { %s397_s23 = sshll.u32 %s7388_s4, 4  ;;  %s451_s24 = sshll.u32 %s6730_s17, 4  ;;  %s398_s23 = int_to_ptr.hbm [resolvable:$true] %s397_s23  ;;  %s452_s24 = int_to_ptr.vmem [resolvable:$true] %s451_s24 }
  0x2e   : > { %s423_s19 = sshll.u32 %s7389_s6, 4  ;;  %s4606_s29 = sadd.s32 4294967294, %s6718_s28   ;;  %s424_s19 = int_to_ptr.hbm [resolvable:$true] %s423_s19 }
  0x2f   : > { %6184 = dma.hbm_to_vmem [thread:$0]  (!%p6847_p6), %s398_s23, 16, %s400_s21, [#allocation9]  }
  0x30   : > { %6190 = dma.hbm_to_vmem [thread:$0]  (!%p6847_p6), %s424_s19, 16, %s426_s3, [#allocation12]  }
  0x31   : > { %s477_s23 = sshll.u32 %s7369_s11, 4  ;;  %s6731_s21 = smov [#allocation19]   ;;  %s478_s23 = int_to_ptr.hbm [resolvable:$true] %s477_s23 }
  0x32   : > { %6196 = dma.hbm_to_vmem [thread:$0]  (!%p6847_p6), %s450_s20, 16, %s452_s24, [#allocation15]  }
  0x33   : > { %s479_s19 = sshll.u32 %s6731_s21, 4  ;;  %s6918_s3 = sadd.s32 1, %s6718_s28   ;;  %s480_s19 = int_to_ptr.vmem [resolvable:$true] %s479_s19 }
  0x34   : > { %6202 = dma.hbm_to_vmem [thread:$0]  (!%p6847_p6), %s478_s23, 15360, %s480_s19, [#allocation18], %s6722_s1, %s6722_s1, %s6723_s13  }
  0x35   : > { %s38_s30 = ssub.s32 %s6718_s28, %s6918_s3  ;;  %s41_s14 = sadd.s32 1, %s6714_s27 }
  0x36   : > { %p39_p7 = scmp.eq.s32.totalorder %s38_s30, 0  ;;  %p48_p8 = scmp.ne.s32.totalorder %s6714_s27, %s6710_s26 }
  0x37   : > { %p49_p9 = scmp.eq.s32.totalorder %s6718_s28, 0  ;;  %p54_p10 = scmp.ne.s32.totalorder %s6710_s26, %s6706_s25 }
  0x38   : > { %s6929_s20 = scalar_select %p39_p7, %s6714_s27, %s41_s14  }
  0x39   : > { %p6931_p11 = por %p49_p9, %p48_p8  ;;  %p6937_p12 = por %p55_p1, %p54_p10 }
  0x3a   : > { %p330_p13 = scmp.eq.s32.totalorder %s6830_s15, 1  ;;  %p336_p0 = scmp.eq.s32.totalorder %s4606_s29, 1 }
  0x3b   : > { %p6221_p2 = scmp.lt.s32.totalorder %s6718_s28, 2  ;;  %s496_s13 = sand.u32 1, %s6714_s27  }
  0x3c   : > { %p6944_p4 = por %p330_p13, %p48_p8  ;;  %p6948_p6 = por %p336_p0, %p54_p10 }
  0x3d   : > { %s4619_s23 = sshll.u32 %s496_s13, 5  ;;  %s5840_s17 = sshll.u32 %s6718_s28, 5 }
  0x3e   : > { %s505_s19 = scalar_lea.hbm %s7358_s0, %s5840_s17  ;;  %s500_s30 = scalar_lea.vmem [#allocation2], %s4619_s23 }
  0x3f   : > { %s508_s14 = sshll.u32 %s500_s30, 4  ;;  %s506_s2 = sshll.u32 %s505_s19, 4  ;;  %s509_s14 = int_to_ptr.vmem [resolvable:$true] %s508_s14  ;;  %s507_s2 = int_to_ptr.hbm [resolvable:$true] %s506_s2 }
  0x40   : > { %p6958_p7 = pnand %p6221_p2, %p6931_p11  ;;  %s497_s4 = scalar_lea.sflag [#allocation3], %s496_s13 }
  0x41   : > { %s6602_s6 = sshra.s32 %s507_s2, 4  ;;  %s6609_s24 = scalar_lea.hbm %s7358_s0, 64  ;;  %s6603_s6 = int_to_ptr.hbm [resolvable:$true] %s6602_s6 }
  0x42   : > { %s6604_s7 = scalar_lea.hbm %s6603_s6, 32  ;;  %p6606_p9 = pneg %p6958_p7 }
  0x43   : > { %p6605_p8 = scmp.ne.s32.totalorder %s6603_s6, %s6604_s7  ;;  %p6610_p11 = scmp.lt.s32.totalorder %s6603_s6, %s7358_s0 }
  0x44   : > { %p6611_p0 = scmp.lt.s32.totalorder %s6609_s24, %s6604_s7 }
  0x45   : > { %p6607_p10 = pnand %p6606_p9, %p6605_p8 }
  0x46   : > { %p6612_p2 = por %p6611_p0, %p6610_p11 }
  0x47   : > { %p6608_p13 = pneg %p6607_p10 }
  0x49   : > { %p6613_p5 = pnand %p6612_p2, %p6608_p13 }
  0x4b   : > { %6616 = shalt.err (!%p6613_p5)
}
  0x4c   : > { %s6732_s13 = smov 128   ;;  %s6733_s19 = smov 8  }
  0x4d   : > { %6206 = dma.hbm_to_vmem [thread:$0]  (!%p6958_p7), %s507_s2, 512, %s509_s14, %s497_s4, %s6732_s13, %s6732_s13, %s6733_s19  }
  0x4e   : > { %520 = sbr.rel (%p6835_p3) target bundleno = 3857 (0xf11), region = 72  ;;  %s6975_s30 = sand.u32 (!%p6835_p3), 1, %s6710_s26  }
  0x4f   : > { %s4623_s6 = sshll.u32 (!%p6835_p3), %s6975_s30, 5  ;;  %s523_s7 = scalar_lea.sflag (!%p6835_p3), [#allocation3], %s6975_s30 }
  0x50   : > { %s526_s23 = scalar_lea.vmem (!%p6835_p3), [#allocation2], %s4623_s6 }
  0x53   : > { %6677 = dma.done.wait (%p6937_p12), %s523_s7, 512  }
  0x54   : > { %6679 = vsyncadd (%p6937_p12), %s523_s7, 4294966784 }
  0x55   : > { %6681 = dma.done.wait (%p55_p1), [#allocation6], 512  }
  0x56   : > { %6683 = vsyncadd (%p55_p1), [#allocation6], 4294966784 }
  0x57   : > { %6685 = dma.done.wait (%p55_p1), [#allocation9], 1552  }
  0x58   : > { %6687 = vsyncadd (%p55_p1), [#allocation9], 4294965744 }
  0x59   : > { %6689 = dma.done.wait (%p55_p1), [#allocation12], 3088  }
  0x5a   : > { %6691 = vsyncadd (%p55_p1), [#allocation12], 4294964208 }
  0x5b   : > { %6693 = dma.done.wait (%p55_p1), [#allocation15], 528  }
  0x5c   : > { %6695 = vsyncadd (%p55_p1), [#allocation15], 4294966768 }
  0x5d   : > { %6697 = dma.done.wait (%p55_p1), [#allocation18], 30720  }
  0x5e   : > { %6699 = vsyncadd (%p55_p1), [#allocation18], 4294936576  ;;  %v633_v0 = vld [vmem:[%s526_s23 + $0x10] sm:$0xff]  ;;  %v634_v1 = vld [vmem:[%s526_s23 + $0x18] sm:$0xff]  ;;  %vm648_vm0 = vcmask 261120   ;;  %vm717_vm1 = vcmask 523264  }
  0x5f   : > { %v631_v2 = vld [vmem:[%s526_s23] sm:$0xff]  ;;  %v7005_v3 = vpack.c.bf16 %v634_v1, %v633_v0  ;;  %v632_v4 = vld [vmem:[%s526_s23 + $0x8] sm:$0xff]  ;;  %v5848_v8 = vld [vmem:[#allocation8 + $0x18] sm:$0xff]  ;;  %s619_s17 = scalar_lea.vmem [#allocation20], %s4623_s6  ;;  %s6125_s24 = sshll.u32 %s6830_s15, 5 }
  0x60   : > { %v7009_v5 = vpack.c.bf16 %v632_v4, %v631_v2  ;;  %v7011_v6 = vld [vmem:[#allocation5] sm:$0xff]  ;;  %v7013_v7 = vld [vmem:[#allocation5 + $0x8] sm:$0xff]  ;;  %777 = vmatpush.bf16.msra.mxu2 %v5848_v8  ;;  %v7023_v9 = vld [vmem:[#allocation7] sm:$0xff]  ;;  %s7395_s22 = sld [smem:[#allocation35_spill]]  ;;  %s4435_s19 = sshll.u32 %s619_s17, 4  ;;  %s4436_s19 = int_to_ptr.vmem [resolvable:$true] %s4435_s19 }
  0x61   : > { %661 = vmatpush.bf16.msra.mxu0 %v7005_v3  ;;  %6126 = vmatpush.bf16.msra.mxu3 %v7005_v3  ;;  %v7027_v10 = vld [vmem:[#allocation7 + $0x8] sm:$0xff]  ;;  %v5847_v11 = vld [vmem:[#allocation8 + $0x10] sm:$0xff]  ;;  %v5846_v13 = vld [vmem:[#allocation8 + $0x8] sm:$0xff]  ;;  %s4423_s15 = scalar_lea.sflag [#allocation4], %s6975_s30 }
  0x62   : > { %v5852_v12 = vld [vmem:[#allocation8 + $0x38] sm:$0xff]  ;;  %v5851_v14 = vld [vmem:[#allocation8 + $0x30] sm:$0xff]  ;;  %v5845_v15 = vld [vmem:[#allocation8] sm:$0xff] }
  0x63   : > { %728 = vmatpush.bf16.msra.mxu1 %v5852_v12  ;;  %v5850_v16 = vld [vmem:[#allocation8 + $0x28] sm:$0xff]  ;;  %v5849_v17 = vld [vmem:[#allocation8 + $0x20] sm:$0xff]  ;;  %v5856_v18 = vld [vmem:[#allocation8 + $0x58] sm:$0xff] }
  0x64   : > { %778 = vmatpush.bf16.msra.mxu2 %v5847_v11  ;;  %v5855_v19 = vld [vmem:[#allocation8 + $0x50] sm:$0xff]  ;;  %v5854_v20 = vld [vmem:[#allocation8 + $0x48] sm:$0xff]  ;;  %v5853_v21 = vld [vmem:[#allocation8 + $0x40] sm:$0xff] }
  0x65   : > { %662 = vmatpush.bf16.msra.mxu0 %v7009_v5  ;;  %6127 = vmatpush.bf16.msra.mxu3 %v7009_v5  ;;  %v5860_v34 = vld [vmem:[#allocation14 + $0x18] sm:$0xff]  ;;  %v5859_v36 = vld [vmem:[#allocation14 + $0x10] sm:$0xff]  ;;  %v5858_v38 = vld [vmem:[#allocation14 + $0x8] sm:$0xff] }
  0x66   : > { %v5876_v35 = vld [vmem:[#allocation11 + $0x78] sm:$0xff]  ;;  %v5875_v37 = vld [vmem:[#allocation11 + $0x70] sm:$0xff]  ;;  %v5874_v39 = vld [vmem:[#allocation11 + $0x68] sm:$0xff]  ;;  %s4434_s13 = scalar_lea.hbm %s7395_s22, %s6125_s24  ;;  %s6652_s1 = scalar_lea.hbm %s7395_s22, 64 }
  0x67   : > { %729 = vmatpush.bf16.msra.mxu1 %v5851_v14  ;;  %v5857_v40 = vld [vmem:[#allocation14] sm:$0xff]  ;;  %v5872_v42 = vld [vmem:[#allocation11 + $0x58] sm:$0xff]  ;;  %v5871_v43 = vld [vmem:[#allocation11 + $0x50] sm:$0xff]  ;;  %s4437_s7 = sshll.u32 %s4434_s13, 4  ;;  %s4438_s7 = int_to_ptr.hbm [resolvable:$true] %s4437_s7 }
  0x68   : > { %4643 = vmatmul.msk.bf16.vlgmr.msra.gmra.mxu0 %vm648_vm0, %v7011_v6  ;;  %4644 = vmatmul.msk.bf16.vlgmr.msra.gmra.mxu3 %vm648_vm0, %v7013_v7  ;;  %v5873_v41 = vld [vmem:[#allocation11 + $0x60] sm:$0xff]  ;;  %v5870_v44 = vld [vmem:[#allocation11 + $0x48] sm:$0xff]  ;;  %v6281_v53 = vld [vmem:[#allocation10] ss:$0 sm:$0xff]  ;;  %s6646_s23 = sshra.s32 %s4438_s7, 4  ;;  %s6647_s23 = int_to_ptr.hbm [resolvable:$true] %s6646_s23 }
  0x69   : > { %814 = vmatpush.bf16.msrb.mxu3 %v7005_v3  ;;  %779 = vmatpush.bf16.msra.mxu2 %v5846_v13  ;;  %v5869_v45 = vld [vmem:[#allocation11 + $0x40] sm:$0xff]  ;;  %s6648_s2 = scalar_lea.hbm %s6647_s23, 32  ;;  %p6653_p12 = scmp.lt.s32.totalorder %s6647_s23, %s7395_s22 }
  0x6a   : > { %872 = vmatpush.bf16.msrb.mxu0 %v5856_v18  ;;  %v5867_v18 = vld [vmem:[#allocation11 + $0x30] sm:$0xff]  ;;  %p6649_p1 = scmp.ne.s32.totalorder %s6647_s23, %s6648_s2  ;;  %p6654_p7 = scmp.lt.s32.totalorder %s6652_s1, %s6648_s2 }
  0x6b   : > { %730 = vmatpush.bf16.msra.mxu1 %v5850_v16 }
  0x6c   : > { %p6650_p3 = pnand %p6649_p1, %p6944_p4  ;;  %p6655_p8 = por %p6654_p7, %p6653_p12 }
  0x6d   : > { %815 = vmatpush.bf16.msrb.mxu3 %v7009_v5  ;;  %780 = vmatpush.bf16.msra.mxu2 %v5845_v15 }
  0x6e   : > { %873 = vmatpush.bf16.msrb.mxu0 %v5855_v19  ;;  %v5884_v19 = vld [vmem:[#allocation11 + $0xb8] sm:$0xff]  ;;  %p6651_p5 = pneg %p6650_p3 }
  0x6f   : > { %731 = vmatpush.bf16.msra.mxu1 %v5849_v17  ;;  %v5868_v17 = vld [vmem:[#allocation11 + $0x38] sm:$0xff] }
  0x70   : > { %p6656_p9 = pnand %p6655_p8, %p6651_p5 }
  0x71   : > { %942 = vmatpush.bf16.msra.mxu3 %v5860_v34  ;;  %1062 = vmatpush.bf16.msrb.mxu2 %v5876_v35  ;;  %v5877_v34 = vld [vmem:[#allocation11 + $0x80] sm:$0xff] }
  0x72   : > { %4661 = vmatmul.msk.bf16.vlgmr.msra.gmra.mxu1 %vm717_vm1, %v7009_v5  ;;  %874 = vmatpush.bf16.msrb.mxu0 %v5854_v20  ;;  %v5866_v20 = vld [vmem:[#allocation11 + $0x28] sm:$0xff] }
  0x75   : > { %943 = vmatpush.bf16.msra.mxu3 %v5859_v36  ;;  %1063 = vmatpush.bf16.msrb.mxu2 %v5875_v37 }
  0x76   : > { %875 = vmatpush.bf16.msrb.mxu0 %v5853_v21  ;;  %v5883_v21 = vld [vmem:[#allocation11 + $0xb0] sm:$0xff] }
  0x78   : > { %4689 = vmatmul.msk.bf16.vlgmr.msrb.gmra.mxu3 %vm648_vm0, %v7023_v9 }
  0x79   : > { %944 = vmatpush.bf16.msra.mxu3 %v5858_v38  ;;  %1064 = vmatpush.bf16.msrb.mxu2 %v5874_v39  ;;  %v5900_v38 = vld [vmem:[#allocation17 + $0x78] sm:$0xff]  ;;  %v5899_v39 = vld [vmem:[#allocation17 + $0x70] sm:$0xff] }
  0x7a   : > { %1129 = vmatpush.bf16.msra.mxu0 %v5868_v17 }
  0x7d   : > { %945 = vmatpush.bf16.msra.mxu3 %v5857_v40  ;;  %1065 = vmatpush.bf16.msrb.mxu2 %v5873_v41 }
  0x7e   : > { %1130 = vmatpush.bf16.msra.mxu0 %v5867_v18 }
  0x81   : > { %1066 = vmatpush.bf16.msrb.mxu2 %v5872_v42 }
  0x82   : > { %4662 = vmatmul.msk.bf16.gmra.mxu1 %vm717_vm1, %v7005_v3  ;;  %1131 = vmatpush.bf16.msra.mxu0 %v5866_v20 }
  0x85   : > { %1067 = vmatpush.bf16.msrb.mxu2 %v5871_v43 }
  0x88   : > { %4690 = vmatmul.msk.bf16.gmra.mxu3 %vm648_vm0, %v7027_v10 }
  0x89   : > { %1068 = vmatpush.bf16.msrb.mxu2 %v5870_v44 }
  0x8d   : > { %1069 = vmatpush.bf16.msrb.mxu2 %v5869_v45 }
  0x98   : > { %4725 = vmatmul.msk.bf16.vlgmr.msra.gmra.mxu3 %vm717_vm1, %v7009_v5 }
  0xa8   : > { %4726 = vmatmul.msk.bf16.gmra.mxu3 %vm717_vm1, %v7005_v3 }
  0xe5   : > { %v664_v22 = vpop.f32.mrf.mxu0 }
  0xeb   : > { %v669_v23 = vpop.f32.mrf.mxu3 }
  0xed   : > { %v666_v24 = vpop.f32.mrf.mxu0 }
  0xee   : > { %v674_v25 = vpack.c.bf16 %v666_v24, %v664_v22  ;;  %v5865_v22 = vld [vmem:[#allocation11 + $0x20] sm:$0xff]  ;;  %v5864_v24 = vld [vmem:[#allocation11 + $0x18] sm:$0xff] }
  0xef   : > { %v733_v46 = vpop.f32.mrf.mxu1  ;;  %1132 = vmatpush.bf16.msra.mxu0 %v5865_v22 }
  0xf0   : > { %4679 = vmatmul.msk.bf16.vlgmr.msra.gmra.mxu2 %vm717_vm1, %v674_v25  ;;  %v5881_v25 = vld [vmem:[#allocation11 + $0xa0] sm:$0xff] }
  0xf3   : > { %v671_v26 = vpop.f32.mrf.mxu3  ;;  %1133 = vmatpush.bf16.msra.mxu0 %v5864_v24 }
  0xf4   : > { %v675_v28 = vpack.c.bf16 %v671_v26, %v669_v23  ;;  %v5882_v23 = vld [vmem:[#allocation11 + $0xa8] sm:$0xff]  ;;  %v5863_v26 = vld [vmem:[#allocation11 + $0x10] sm:$0xff] }
  0xf7   : > { %v735_v48 = vpop.f32.mrf.mxu1  ;;  %1134 = vmatpush.bf16.msra.mxu0 %v5863_v26 }
  0xfb   : > { %v817_v27 = vpop.f32.mrf.mxu3 }
  0xff   : > { %v738_v58 = vpop.f32.mrf.mxu1 }
 0x100   : > { %4680 = vmatmul.msk.bf16.gmra.mxu2 %vm717_vm1, %v675_v28 }
 0x103   : > { %v819_v29 = vpop.f32.mrf.mxu3 }
 0x104   : > { %v827_v30 = vpack.c.bf16 %v819_v29, %v817_v27  ;;  %v5880_v27 = vld [vmem:[#allocation11 + $0x98] sm:$0xff]  ;;  %v5862_v29 = vld [vmem:[#allocation11 + $0x8] sm:$0xff] }
 0x105   : > { %1135 = vmatpush.bf16.msra.mxu0 %v5862_v29 }
 0x106   : > { %4707 = vmatmul.msk.bf16.vlgmr.msrb.gmra.mxu0 %vm717_vm1, %v827_v30  ;;  %v5879_v30 = vld [vmem:[#allocation11 + $0x90] sm:$0xff] }
 0x107   : > { %v740_v2 = vpop.f32.mrf.mxu1 }
 0x10b   : > { %v822_v31 = vpop.f32.mrf.mxu3 }
 0x113   : > { %v824_v32 = vpop.f32.mrf.mxu3 }
 0x114   : > { %v828_v33 = vpack.c.bf16 %v824_v32, %v822_v31  ;;  %v5861_v31 = vld [vmem:[#allocation11] sm:$0xff]  ;;  %v5878_v32 = vld [vmem:[#allocation11 + $0x88] sm:$0xff] }
 0x115   : > { %1136 = vmatpush.bf16.msra.mxu0 %v5861_v31 }
 0x116   : > { %4708 = vmatmul.msk.bf16.gmra.mxu0 %vm717_vm1, %v828_v33 }
 0x119   : > { %1377 = vmatpush.bf16.msrb.mxu0 %v5900_v38 }
 0x11b   : > { %v947_v28 = vpop.f32.mrf.mxu3 }
 0x11d   : > { %1378 = vmatpush.bf16.msrb.mxu0 %v5899_v39  ;;  %v5892_v39 = vld [vmem:[#allocation17 + $0x38] sm:$0xff] }
 0x123   : > { %v949_v33 = vpop.f32.mrf.mxu3 }
 0x12b   : > { %v7051_v35 = vpop.f32.mrf.mxu3 }
 0x133   : > { %v7053_v36 = vpop.f32.mrf.mxu3 }
 0x173   : > { %v782_v47 = vpop.f32.mrf.mxu2 }
 0x174   : > { %v783_v51 = vadd.f32 %v782_v47, %v733_v46 }
 0x17b   : > { %v784_v49 = vpop.f32.mrf.mxu2 }
 0x17c   : > { %v785_v54 = vadd.f32 %v784_v49, %v735_v48 }
 0x183   : > { %v877_v50 = vpop.f32.mrf.mxu0  ;;  %v787_v59 = vpop.f32.mrf.mxu2 }
 0x184   : > { %v887_v52 = vadd.f32 %v877_v50, %v783_v51  ;;  %v788_v1 = vadd.f32 %v787_v59, %v738_v58  ;;  %v5898_v51 = vld [vmem:[#allocation17 + $0x68] sm:$0xff] }
 0x185   : > { %1379 = vmatpush.bf16.msrb.mxu0 %v5898_v51  ;;  %v5886_v51 = vld [vmem:[#allocation17 + $0x8] sm:$0xff] }
 0x186   : > { %v894_v56 = vadd.f32 %v6281_v53, %v887_v52  ;;  %v5897_v52 = vld [vmem:[#allocation17 + $0x60] sm:$0xff] }
 0x188   : > { %v898_v61 = vmax.f32 %v894_v56, 0.0  ;;  %v5893_v56 = vld [vmem:[#allocation17 + $0x40] sm:$0xff] }
 0x189   : > { %1380 = vmatpush.bf16.msrb.mxu0 %v5897_v52  ;;  %v5885_v52 = vld [vmem:[#allocation17] sm:$0xff] }
 0x18b   : > { %v879_v55 = vpop.f32.mrf.mxu0  ;;  %v789_v3 = vpop.f32.mrf.mxu2 }
 0x18c   : > { %v888_v57 = vadd.f32 %v879_v55, %v785_v54  ;;  %v790_v5 = vadd.f32 %v789_v3, %v740_v2  ;;  %v5895_v54 = vld [vmem:[#allocation17 + $0x50] sm:$0xff]  ;;  %v5894_v55 = vld [vmem:[#allocation17 + $0x48] sm:$0xff] }
 0x18e   : > { %v895_v60 = vadd.f32 %v6281_v53, %v888_v57 }
 0x190   : > { %v899_v62 = vmax.f32 %v895_v60, 0.0 }
 0x192   : > { %v958_v63 = vpack.c.bf16 %v899_v62, %v898_v61 }
 0x193   : > { %v882_v0 = vpop.f32.mrf.mxu0 }
 0x194   : > { %1070 = vmatmul.bf16.vlgmr.msrb.gmra.mxu2 %v958_v63  ;;  %v889_v4 = vadd.f32 %v882_v0, %v788_v1  ;;  %v6283_v0 = vld [vmem:[#allocation13] ss:$0 sm:$0xff]  ;;  %v6282_v1 = vld [vmem:[#allocation16] ss:$0 sm:$0xff] }
 0x196   : > { %v896_v11 = vadd.f32 %v6281_v53, %v889_v4 }
 0x198   : > { %v900_v14 = vmax.f32 %v896_v11, 0.0 }
 0x19b   : > { %v884_v8 = vpop.f32.mrf.mxu0 }
 0x19c   : > { %v890_v12 = vadd.f32 %v884_v8, %v790_v5  ;;  %v948_v5 = vadd.f32 %v6282_v1, %v947_v28  ;;  %v953_v28 = vadd.f32 %v6282_v1, %v7051_v35  ;;  %v5908_v35 = vld [vmem:[#allocation17 + $0xb8] sm:$0xff] }
 0x19e   : > { %v897_v13 = vadd.f32 %v6281_v53, %v890_v12  ;;  %v5896_v53 = vld [vmem:[#allocation17 + $0x58] sm:$0xff]  ;;  %v950_v12 = vadd.f32 %v6282_v1, %v949_v33 }
 0x19f   : > { %1381 = vmatpush.bf16.msrb.mxu0 %v5896_v53 }
 0x1a0   : > { %v901_v15 = vmax.f32 %v897_v13, 0.0 }
 0x1a2   : > { %v959_v16 = vpack.c.bf16 %v901_v15, %v900_v14 }
 0x1a3   : > { %1382 = vmatpush.bf16.msrb.mxu0 %v5895_v54  ;;  %v5924_v54 = vld [vmem:[#allocation19 + $0x78] sm:$0xff] }
 0x1a4   : > { %966 = vmatpush.bf16.msrb.mxu1 %v959_v16  ;;  %1075 = vmatmul.bf16.gmra.mxu2 %v959_v16 }
 0x1a5   : > { %1154 = vmatpush.bf16.msrb.mxu3 %v959_v16 }
 0x1a7   : > { %1383 = vmatpush.bf16.msrb.mxu0 %v5894_v55  ;;  %v5923_v55 = vld [vmem:[#allocation19 + $0x70] sm:$0xff] }
 0x1a8   : > { %967 = vmatpush.bf16.msrb.mxu1 %v958_v63 }
 0x1a9   : > { %1155 = vmatpush.bf16.msrb.mxu3 %v958_v63 }
 0x1ab   : > { %4727 = vmatmul.msk.bf16.vlgmr.msrb.gmra.mxu1 %vm648_vm0, %v7011_v6  ;;  %1384 = vmatpush.bf16.msrb.mxu0 %v5893_v56 }
 0x1ac   : > { %4793 = vmatmul.msk.bf16.vlgmr.msrb.gmra.mxu3 %vm648_vm0, %v7023_v9  ;;  %1234 = vmatpush.bf16.msra.mxu1 %v5884_v19 }
 0x1ad   : > { %1444 = vmatpush.bf16.msra.mxu3 %v5892_v39 }
 0x1b0   : > { %1235 = vmatpush.bf16.msra.mxu1 %v5883_v21 }
 0x1b4   : > { %1236 = vmatpush.bf16.msra.mxu1 %v5882_v23 }
 0x1b8   : > { %1237 = vmatpush.bf16.msra.mxu1 %v5881_v25 }
 0x1bb   : > { %4728 = vmatmul.msk.bf16.gmra.mxu1 %vm648_vm0, %v7013_v7 }
 0x1bc   : > { %4794 = vmatmul.msk.bf16.gmra.mxu3 %vm648_vm0, %v7027_v10  ;;  %1238 = vmatpush.bf16.msra.mxu1 %v5880_v27 }
 0x1c0   : > { %1239 = vmatpush.bf16.msra.mxu1 %v5879_v30  ;;  %v955_v30 = vadd.f32 %v6282_v1, %v7053_v36  ;;  %v5907_v36 = vld [vmem:[#allocation17 + $0xb0] sm:$0xff] }
 0x1c4   : > { %1240 = vmatpush.bf16.msra.mxu1 %v5878_v32 }
 0x1c8   : > { %1241 = vmatpush.bf16.msra.mxu1 %v5877_v34 }
 0x217   : > { %v1071_v57 = vpop.f32.mrf.mxu2 }
 0x21f   : > { %v1073_v62 = vpop.f32.mrf.mxu2 }
 0x227   : > { %v1076_v15 = vpop.f32.mrf.mxu2 }
 0x228   : > { %v969_v37 = vpop.f32.mrf.mxu1 }
 0x22f   : > { %v1157_v40 = vpop.f32.mrf.mxu3  ;;  %v1078_v24 = vpop.f32.mrf.mxu2 }
 0x230   : > { %v971_v41 = vpop.f32.mrf.mxu1 }
 0x231   : > { %v979_v42 = vpack.c.bf16 %v971_v41, %v969_v37  ;;  %v5891_v41 = vld [vmem:[#allocation17 + $0x30] sm:$0xff] }
 0x232   : > { %1445 = vmatpush.bf16.msra.mxu3 %v5891_v41 }
 0x233   : > { %1137 = vmatmul.bf16.vlgmr.msra.gmra.mxu0 %v979_v42  ;;  %v5905_v42 = vld [vmem:[#allocation17 + $0xa0] sm:$0xff] }
 0x237   : > { %v1159_v43 = vpop.f32.mrf.mxu3 }
 0x238   : > { %v1167_v44 = vpack.c.bf16 %v1159_v43, %v1157_v40  ;;  %v974_v45 = vpop.f32.mrf.mxu1  ;;  %v5906_v40 = vld [vmem:[#allocation17 + $0xa8] sm:$0xff] }
 0x239   : > { %v5890_v43 = vld [vmem:[#allocation17 + $0x28] sm:$0xff] }
 0x23a   : > { %1242 = vmatmul.bf16.vlgmr.msra.gmra.mxu1 %v1167_v44  ;;  %v5904_v44 = vld [vmem:[#allocation17 + $0x98] sm:$0xff]  ;;  %1446 = vmatpush.bf16.msra.mxu3 %v5890_v43 }
 0x23f   : > { %v1162_v46 = vpop.f32.mrf.mxu3 }
 0x240   : > { %v976_v47 = vpop.f32.mrf.mxu1 }
 0x241   : > { %v980_v48 = vpack.c.bf16 %v976_v47, %v974_v45  ;;  %v5889_v45 = vld [vmem:[#allocation17 + $0x20] sm:$0xff]  ;;  %v5888_v47 = vld [vmem:[#allocation17 + $0x18] sm:$0xff] }
 0x242   : > { %1447 = vmatpush.bf16.msra.mxu3 %v5889_v45 }
 0x243   : > { %1142 = vmatmul.bf16.gmra.mxu0 %v980_v48  ;;  %v5902_v48 = vld [vmem:[#allocation17 + $0x88] sm:$0xff] }
 0x246   : > { %1448 = vmatpush.bf16.msra.mxu3 %v5888_v47 }
 0x247   : > { %v1164_v49 = vpop.f32.mrf.mxu3 }
 0x248   : > { %v1168_v50 = vpack.c.bf16 %v1164_v49, %v1162_v46  ;;  %v5903_v46 = vld [vmem:[#allocation17 + $0x90] sm:$0xff] }
 0x249   : > { %v5887_v49 = vld [vmem:[#allocation17 + $0x10] sm:$0xff] }
 0x24a   : > { %1247 = vmatmul.bf16.gmra.mxu1 %v1168_v50  ;;  %1449 = vmatpush.bf16.msra.mxu3 %v5887_v49  ;;  %v5901_v50 = vld [vmem:[#allocation17 + $0x80] sm:$0xff] }
 0x24e   : > { %1450 = vmatpush.bf16.msra.mxu3 %v5886_v51 }
 0x252   : > { %1451 = vmatpush.bf16.msra.mxu3 %v5885_v52 }
 0x256   : > { %1688 = vmatpush.bf16.msrb.mxu3 %v5924_v54  ;;  %v5932_v54 = vld [vmem:[#allocation19 + $0xb8] sm:$0xff] }
 0x25a   : > { %1689 = vmatpush.bf16.msrb.mxu3 %v5923_v55  ;;  %v5914_v55 = vld [vmem:[#allocation19 + $0x28] sm:$0xff] }
 0x2b0   : > { %v1138_v58 = vpop.f32.mrf.mxu0 }
 0x2b1   : > { %v1139_v60 = vadd.f32 %v1138_v58, %v1071_v57 }
 0x2b7   : > { %v1243_v59 = vpop.f32.mrf.mxu1 }
 0x2b8   : > { %v1140_v61 = vpop.f32.mrf.mxu0  ;;  %v1253_v63 = vadd.f32 %v1243_v59, %v1139_v60 }
 0x2b9   : > { %v1141_v3 = vadd.f32 %v1140_v61, %v1073_v62 }
 0x2ba   : > { %v1260_v2 = vadd.f32 %v6283_v0, %v1253_v63 }
 0x2bc   : > { %v7055_v13 = vadd.f32 %v1260_v2, %v948_v5  ;;  %v5920_v5 = vld [vmem:[#allocation19 + $0x58] sm:$0xff] }
 0x2be   : > { %v1268_v17 = vmax.f32 %v7055_v13, 0.0 }
 0x2bf   : > { %v1245_v4 = vpop.f32.mrf.mxu1 }
 0x2c0   : > { %v1254_v8 = vadd.f32 %v1245_v4, %v1141_v3  ;;  %v1143_v11 = vpop.f32.mrf.mxu0  ;;  %v5922_v3 = vld [vmem:[#allocation19 + $0x68] sm:$0xff]  ;;  %v5921_v4 = vld [vmem:[#allocation19 + $0x60] sm:$0xff] }
 0x2c1   : > { %v1144_v20 = vadd.f32 %v1143_v11, %v1076_v15  ;;  %1690 = vmatpush.bf16.msrb.mxu3 %v5922_v3  ;;  %v5918_v11 = vld [vmem:[#allocation19 + $0x48] sm:$0xff]  ;;  %v5925_v3 = vld [vmem:[#allocation19 + $0x80] sm:$0xff] }
 0x2c2   : > { %v1261_v14 = vadd.f32 %v6283_v0, %v1254_v8  ;;  %v5919_v8 = vld [vmem:[#allocation19 + $0x50] sm:$0xff] }
 0x2c4   : > { %v7057_v16 = vadd.f32 %v1261_v14, %v950_v12  ;;  %v5917_v12 = vld [vmem:[#allocation19 + $0x40] sm:$0xff] }
 0x2c5   : > { %1691 = vmatpush.bf16.msrb.mxu3 %v5921_v4 }
 0x2c6   : > { %v1269_v18 = vmax.f32 %v7057_v16, 0.0 }
 0x2c7   : > { %v1248_v19 = vpop.f32.mrf.mxu1 }
 0x2c8   : > { %v1273_v21 = vpack.c.bf16 %v1269_v18, %v1268_v17  ;;  %v1255_v22 = vadd.f32 %v1248_v19, %v1144_v20  ;;  %v1145_v23 = vpop.f32.mrf.mxu0 }
 0x2c9   : > { %v1146_v26 = vadd.f32 %v1145_v23, %v1078_v24  ;;  %1692 = vmatpush.bf16.msrb.mxu3 %v5920_v5  ;;  %v6284_v24 = vld [vmem:[%s7368_s10] ss:$0 sm:$0xff] }
 0x2ca   : > { %1385 = vmatmul.bf16.vlgmr.msrb.gmra.mxu0 %v1273_v21  ;;  %v1262_v25 = vadd.f32 %v6283_v0, %v1255_v22  ;;  %v5948_v5 = vld [vmem:[#allocation17 + $0x138] sm:$0xff] }
 0x2cc   : > { %v7067_v31 = vadd.f32 %v1262_v25, %v953_v28 }
 0x2cd   : > { %1693 = vmatpush.bf16.msrb.mxu3 %v5919_v8  ;;  %v5947_v8 = vld [vmem:[#allocation17 + $0x130] sm:$0xff] }
 0x2ce   : > { %v1270_v34 = vmax.f32 %v7067_v31, 0.0  ;;  %v5956_v31 = vld [vmem:[#allocation17 + $0x178] sm:$0xff] }
 0x2cf   : > { %v1250_v27 = vpop.f32.mrf.mxu1 }
 0x2d0   : > { %v1256_v29 = vadd.f32 %v1250_v27, %v1146_v26 }
 0x2d1   : > { %1694 = vmatpush.bf16.msrb.mxu3 %v5918_v11 }
 0x2d2   : > { %v1263_v32 = vadd.f32 %v6283_v0, %v1256_v29 }
 0x2d4   : > { %v7069_v33 = vadd.f32 %v1263_v32, %v955_v30 }
 0x2d5   : > { %1695 = vmatpush.bf16.msrb.mxu3 %v5917_v12 }
 0x2d6   : > { %v1271_v37 = vmax.f32 %v7069_v33, 0.0  ;;  %v5955_v33 = vld [vmem:[#allocation17 + $0x170] sm:$0xff] }
 0x2d8   : > { %v1274_v38 = vpack.c.bf16 %v1271_v37, %v1270_v34 }
 0x2da   : > { %1281 = vmatpush.bf16.msra.mxu2 %v1274_v38  ;;  %1390 = vmatmul.bf16.gmra.mxu0 %v1274_v38 }
 0x2db   : > { %1469 = vmatpush.bf16.msrb.mxu1 %v1274_v38 }
 0x2de   : > { %1282 = vmatpush.bf16.msra.mxu2 %v1273_v21 }
 0x2df   : > { %1470 = vmatpush.bf16.msrb.mxu1 %v1273_v21 }
 0x2e1   : > { %4827 = vmatmul.msk.bf16.vlgmr.msra.gmra.mxu2 %vm648_vm0, %v7011_v6 }
 0x2e2   : > { %4893 = vmatmul.msk.bf16.vlgmr.msrb.gmra.mxu1 %vm648_vm0, %v7023_v9  ;;  %1549 = vmatpush.bf16.msrb.mxu2 %v5908_v35 }
 0x2e6   : > { %1550 = vmatpush.bf16.msrb.mxu2 %v5907_v36 }
 0x2ea   : > { %1551 = vmatpush.bf16.msrb.mxu2 %v5906_v40 }
 0x2ee   : > { %1552 = vmatpush.bf16.msrb.mxu2 %v5905_v42 }
 0x2f1   : > { %4828 = vmatmul.msk.bf16.gmra.mxu2 %vm648_vm0, %v7013_v7 }
 0x2f2   : > { %4894 = vmatmul.msk.bf16.gmra.mxu1 %vm648_vm0, %v7027_v10  ;;  %1553 = vmatpush.bf16.msrb.mxu2 %v5904_v44 }
 0x2f6   : > { %1554 = vmatpush.bf16.msrb.mxu2 %v5903_v46 }
 0x2fa   : > { %1555 = vmatpush.bf16.msrb.mxu2 %v5902_v48  ;;  %v5916_v48 = vld [vmem:[#allocation19 + $0x38] sm:$0xff] }
 0x2fb   : > { %1755 = vmatpush.bf16.msra.mxu1 %v5916_v48 }
 0x2fe   : > { %1556 = vmatpush.bf16.msrb.mxu2 %v5901_v50 }
 0x347   : > { %v1386_v14 = vpop.f32.mrf.mxu0 }
 0x34f   : > { %v1388_v21 = vpop.f32.mrf.mxu0 }
 0x357   : > { %v1391_v30 = vpop.f32.mrf.mxu0 }
 0x35f   : > { %v1472_v53 = vpop.f32.mrf.mxu1  ;;  %v1393_v42 = vpop.f32.mrf.mxu0 }
 0x364   : > { %v1284_v56 = vpop.f32.mrf.mxu2 }
 0x367   : > { %v1474_v57 = vpop.f32.mrf.mxu1 }
 0x368   : > { %v1482_v58 = vpack.c.bf16 %v1474_v57, %v1472_v53  ;;  %v5915_v53 = vld [vmem:[#allocation19 + $0x30] sm:$0xff]  ;;  %v5913_v57 = vld [vmem:[#allocation19 + $0x20] sm:$0xff] }
 0x369   : > { %1756 = vmatpush.bf16.msra.mxu1 %v5915_v53 }
 0x36a   : > { %1557 = vmatmul.bf16.vlgmr.msrb.gmra.mxu2 %v1482_v58  ;;  %v5930_v58 = vld [vmem:[#allocation19 + $0xa8] sm:$0xff] }
 0x36c   : > { %v1286_v59 = vpop.f32.mrf.mxu2 }
 0x36d   : > { %v1294_v60 = vpack.c.bf16 %v1286_v59, %v1284_v56  ;;  %v5931_v56 = vld [vmem:[#allocation19 + $0xb0] sm:$0xff]  ;;  %1757 = vmatpush.bf16.msra.mxu1 %v5914_v55  ;;  %v5912_v59 = vld [vmem:[#allocation19 + $0x18] sm:$0xff] }
 0x36f   : > { %v1477_v61 = vpop.f32.mrf.mxu1  ;;  %1452 = vmatmul.bf16.vlgmr.msra.gmra.mxu3 %v1294_v60  ;;  %v5929_v60 = vld [vmem:[#allocation19 + $0xa0] sm:$0xff] }
 0x371   : > { %1758 = vmatpush.bf16.msra.mxu1 %v5913_v57 }
 0x374   : > { %v1289_v62 = vpop.f32.mrf.mxu2 }
 0x375   : > { %1759 = vmatpush.bf16.msra.mxu1 %v5912_v59 }
 0x377   : > { %v1479_v63 = vpop.f32.mrf.mxu1 }
 0x378   : > { %v1483_v0 = vpack.c.bf16 %v1479_v63, %v1477_v61  ;;  %v5911_v61 = vld [vmem:[#allocation19 + $0x10] sm:$0xff]  ;;  %v5910_v63 = vld [vmem:[#allocation19 + $0x8] sm:$0xff] }
 0x379   : > { %1760 = vmatpush.bf16.msra.mxu1 %v5911_v61 }
 0x37a   : > { %1562 = vmatmul.bf16.gmra.mxu2 %v1483_v0  ;;  %v5927_v0 = vld [vmem:[#allocation19 + $0x90] sm:$0xff] }
 0x37c   : > { %v1291_v1 = vpop.f32.mrf.mxu2 }
 0x37d   : > { %v1295_v2 = vpack.c.bf16 %v1291_v1, %v1289_v62  ;;  %v5928_v62 = vld [vmem:[#allocation19 + $0x98] sm:$0xff]  ;;  %1761 = vmatpush.bf16.msra.mxu1 %v5910_v63  ;;  %v5909_v1 = vld [vmem:[#allocation19] sm:$0xff] }
 0x37f   : > { %1457 = vmatmul.bf16.gmra.mxu3 %v1295_v2  ;;  %v5926_v2 = vld [vmem:[#allocation19 + $0x88] sm:$0xff] }
 0x381   : > { %1762 = vmatpush.bf16.msra.mxu1 %v5909_v1 }
 0x385   : > { %2005 = vmatpush.bf16.msrb.mxu1 %v5948_v5  ;;  %v5951_v5 = vld [vmem:[#allocation17 + $0x150] sm:$0xff] }
 0x389   : > { %2006 = vmatpush.bf16.msrb.mxu1 %v5947_v8  ;;  %v5950_v8 = vld [vmem:[#allocation17 + $0x148] sm:$0xff] }
 0x3ed   : > { %v1558_v15 = vpop.f32.mrf.mxu2 }
 0x3f2   : > { %v1453_v19 = vpop.f32.mrf.mxu3 }
 0x3f3   : > { %v1454_v20 = vadd.f32 %v1453_v19, %v1386_v14 }
 0x3f5   : > { %v1560_v22 = vpop.f32.mrf.mxu2  ;;  %v1568_v23 = vadd.f32 %v1558_v15, %v1454_v20 }
 0x3f7   : > { %v1575_v27 = vadd.f32 %v6284_v24, %v1568_v23 }
 0x3f9   : > { %v1579_v32 = vmax.f32 %v1575_v27, 0.0  ;;  %v5945_v27 = vld [vmem:[#allocation17 + $0x120] sm:$0xff] }
 0x3fa   : > { %v1455_v25 = vpop.f32.mrf.mxu3 }
 0x3fb   : > { %v1456_v26 = vadd.f32 %v1455_v25, %v1388_v21 }
 0x3fd   : > { %v1569_v28 = vadd.f32 %v1560_v22, %v1456_v26  ;;  %v1563_v35 = vpop.f32.mrf.mxu2  ;;  %v5946_v26 = vld [vmem:[#allocation17 + $0x128] sm:$0xff] }
 0x3fe   : > { %2007 = vmatpush.bf16.msrb.mxu1 %v5946_v26 }
 0x3ff   : > { %v1576_v29 = vadd.f32 %v6284_v24, %v1569_v28  ;;  %v5944_v28 = vld [vmem:[#allocation17 + $0x118] sm:$0xff] }
 0x401   : > { %v1580_v38 = vmax.f32 %v1576_v29, 0.0  ;;  %v5943_v29 = vld [vmem:[#allocation17 + $0x110] sm:$0xff] }
 0x402   : > { %v1458_v36 = vpop.f32.mrf.mxu3  ;;  %2008 = vmatpush.bf16.msrb.mxu1 %v5945_v27 }
 0x403   : > { %v1584_v39 = vpack.c.bf16 %v1580_v38, %v1579_v32  ;;  %v1459_v40 = vadd.f32 %v1458_v36, %v1391_v30  ;;  %v5942_v30 = vld [vmem:[#allocation17 + $0x108] sm:$0xff]  ;;  %v5941_v32 = vld [vmem:[#allocation17 + $0x100] sm:$0xff] }
 0x405   : > { %1696 = vmatmul.bf16.vlgmr.msrb.gmra.mxu3 %v1584_v39  ;;  %v1570_v41 = vadd.f32 %v1563_v35, %v1459_v40  ;;  %v1565_v45 = vpop.f32.mrf.mxu2 }
 0x406   : > { %2009 = vmatpush.bf16.msrb.mxu1 %v5944_v28 }
 0x407   : > { %v1577_v46 = vadd.f32 %v6284_v24, %v1570_v41 }
 0x409   : > { %v1581_v50 = vmax.f32 %v1577_v46, 0.0 }
 0x40a   : > { %v1460_v43 = vpop.f32.mrf.mxu3  ;;  %2010 = vmatpush.bf16.msrb.mxu1 %v5943_v29 }
 0x40b   : > { %v1461_v44 = vadd.f32 %v1460_v43, %v1393_v42  ;;  %v6285_v43 = vld [vmem:[%s7370_s12] ss:$0 sm:$0xff] }
 0x40d   : > { %v1571_v47 = vadd.f32 %v1565_v45, %v1461_v44 }
 0x40e   : > { %2011 = vmatpush.bf16.msrb.mxu1 %v5942_v30 }
 0x40f   : > { %v1578_v49 = vadd.f32 %v6284_v24, %v1571_v47 }
 0x411   : > { %v1582_v51 = vmax.f32 %v1578_v49, 0.0 }
 0x412   : > { %2012 = vmatpush.bf16.msrb.mxu1 %v5941_v32 }
 0x413   : > { %v1585_v52 = vpack.c.bf16 %v1582_v51, %v1581_v50 }
 0x415   : > { %1592 = vmatpush.bf16.msra.mxu0 %v1585_v52  ;;  %1701 = vmatmul.bf16.gmra.mxu3 %v1585_v52 }
 0x416   : > { %1780 = vmatpush.bf16.msra.mxu2 %v1585_v52 }
 0x419   : > { %1593 = vmatpush.bf16.msra.mxu0 %v1584_v39 }
 0x41a   : > { %1781 = vmatpush.bf16.msra.mxu2 %v1584_v39 }
 0x41c   : > { %4927 = vmatmul.msk.bf16.vlgmr.msra.gmra.mxu0 %vm648_vm0, %v7011_v6 }
 0x41d   : > { %4993 = vmatmul.msk.bf16.vlgmr.msra.gmra.mxu2 %vm648_vm0, %v7023_v9  ;;  %1860 = vmatpush.bf16.msrb.mxu0 %v5932_v54 }
 0x421   : > { %1861 = vmatpush.bf16.msrb.mxu0 %v5931_v56 }
 0x425   : > { %1862 = vmatpush.bf16.msrb.mxu0 %v5930_v58 }
 0x429   : > { %1863 = vmatpush.bf16.msrb.mxu0 %v5929_v60 }
 0x42c   : > { %4928 = vmatmul.msk.bf16.gmra.mxu0 %vm648_vm0, %v7013_v7 }
 0x42d   : > { %4994 = vmatmul.msk.bf16.gmra.mxu2 %vm648_vm0, %v7027_v10  ;;  %1864 = vmatpush.bf16.msrb.mxu0 %v5928_v62 }
 0x431   : > { %1865 = vmatpush.bf16.msrb.mxu0 %v5927_v0 }
 0x435   : > { %1866 = vmatpush.bf16.msrb.mxu0 %v5926_v2 }
 0x439   : > { %1867 = vmatpush.bf16.msrb.mxu0 %v5925_v3  ;;  %v5939_v3 = vld [vmem:[#allocation17 + $0xf0] sm:$0xff] }
 0x488   : > { %v1697_v38 = vpop.f32.mrf.mxu3 }
 0x490   : > { %v1699_v41 = vpop.f32.mrf.mxu3 }
 0x498   : > { %v1702_v51 = vpop.f32.mrf.mxu3 }
 0x499   : > { %v1595_v4 = vpop.f32.mrf.mxu0 }
 0x4a0   : > { %v1783_v11 = vpop.f32.mrf.mxu2  ;;  %v1704_v58 = vpop.f32.mrf.mxu3 }
 0x4a1   : > { %v1597_v12 = vpop.f32.mrf.mxu0 }
 0x4a2   : > { %v1605_v14 = vpack.c.bf16 %v1597_v12, %v1595_v4  ;;  %v5953_v4 = vld [vmem:[#allocation17 + $0x160] sm:$0xff] }
 0x4a3   : > { %v5949_v12 = vld [vmem:[#allocation17 + $0x140] sm:$0xff] }
 0x4a4   : > { %1763 = vmatmul.bf16.vlgmr.msra.gmra.mxu1 %v1605_v14  ;;  %v5934_v14 = vld [vmem:[#allocation17 + $0xc8] sm:$0xff] }
 0x4a8   : > { %v1785_v15 = vpop.f32.mrf.mxu2 }
 0x4a9   : > { %v1793_v19 = vpack.c.bf16 %v1785_v15, %v1783_v11  ;;  %v1600_v20 = vpop.f32.mrf.mxu0  ;;  %v5935_v11 = vld [vmem:[#allocation17 + $0xd0] sm:$0xff]  ;;  %v5933_v15 = vld [vmem:[#allocation17 + $0xc0] sm:$0xff] }
 0x4ab   : > { %1868 = vmatmul.bf16.vlgmr.msrb.gmra.mxu0 %v1793_v19 }
 0x4b0   : > { %v1788_v21 = vpop.f32.mrf.mxu2 }
 0x4b1   : > { %v1602_v22 = vpop.f32.mrf.mxu0 }
 0x4b2   : > { %v1606_v23 = vpack.c.bf16 %v1602_v22, %v1600_v20  ;;  %v5972_v20 = vld [vmem:[#allocation19 + $0x138] sm:$0xff] }
 0x4b4   : > { %1768 = vmatmul.bf16.gmra.mxu1 %v1606_v23 }
 0x4b8   : > { %v1790_v24 = vpop.f32.mrf.mxu2 }
 0x4b9   : > { %v1794_v25 = vpack.c.bf16 %v1790_v24, %v1788_v21  ;;  %v5971_v21 = vld [vmem:[#allocation19 + $0x130] sm:$0xff] }
 0x4bb   : > { %1873 = vmatmul.bf16.gmra.mxu0 %v1794_v25 }
 0x521   : > { %v1764_v35 = vpop.f32.mrf.mxu1 }
 0x522   : > { %v1765_v39 = vadd.f32 %v1764_v35, %v1697_v38  ;;  %v5970_v35 = vld [vmem:[#allocation19 + $0x128] sm:$0xff] }
 0x528   : > { %v1869_v36 = vpop.f32.mrf.mxu0 }
 0x529   : > { %v1766_v40 = vpop.f32.mrf.mxu1  ;;  %v1879_v42 = vadd.f32 %v1869_v36, %v1765_v39  ;;  %v5969_v36 = vld [vmem:[#allocation19 + $0x120] sm:$0xff]  ;;  %v5968_v39 = vld [vmem:[#allocation19 + $0x118] sm:$0xff] }
 0x52a   : > { %v1767_v45 = vadd.f32 %v1766_v40, %v1699_v41  ;;  %v5967_v40 = vld [vmem:[#allocation19 + $0x110] sm:$0xff]  ;;  %v5966_v41 = vld [vmem:[#allocation19 + $0x108] sm:$0xff] }
 0x52b   : > { %v1886_v44 = vadd.f32 %v6285_v43, %v1879_v42  ;;  %v5965_v42 = vld [vmem:[#allocation19 + $0x100] sm:$0xff] }
 0x52d   : > { %v7101_v49 = vadd.f32 %v1886_v44, %v1268_v17 }
 0x52f   : > { %v1894_v53 = vmax.f32 %v7101_v49, 0.0 }
 0x530   : > { %v1871_v46 = vpop.f32.mrf.mxu0 }
 0x531   : > { %v1880_v47 = vadd.f32 %v1871_v46, %v1767_v45  ;;  %v1769_v48 = vpop.f32.mrf.mxu1 }
 0x532   : > { %v1770_v56 = vadd.f32 %v1769_v48, %v1702_v51  ;;  %v6286_v51 = vld [vmem:[%s7368_s10 + $0x1] ss:$0 sm:$0xff] }
 0x533   : > { %v1887_v50 = vadd.f32 %v6285_v43, %v1880_v47 }
 0x535   : > { %v7105_v52 = vadd.f32 %v1887_v50, %v1269_v18 }
 0x537   : > { %v1895_v54 = vmax.f32 %v7105_v52, 0.0 }
 0x538   : > { %v1874_v55 = vpop.f32.mrf.mxu0 }
 0x539   : > { %v1900_v57 = vpack.c.bf16 %v1895_v54, %v1894_v53  ;;  %v1881_v13 = vadd.f32 %v1874_v55, %v1770_v56  ;;  %v1771_v17 = vpop.f32.mrf.mxu1 }
 0x53a   : > { %v1772_v60 = vadd.f32 %v1771_v17, %v1704_v58 }
 0x53b   : > { %2013 = vmatmul.bf16.vlgmr.msrb.gmra.mxu1 %v1900_v57  ;;  %v1888_v59 = vadd.f32 %v6285_v43, %v1881_v13 }
 0x53d   : > { %v7115_v61 = vadd.f32 %v1888_v59, %v1270_v34  ;;  %v5940_v34 = vld [vmem:[#allocation17 + $0xf8] sm:$0xff] }
 0x53e   : > { %2072 = vmatpush.bf16.msrb.mxu2 %v5940_v34 }
 0x53f   : > { %v1896_v0 = vmax.f32 %v7115_v61, 0.0  ;;  %v6004_v61 = vld [vmem:[#allocation17 + $0x238] sm:$0xff] }
 0x540   : > { %v1876_v16 = vpop.f32.mrf.mxu0 }
 0x541   : > { %v1882_v18 = vadd.f32 %v1876_v16, %v1772_v60 }
 0x542   : > { %2073 = vmatpush.bf16.msrb.mxu2 %v5939_v3 }
 0x543   : > { %v1889_v62 = vadd.f32 %v6285_v43, %v1882_v18 }
 0x545   : > { %v7119_v63 = vadd.f32 %v1889_v62, %v1271_v37  ;;  %v5954_v37 = vld [vmem:[#allocation17 + $0x168] sm:$0xff] }
 0x547   : > { %v1897_v1 = vmax.f32 %v7119_v63, 0.0  ;;  %v6003_v63 = vld [vmem:[#allocation17 + $0x230] sm:$0xff] }
 0x549   : > { %v1901_v2 = vpack.c.bf16 %v1897_v1, %v1896_v0 }
 0x54b   : > { %1908 = vmatpush.bf16.msra.mxu3 %v1901_v2  ;;  %2018 = vmatmul.bf16.gmra.mxu1 %v1901_v2 }
 0x54c   : > { %2097 = vmatpush.bf16.msra.mxu0 %v1901_v2 }
 0x54f   : > { %1909 = vmatpush.bf16.msra.mxu3 %v1900_v57 }
 0x550   : > { %2098 = vmatpush.bf16.msra.mxu0 %v1900_v57 }
 0x552   : > { %5028 = vmatmul.msk.bf16.vlgmr.msra.gmra.mxu3 %vm648_vm0, %v7011_v6  ;;  %v5938_v6 = vld [vmem:[#allocation17 + $0xe8] sm:$0xff] }
 0x553   : > { %5094 = vmatmul.msk.bf16.vlgmr.msra.gmra.mxu0 %vm648_vm0, %v7023_v9  ;;  %2177 = vmatpush.bf16.msrb.mxu3 %v5956_v31  ;;  %v5952_v9 = vld [vmem:[#allocation17 + $0x158] sm:$0xff] }
 0x554   : > { %2074 = vmatpush.bf16.msrb.mxu2 %v5938_v6 }
 0x557   : > { %2178 = vmatpush.bf16.msrb.mxu3 %v5955_v33 }
 0x55b   : > { %2179 = vmatpush.bf16.msrb.mxu3 %v5954_v37 }
 0x55f   : > { %2180 = vmatpush.bf16.msrb.mxu3 %v5953_v4 }
 0x562   : > { %5029 = vmatmul.msk.bf16.gmra.mxu3 %vm648_vm0, %v7013_v7  ;;  %v5937_v7 = vld [vmem:[#allocation17 + $0xe0] sm:$0xff] }
 0x563   : > { %5095 = vmatmul.msk.bf16.gmra.mxu0 %vm648_vm0, %v7027_v10  ;;  %2181 = vmatpush.bf16.msrb.mxu3 %v5952_v9  ;;  %v5936_v10 = vld [vmem:[#allocation17 + $0xd8] sm:$0xff] }
 0x564   : > { %2075 = vmatpush.bf16.msrb.mxu2 %v5937_v7  ;;  %v5964_v9 = vld [vmem:[#allocation19 + $0xf8] sm:$0xff] }
 0x565   : > { %2385 = vmatpush.bf16.msrb.mxu0 %v5964_v9 }
 0x567   : > { %2182 = vmatpush.bf16.msrb.mxu3 %v5951_v5 }
 0x568   : > { %2076 = vmatpush.bf16.msrb.mxu2 %v5936_v10 }
 0x56b   : > { %2183 = vmatpush.bf16.msrb.mxu3 %v5950_v8 }
 0x56c   : > { %2077 = vmatpush.bf16.msrb.mxu2 %v5935_v11  ;;  %v7138_v11 = vld [vmem:[#allocation5] sm:$0xff] }
 0x56f   : > { %2184 = vmatpush.bf16.msrb.mxu3 %v5949_v12  ;;  %v7142_v12 = vld [vmem:[#allocation7] sm:$0xff] }
 0x570   : > { %2078 = vmatpush.bf16.msrb.mxu2 %v5934_v14  ;;  %v7146_v14 = vld [vmem:[#allocation5 + $0x8] sm:$0xff] }
 0x574   : > { %2079 = vmatpush.bf16.msrb.mxu2 %v5933_v15  ;;  %v7150_v15 = vld [vmem:[#allocation7 + $0x8] sm:$0xff] }
 0x578   : > { %2318 = vmatpush.bf16.msra.mxu2 %v5972_v20  ;;  %v5980_v20 = vld [vmem:[#allocation19 + $0x178] sm:$0xff] }
 0x57c   : > { %2319 = vmatpush.bf16.msra.mxu2 %v5971_v21  ;;  %v5962_v21 = vld [vmem:[#allocation19 + $0xe8] sm:$0xff] }
 0x580   : > { %2320 = vmatpush.bf16.msra.mxu2 %v5970_v35  ;;  %v5973_v35 = vld [vmem:[#allocation19 + $0x140] sm:$0xff] }
 0x584   : > { %2321 = vmatpush.bf16.msra.mxu2 %v5969_v36 }
 0x588   : > { %2322 = vmatpush.bf16.msra.mxu2 %v5968_v39  ;;  %v5996_v39 = vld [vmem:[#allocation17 + $0x1f8] sm:$0xff] }
 0x58c   : > { %2323 = vmatpush.bf16.msra.mxu2 %v5967_v40  ;;  %v5995_v40 = vld [vmem:[#allocation17 + $0x1f0] sm:$0xff] }
 0x590   : > { %2324 = vmatpush.bf16.msra.mxu2 %v5966_v41 }
 0x594   : > { %2325 = vmatpush.bf16.msra.mxu2 %v5965_v42 }
 0x5b8   : > { %v2014_v43 = vpop.f32.mrf.mxu1 }
 0x5c0   : > { %v2016_v47 = vpop.f32.mrf.mxu1 }
 0x5c8   : > { %v2019_v58 = vpop.f32.mrf.mxu1 }
 0x5d0   : > { %v2100_v19 = vpop.f32.mrf.mxu0  ;;  %v2021_v33 = vpop.f32.mrf.mxu1 }
 0x5d5   : > { %v1911_v22 = vpop.f32.mrf.mxu3 }
 0x5d8   : > { %v2102_v23 = vpop.f32.mrf.mxu0 }
 0x5d9   : > { %v2110_v24 = vpack.c.bf16 %v2102_v23, %v2100_v19  ;;  %v5963_v19 = vld [vmem:[#allocation19 + $0xf0] sm:$0xff]  ;;  %v5961_v23 = vld [vmem:[#allocation19 + $0xe0] sm:$0xff] }
 0x5da   : > { %2386 = vmatpush.bf16.msrb.mxu0 %v5963_v19 }
 0x5db   : > { %2185 = vmatmul.bf16.vlgmr.msrb.gmra.mxu3 %v2110_v24  ;;  %v5978_v24 = vld [vmem:[#allocation19 + $0x168] sm:$0xff] }
 0x5dd   : > { %v1913_v25 = vpop.f32.mrf.mxu3 }
 0x5de   : > { %v1921_v26 = vpack.c.bf16 %v1913_v25, %v1911_v22  ;;  %v5979_v22 = vld [vmem:[#allocation19 + $0x170] sm:$0xff]  ;;  %2387 = vmatpush.bf16.msrb.mxu0 %v5962_v21  ;;  %v5960_v25 = vld [vmem:[#allocation19 + $0xd8] sm:$0xff] }
 0x5e0   : > { %v2105_v27 = vpop.f32.mrf.mxu0  ;;  %2080 = vmatmul.bf16.vlgmr.msrb.gmra.mxu2 %v1921_v26  ;;  %v5977_v26 = vld [vmem:[#allocation19 + $0x160] sm:$0xff] }
 0x5e2   : > { %2388 = vmatpush.bf16.msrb.mxu0 %v5961_v23 }
 0x5e5   : > { %v1916_v28 = vpop.f32.mrf.mxu3 }
 0x5e6   : > { %2389 = vmatpush.bf16.msrb.mxu0 %v5960_v25 }
 0x5e8   : > { %v2107_v29 = vpop.f32.mrf.mxu0 }
 0x5e9   : > { %v2111_v30 = vpack.c.bf16 %v2107_v29, %v2105_v27  ;;  %v5959_v27 = vld [vmem:[#allocation19 + $0xd0] sm:$0xff]  ;;  %v5958_v29 = vld [vmem:[#allocation19 + $0xc8] sm:$0xff] }
 0x5ea   : > { %2390 = vmatpush.bf16.msrb.mxu0 %v5959_v27 }
 0x5eb   : > { %2190 = vmatmul.bf16.gmra.mxu3 %v2111_v30  ;;  %v5975_v30 = vld [vmem:[#allocation19 + $0x150] sm:$0xff] }
 0x5ed   : > { %v1918_v32 = vpop.f32.mrf.mxu3 }
 0x5ee   : > { %v1922_v38 = vpack.c.bf16 %v1918_v32, %v1916_v28  ;;  %v5976_v28 = vld [vmem:[#allocation19 + $0x158] sm:$0xff]  ;;  %2391 = vmatpush.bf16.msrb.mxu0 %v5958_v29  ;;  %v5957_v32 = vld [vmem:[#allocation19 + $0xc0] sm:$0xff] }
 0x5f0   : > { %2085 = vmatmul.bf16.gmra.mxu2 %v1922_v38  ;;  %v5974_v38 = vld [vmem:[#allocation19 + $0x148] sm:$0xff] }
 0x5f2   : > { %2392 = vmatpush.bf16.msrb.mxu0 %v5957_v32 }
 0x5f6   : > { %2635 = vmatpush.bf16.msra.mxu0 %v5996_v39  ;;  %v5986_v39 = vld [vmem:[#allocation17 + $0x1a8] sm:$0xff] }
 0x5fa   : > { %2636 = vmatpush.bf16.msra.mxu0 %v5995_v40  ;;  %v6000_v40 = vld [vmem:[#allocation17 + $0x218] sm:$0xff] }
 0x65e   : > { %v2186_v44 = vpop.f32.mrf.mxu3 }
 0x663   : > { %v2081_v45 = vpop.f32.mrf.mxu2 }
 0x664   : > { %v2082_v46 = vadd.f32 %v2081_v45, %v2014_v43 }
 0x666   : > { %v2188_v48 = vpop.f32.mrf.mxu3  ;;  %v2196_v50 = vadd.f32 %v2186_v44, %v2082_v46 }
 0x668   : > { %v2203_v57 = vadd.f32 %v6286_v51, %v2196_v50 }
 0x66a   : > { %v2207_v59 = vmax.f32 %v2203_v57, 0.0  ;;  %v5993_v57 = vld [vmem:[#allocation17 + $0x1e0] sm:$0xff] }
 0x66b   : > { %v2083_v55 = vpop.f32.mrf.mxu2 }
 0x66c   : > { %v2084_v56 = vadd.f32 %v2083_v55, %v2016_v47 }
 0x66e   : > { %v2197_v13 = vadd.f32 %v2188_v48, %v2084_v56  ;;  %v2191_v16 = vpop.f32.mrf.mxu3  ;;  %v5994_v56 = vld [vmem:[#allocation17 + $0x1e8] sm:$0xff] }
 0x66f   : > { %2637 = vmatpush.bf16.msra.mxu0 %v5994_v56 }
 0x670   : > { %v2204_v17 = vadd.f32 %v6286_v51, %v2197_v13  ;;  %v5992_v13 = vld [vmem:[#allocation17 + $0x1d8] sm:$0xff] }
 0x672   : > { %v2208_v60 = vmax.f32 %v2204_v17, 0.0  ;;  %v5991_v17 = vld [vmem:[#allocation17 + $0x1d0] sm:$0xff] }
 0x673   : > { %v2086_v18 = vpop.f32.mrf.mxu2  ;;  %2638 = vmatpush.bf16.msra.mxu0 %v5993_v57 }
 0x674   : > { %v2213_v62 = vpack.c.bf16 %v2208_v60, %v2207_v59  ;;  %v2087_v2 = vadd.f32 %v2086_v18, %v2019_v58  ;;  %v5990_v58 = vld [vmem:[#allocation17 + $0x1c8] sm:$0xff]  ;;  %v5989_v59 = vld [vmem:[#allocation17 + $0x1c0] sm:$0xff] }
 0x676   : > { %2326 = vmatmul.bf16.vlgmr.msra.gmra.mxu2 %v2213_v62  ;;  %v2198_v31 = vadd.f32 %v2191_v16, %v2087_v2  ;;  %v2193_v3 = vpop.f32.mrf.mxu3 }
 0x677   : > { %2639 = vmatpush.bf16.msra.mxu0 %v5992_v13 }
 0x678   : > { %v2205_v4 = vadd.f32 %v6286_v51, %v2198_v31 }
 0x67a   : > { %v2209_v5 = vmax.f32 %v2205_v4, 0.0 }
 0x67b   : > { %v2088_v34 = vpop.f32.mrf.mxu2  ;;  %2640 = vmatpush.bf16.msra.mxu0 %v5991_v17 }
 0x67c   : > { %v2089_v37 = vadd.f32 %v2088_v34, %v2021_v33  ;;  %v6287_v34 = vld [vmem:[%s7370_s12 + $0x1] ss:$0 sm:$0xff] }
 0x67e   : > { %v2199_v6 = vadd.f32 %v2193_v3, %v2089_v37 }
 0x67f   : > { %2641 = vmatpush.bf16.msra.mxu0 %v5990_v58 }
 0x680   : > { %v2206_v7 = vadd.f32 %v6286_v51, %v2199_v6 }
 0x682   : > { %v2210_v10 = vmax.f32 %v2206_v7, 0.0 }
 0x683   : > { %2642 = vmatpush.bf16.msra.mxu0 %v5989_v59 }
 0x684   : > { %v2214_v8 = vpack.c.bf16 %v2210_v10, %v2209_v5 }
 0x686   : > { %2221 = vmatpush.bf16.msra.mxu1 %v2214_v8  ;;  %2331 = vmatmul.bf16.gmra.mxu2 %v2214_v8 }
 0x687   : > { %2410 = vmatpush.bf16.msra.mxu3 %v2214_v8 }
 0x68a   : > { %2222 = vmatpush.bf16.msra.mxu1 %v2213_v62 }
 0x68b   : > { %2411 = vmatpush.bf16.msra.mxu3 %v2213_v62 }
 0x68d   : > { %5129 = vmatmul.msk.bf16.vlgmr.msra.gmra.mxu1 %vm648_vm0, %v7138_v11 }
 0x68e   : > { %5195 = vmatmul.msk.bf16.vlgmr.msra.gmra.mxu3 %vm648_vm0, %v7142_v12  ;;  %2490 = vmatpush.bf16.msrb.mxu1 %v5980_v20 }
 0x692   : > { %2491 = vmatpush.bf16.msrb.mxu1 %v5979_v22 }
 0x696   : > { %2492 = vmatpush.bf16.msrb.mxu1 %v5978_v24 }
 0x69a   : > { %2493 = vmatpush.bf16.msrb.mxu1 %v5977_v26 }
 0x69d   : > { %5130 = vmatmul.msk.bf16.gmra.mxu1 %vm648_vm0, %v7146_v14 }
 0x69e   : > { %5196 = vmatmul.msk.bf16.gmra.mxu3 %vm648_vm0, %v7150_v15  ;;  %2494 = vmatpush.bf16.msrb.mxu1 %v5976_v28 }
 0x6a2   : > { %2495 = vmatpush.bf16.msrb.mxu1 %v5975_v30 }
 0x6a6   : > { %2496 = vmatpush.bf16.msrb.mxu1 %v5974_v38 }
 0x6aa   : > { %2497 = vmatpush.bf16.msrb.mxu1 %v5973_v35  ;;  %v5987_v35 = vld [vmem:[#allocation17 + $0x1b0] sm:$0xff] }
 0x6f9   : > { %v2327_v60 = vpop.f32.mrf.mxu2 }
 0x701   : > { %v2329_v31 = vpop.f32.mrf.mxu2 }
 0x709   : > { %v2332_v10 = vpop.f32.mrf.mxu2 }
 0x70a   : > { %v2224_v36 = vpop.f32.mrf.mxu1 }
 0x711   : > { %v2413_v41 = vpop.f32.mrf.mxu3  ;;  %v2334_v24 = vpop.f32.mrf.mxu2 }
 0x712   : > { %v2226_v42 = vpop.f32.mrf.mxu1 }
 0x713   : > { %v2234_v43 = vpack.c.bf16 %v2226_v42, %v2224_v36  ;;  %v6001_v36 = vld [vmem:[#allocation17 + $0x220] sm:$0xff]  ;;  %v5999_v42 = vld [vmem:[#allocation17 + $0x210] sm:$0xff] }
 0x715   : > { %2393 = vmatmul.bf16.vlgmr.msrb.gmra.mxu0 %v2234_v43  ;;  %v5984_v43 = vld [vmem:[#allocation17 + $0x198] sm:$0xff] }
 0x719   : > { %v2415_v44 = vpop.f32.mrf.mxu3 }
 0x71a   : > { %v2423_v45 = vpack.c.bf16 %v2415_v44, %v2413_v41  ;;  %v2229_v46 = vpop.f32.mrf.mxu1  ;;  %v5985_v41 = vld [vmem:[#allocation17 + $0x1a0] sm:$0xff]  ;;  %v5998_v44 = vld [vmem:[#allocation17 + $0x208] sm:$0xff] }
 0x71c   : > { %2498 = vmatmul.bf16.vlgmr.msrb.gmra.mxu1 %v2423_v45  ;;  %v5983_v45 = vld [vmem:[#allocation17 + $0x190] sm:$0xff] }
 0x721   : > { %v2418_v47 = vpop.f32.mrf.mxu3 }
 0x722   : > { %v2231_v48 = vpop.f32.mrf.mxu1 }
 0x723   : > { %v2235_v50 = vpack.c.bf16 %v2231_v48, %v2229_v46  ;;  %v5997_v46 = vld [vmem:[#allocation17 + $0x200] sm:$0xff] }
 0x724   : > { %v5981_v48 = vld [vmem:[#allocation17 + $0x180] sm:$0xff] }
 0x725   : > { %2398 = vmatmul.bf16.gmra.mxu0 %v2235_v50 }
 0x729   : > { %v2420_v51 = vpop.f32.mrf.mxu3 }
 0x72a   : > { %v2424_v55 = vpack.c.bf16 %v2420_v51, %v2418_v47  ;;  %v5982_v47 = vld [vmem:[#allocation17 + $0x188] sm:$0xff]  ;;  %v6020_v51 = vld [vmem:[#allocation19 + $0x1f8] sm:$0xff] }
 0x72c   : > { %2503 = vmatmul.bf16.gmra.mxu1 %v2424_v55  ;;  %v6019_v55 = vld [vmem:[#allocation19 + $0x1f0] sm:$0xff] }
 0x792   : > { %v2394_v16 = vpop.f32.mrf.mxu0 }
 0x793   : > { %v2395_v62 = vadd.f32 %v2394_v16, %v2327_v60 }
 0x799   : > { %v2499_v18 = vpop.f32.mrf.mxu1 }
 0x79a   : > { %v2396_v2 = vpop.f32.mrf.mxu0  ;;  %v2509_v33 = vadd.f32 %v2499_v18, %v2395_v62 }
 0x79b   : > { %v2397_v3 = vadd.f32 %v2396_v2, %v2329_v31  ;;  %v6018_v31 = vld [vmem:[#allocation19 + $0x1e8] sm:$0xff] }
 0x79c   : > { %v2516_v37 = vadd.f32 %v6287_v34, %v2509_v33  ;;  %v6017_v33 = vld [vmem:[#allocation19 + $0x1e0] sm:$0xff] }
 0x79e   : > { %v7159_v7 = vadd.f32 %v2516_v37, %v1894_v53  ;;  %v6015_v37 = vld [vmem:[#allocation19 + $0x1d0] sm:$0xff] }
 0x7a0   : > { %v2524_v19 = vmax.f32 %v7159_v7, 0.0 }
 0x7a1   : > { %v2501_v4 = vpop.f32.mrf.mxu1 }
 0x7a2   : > { %v2510_v6 = vadd.f32 %v2501_v4, %v2397_v3  ;;  %v2399_v9 = vpop.f32.mrf.mxu0  ;;  %v6014_v3 = vld [vmem:[#allocation19 + $0x1c8] sm:$0xff]  ;;  %v6013_v4 = vld [vmem:[#allocation19 + $0x1c0] sm:$0xff] }
 0x7a3   : > { %v2400_v23 = vadd.f32 %v2399_v9, %v2332_v10 }
 0x7a4   : > { %v2517_v5 = vadd.f32 %v6287_v34, %v2510_v6 }
 0x7a6   : > { %v7163_v8 = vadd.f32 %v2517_v5, %v1895_v54 }
 0x7a8   : > { %v2525_v20 = vmax.f32 %v7163_v8, 0.0 }
 0x7a9   : > { %v2504_v21 = vpop.f32.mrf.mxu1 }
 0x7aa   : > { %v2530_v22 = vpack.c.bf16 %v2525_v20, %v2524_v19  ;;  %v2511_v49 = vadd.f32 %v2504_v21, %v2400_v23  ;;  %v2401_v53 = vpop.f32.mrf.mxu0 }
 0x7ab   : > { %v2402_v26 = vadd.f32 %v2401_v53, %v2334_v24 }
 0x7ac   : > { %2643 = vmatmul.bf16.vlgmr.msra.gmra.mxu0 %v2530_v22  ;;  %v2518_v25 = vadd.f32 %v6287_v34, %v2511_v49  ;;  %v6288_v49 = vld [vmem:[%s7368_s10 + $0x2] ss:$0 sm:$0xff] }
 0x7ae   : > { %v7173_v27 = vadd.f32 %v2518_v25, %v1896_v0  ;;  %v5988_v0 = vld [vmem:[#allocation17 + $0x1b8] sm:$0xff] }
 0x7af   : > { %2702 = vmatpush.bf16.msrb.mxu3 %v5988_v0 }
 0x7b0   : > { %v2526_v30 = vmax.f32 %v7173_v27, 0.0  ;;  %v6052_v27 = vld [vmem:[#allocation17 + $0x2f8] sm:$0xff] }
 0x7b1   : > { %v2506_v52 = vpop.f32.mrf.mxu1 }
 0x7b2   : > { %v2512_v54 = vadd.f32 %v2506_v52, %v2402_v26 }
 0x7b3   : > { %2703 = vmatpush.bf16.msrb.mxu3 %v5987_v35 }
 0x7b4   : > { %v2519_v28 = vadd.f32 %v6287_v34, %v2512_v54  ;;  %v6016_v34 = vld [vmem:[#allocation19 + $0x1d8] sm:$0xff] }
 0x7b6   : > { %v7177_v29 = vadd.f32 %v2519_v28, %v1897_v1  ;;  %v6002_v1 = vld [vmem:[#allocation17 + $0x228] sm:$0xff] }
 0x7b7   : > { %2704 = vmatpush.bf16.msrb.mxu3 %v5986_v39 }
 0x7b8   : > { %v2527_v32 = vmax.f32 %v7177_v29, 0.0  ;;  %v6051_v29 = vld [vmem:[#allocation17 + $0x2f0] sm:$0xff] }
 0x7ba   : > { %v2531_v38 = vpack.c.bf16 %v2527_v32, %v2526_v30 }
 0x7bb   : > { %2705 = vmatpush.bf16.msrb.mxu3 %v5985_v41 }
 0x7bc   : > { %2538 = vmatpush.bf16.msrb.mxu2 %v2531_v38  ;;  %2648 = vmatmul.bf16.gmra.mxu0 %v2531_v38 }
 0x7bd   : > { %2727 = vmatpush.bf16.msra.mxu1 %v2531_v38 }
 0x7bf   : > { %2706 = vmatpush.bf16.msrb.mxu3 %v5984_v43 }
 0x7c0   : > { %2539 = vmatpush.bf16.msrb.mxu2 %v2530_v22 }
 0x7c1   : > { %2728 = vmatpush.bf16.msra.mxu1 %v2530_v22 }
 0x7c3   : > { %5230 = vmatmul.msk.bf16.vlgmr.msrb.gmra.mxu2 %vm648_vm0, %v7138_v11  ;;  %2707 = vmatpush.bf16.msrb.mxu3 %v5983_v45 }
 0x7c4   : > { %5296 = vmatmul.msk.bf16.vlgmr.msra.gmra.mxu1 %vm648_vm0, %v7142_v12  ;;  %2807 = vmatpush.bf16.msra.mxu2 %v6004_v61 }
 0x7c7   : > { %2708 = vmatpush.bf16.msrb.mxu3 %v5982_v47 }
 0x7c8   : > { %2808 = vmatpush.bf16.msra.mxu2 %v6003_v63 }
 0x7cb   : > { %2709 = vmatpush.bf16.msrb.mxu3 %v5981_v48 }
 0x7cc   : > { %2809 = vmatpush.bf16.msra.mxu2 %v6002_v1 }
 0x7cf   : > { %2948 = vmatpush.bf16.msra.mxu3 %v6020_v51  ;;  %v6028_v51 = vld [vmem:[#allocation19 + $0x238] sm:$0xff] }
 0x7d0   : > { %2810 = vmatpush.bf16.msra.mxu2 %v6001_v36 }
 0x7d3   : > { %5231 = vmatmul.msk.bf16.gmra.mxu2 %vm648_vm0, %v7146_v14  ;;  %2949 = vmatpush.bf16.msra.mxu3 %v6019_v55  ;;  %v6010_v55 = vld [vmem:[#allocation19 + $0x1a8] sm:$0xff] }
 0x7d4   : > { %5297 = vmatmul.msk.bf16.gmra.mxu1 %vm648_vm0, %v7150_v15  ;;  %2811 = vmatpush.bf16.msra.mxu2 %v6000_v40 }
 0x7d7   : > { %2950 = vmatpush.bf16.msra.mxu3 %v6018_v31  ;;  %v6021_v31 = vld [vmem:[#allocation19 + $0x200] sm:$0xff] }
 0x7d8   : > { %2812 = vmatpush.bf16.msra.mxu2 %v5999_v42 }
 0x7db   : > { %2951 = vmatpush.bf16.msra.mxu3 %v6017_v33 }
 0x7dc   : > { %2813 = vmatpush.bf16.msra.mxu2 %v5998_v44  ;;  %v6012_v44 = vld [vmem:[#allocation19 + $0x1b8] sm:$0xff] }
 0x7dd   : > { %3015 = vmatpush.bf16.msrb.mxu1 %v6012_v44 }
 0x7df   : > { %2952 = vmatpush.bf16.msra.mxu3 %v6016_v34  ;;  %v6044_v34 = vld [vmem:[#allocation17 + $0x2b8] sm:$0xff] }
 0x7e0   : > { %2814 = vmatpush.bf16.msra.mxu2 %v5997_v46 }
 0x7e3   : > { %2953 = vmatpush.bf16.msra.mxu3 %v6015_v37  ;;  %v6043_v37 = vld [vmem:[#allocation17 + $0x2b0] sm:$0xff] }
 0x7e7   : > { %2954 = vmatpush.bf16.msra.mxu3 %v6014_v3 }
 0x7eb   : > { %2955 = vmatpush.bf16.msra.mxu3 %v6013_v4 }
 0x829   : > { %v2644_v6 = vpop.f32.mrf.mxu0 }
 0x831   : > { %v2646_v21 = vpop.f32.mrf.mxu0 }
 0x839   : > { %v2649_v54 = vpop.f32.mrf.mxu0 }
 0x841   : > { %v2730_v50 = vpop.f32.mrf.mxu1  ;;  %v2651_v36 = vpop.f32.mrf.mxu0 }
 0x846   : > { %v2541_v56 = vpop.f32.mrf.mxu2 }
 0x849   : > { %v2732_v57 = vpop.f32.mrf.mxu1 }
 0x84a   : > { %v2740_v13 = vpack.c.bf16 %v2732_v57, %v2730_v50  ;;  %v6011_v50 = vld [vmem:[#allocation19 + $0x1b0] sm:$0xff]  ;;  %v6009_v57 = vld [vmem:[#allocation19 + $0x1a0] sm:$0xff] }
 0x84b   : > { %3016 = vmatpush.bf16.msrb.mxu1 %v6011_v50 }
 0x84c   : > { %2815 = vmatmul.bf16.vlgmr.msra.gmra.mxu2 %v2740_v13  ;;  %v6026_v13 = vld [vmem:[#allocation19 + $0x228] sm:$0xff] }
 0x84e   : > { %v2543_v17 = vpop.f32.mrf.mxu2 }
 0x84f   : > { %v2551_v58 = vpack.c.bf16 %v2543_v17, %v2541_v56  ;;  %v6027_v56 = vld [vmem:[#allocation19 + $0x230] sm:$0xff]  ;;  %3017 = vmatpush.bf16.msrb.mxu1 %v6010_v55  ;;  %v6008_v17 = vld [vmem:[#allocation19 + $0x198] sm:$0xff] }
 0x851   : > { %v2735_v59 = vpop.f32.mrf.mxu1  ;;  %2710 = vmatmul.bf16.vlgmr.msrb.gmra.mxu3 %v2551_v58  ;;  %v6025_v58 = vld [vmem:[#allocation19 + $0x220] sm:$0xff] }
 0x853   : > { %3018 = vmatpush.bf16.msrb.mxu1 %v6009_v57 }
 0x856   : > { %v2546_v60 = vpop.f32.mrf.mxu2 }
 0x857   : > { %3019 = vmatpush.bf16.msrb.mxu1 %v6008_v17 }
 0x859   : > { %v2737_v16 = vpop.f32.mrf.mxu1 }
 0x85a   : > { %v2741_v18 = vpack.c.bf16 %v2737_v16, %v2735_v59  ;;  %v6007_v59 = vld [vmem:[#allocation19 + $0x190] sm:$0xff]  ;;  %v6006_v16 = vld [vmem:[#allocation19 + $0x188] sm:$0xff] }
 0x85b   : > { %3020 = vmatpush.bf16.msrb.mxu1 %v6007_v59 }
 0x85c   : > { %2820 = vmatmul.bf16.gmra.mxu2 %v2741_v18  ;;  %v6023_v18 = vld [vmem:[#allocation19 + $0x210] sm:$0xff] }
 0x85e   : > { %v2548_v62 = vpop.f32.mrf.mxu2 }
 0x85f   : > { %v2552_v2 = vpack.c.bf16 %v2548_v62, %v2546_v60  ;;  %v6024_v60 = vld [vmem:[#allocation19 + $0x218] sm:$0xff]  ;;  %3021 = vmatpush.bf16.msrb.mxu1 %v6006_v16  ;;  %v6005_v62 = vld [vmem:[#allocation19 + $0x180] sm:$0xff] }
 0x861   : > { %2715 = vmatmul.bf16.gmra.mxu3 %v2552_v2  ;;  %v6022_v2 = vld [vmem:[#allocation19 + $0x208] sm:$0xff] }
 0x863   : > { %3022 = vmatpush.bf16.msrb.mxu1 %v6005_v62 }
 0x867   : > { %3265 = vmatpush.bf16.msra.mxu1 %v6044_v34  ;;  %v6034_v34 = vld [vmem:[#allocation17 + $0x268] sm:$0xff] }
 0x86b   : > { %3266 = vmatpush.bf16.msra.mxu1 %v6043_v37  ;;  %v6048_v37 = vld [vmem:[#allocation17 + $0x2d8] sm:$0xff] }
 0x8cf   : > { %v2816_v9 = vpop.f32.mrf.mxu2 }
 0x8d4   : > { %v2711_v5 = vpop.f32.mrf.mxu3 }
 0x8d5   : > { %v2712_v10 = vadd.f32 %v2711_v5, %v2644_v6 }
 0x8d7   : > { %v2818_v22 = vpop.f32.mrf.mxu2  ;;  %v2826_v23 = vadd.f32 %v2816_v9, %v2712_v10 }
 0x8d9   : > { %v2833_v25 = vadd.f32 %v6288_v49, %v2826_v23 }
 0x8db   : > { %v2837_v28 = vmax.f32 %v2833_v25, 0.0  ;;  %v6041_v25 = vld [vmem:[#allocation17 + $0x2a0] sm:$0xff] }
 0x8dc   : > { %v2713_v53 = vpop.f32.mrf.mxu3 }
 0x8dd   : > { %v2714_v24 = vadd.f32 %v2713_v53, %v2646_v21 }
 0x8df   : > { %v2827_v26 = vadd.f32 %v2818_v22, %v2714_v24  ;;  %v2821_v61 = vpop.f32.mrf.mxu2  ;;  %v6042_v24 = vld [vmem:[#allocation17 + $0x2a8] sm:$0xff] }
 0x8e0   : > { %3267 = vmatpush.bf16.msra.mxu1 %v6042_v24 }
 0x8e1   : > { %v2834_v52 = vadd.f32 %v6288_v49, %v2827_v26  ;;  %v6040_v26 = vld [vmem:[#allocation17 + $0x298] sm:$0xff] }
 0x8e3   : > { %v2838_v38 = vmax.f32 %v2834_v52, 0.0  ;;  %v6039_v52 = vld [vmem:[#allocation17 + $0x290] sm:$0xff] }
 0x8e4   : > { %v2716_v63 = vpop.f32.mrf.mxu3  ;;  %3268 = vmatpush.bf16.msra.mxu1 %v6041_v25 }
 0x8e5   : > { %v2843_v0 = vpack.c.bf16 %v2838_v38, %v2837_v28  ;;  %v2717_v1 = vadd.f32 %v2716_v63, %v2649_v54  ;;  %v6038_v54 = vld [vmem:[#allocation17 + $0x288] sm:$0xff]  ;;  %v6037_v28 = vld [vmem:[#allocation17 + $0x280] sm:$0xff] }
 0x8e7   : > { %2956 = vmatmul.bf16.vlgmr.msra.gmra.mxu3 %v2843_v0  ;;  %v2828_v35 = vadd.f32 %v2821_v61, %v2717_v1  ;;  %v2823_v41 = vpop.f32.mrf.mxu2 }
 0x8e8   : > { %3269 = vmatpush.bf16.msra.mxu1 %v6040_v26 }
 0x8e9   : > { %v2835_v42 = vadd.f32 %v6288_v49, %v2828_v35 }
 0x8eb   : > { %v2839_v46 = vmax.f32 %v2835_v42, 0.0 }
 0x8ec   : > { %v2718_v39 = vpop.f32.mrf.mxu3  ;;  %3270 = vmatpush.bf16.msra.mxu1 %v6039_v52 }
 0x8ed   : > { %v2719_v40 = vadd.f32 %v2718_v39, %v2651_v36  ;;  %v6289_v39 = vld [vmem:[%s7370_s12 + $0x2] ss:$0 sm:$0xff] }
 0x8ef   : > { %v2829_v43 = vadd.f32 %v2823_v41, %v2719_v40 }
 0x8f0   : > { %3271 = vmatpush.bf16.msra.mxu1 %v6038_v54 }
 0x8f1   : > { %v2836_v45 = vadd.f32 %v6288_v49, %v2829_v43 }
 0x8f3   : > { %v2840_v47 = vmax.f32 %v2836_v45, 0.0 }
 0x8f4   : > { %3272 = vmatpush.bf16.msra.mxu1 %v6037_v28 }
 0x8f5   : > { %v2844_v48 = vpack.c.bf16 %v2840_v47, %v2839_v46 }
 0x8f7   : > { %2851 = vmatpush.bf16.msrb.mxu0 %v2844_v48  ;;  %2961 = vmatmul.bf16.gmra.mxu3 %v2844_v48 }
 0x8f8   : > { %3040 = vmatpush.bf16.msrb.mxu2 %v2844_v48 }
 0x8fb   : > { %2852 = vmatpush.bf16.msrb.mxu0 %v2843_v0 }
 0x8fc   : > { %3041 = vmatpush.bf16.msrb.mxu2 %v2843_v0 }
 0x8fe   : > { %5331 = vmatmul.msk.bf16.vlgmr.msrb.gmra.mxu0 %vm648_vm0, %v7138_v11 }
 0x8ff   : > { %5397 = vmatmul.msk.bf16.vlgmr.msrb.gmra.mxu2 %vm648_vm0, %v7142_v12  ;;  %3120 = vmatpush.bf16.msra.mxu0 %v6028_v51 }
 0x903   : > { %3121 = vmatpush.bf16.msra.mxu0 %v6027_v56 }
 0x907   : > { %3122 = vmatpush.bf16.msra.mxu0 %v6026_v13 }
 0x90b   : > { %3123 = vmatpush.bf16.msra.mxu0 %v6025_v58 }
 0x90e   : > { %5332 = vmatmul.msk.bf16.gmra.mxu0 %vm648_vm0, %v7146_v14 }
 0x90f   : > { %5398 = vmatmul.msk.bf16.gmra.mxu2 %vm648_vm0, %v7150_v15  ;;  %3124 = vmatpush.bf16.msra.mxu0 %v6024_v60 }
 0x913   : > { %3125 = vmatpush.bf16.msra.mxu0 %v6023_v18 }
 0x917   : > { %3126 = vmatpush.bf16.msra.mxu0 %v6022_v2 }
 0x91b   : > { %3127 = vmatpush.bf16.msra.mxu0 %v6021_v31  ;;  %v6035_v31 = vld [vmem:[#allocation17 + $0x270] sm:$0xff] }
 0x96a   : > { %v2957_v38 = vpop.f32.mrf.mxu3 }
 0x972   : > { %v2959_v35 = vpop.f32.mrf.mxu3 }
 0x97a   : > { %v2962_v47 = vpop.f32.mrf.mxu3 }
 0x97b   : > { %v2854_v33 = vpop.f32.mrf.mxu0 }
 0x982   : > { %v3043_v3 = vpop.f32.mrf.mxu2  ;;  %v2964_v13 = vpop.f32.mrf.mxu3 }
 0x983   : > { %v2856_v4 = vpop.f32.mrf.mxu0 }
 0x984   : > { %v2864_v6 = vpack.c.bf16 %v2856_v4, %v2854_v33  ;;  %v6049_v33 = vld [vmem:[#allocation17 + $0x2e0] sm:$0xff]  ;;  %v6047_v4 = vld [vmem:[#allocation17 + $0x2d0] sm:$0xff] }
 0x986   : > { %3023 = vmatmul.bf16.vlgmr.msrb.gmra.mxu1 %v2864_v6  ;;  %v6032_v6 = vld [vmem:[#allocation17 + $0x258] sm:$0xff] }
 0x98a   : > { %v3045_v9 = vpop.f32.mrf.mxu2 }
 0x98b   : > { %v3053_v5 = vpack.c.bf16 %v3045_v9, %v3043_v3  ;;  %v2859_v10 = vpop.f32.mrf.mxu0  ;;  %v6033_v3 = vld [vmem:[#allocation17 + $0x260] sm:$0xff]  ;;  %v6046_v9 = vld [vmem:[#allocation17 + $0x2c8] sm:$0xff] }
 0x98d   : > { %3128 = vmatmul.bf16.vlgmr.msra.gmra.mxu0 %v3053_v5  ;;  %v6031_v5 = vld [vmem:[#allocation17 + $0x250] sm:$0xff] }
 0x992   : > { %v3048_v21 = vpop.f32.mrf.mxu2 }
 0x993   : > { %v2861_v22 = vpop.f32.mrf.mxu0 }
 0x994   : > { %v2865_v23 = vpack.c.bf16 %v2861_v22, %v2859_v10  ;;  %v6045_v10 = vld [vmem:[#allocation17 + $0x2c0] sm:$0xff] }
 0x995   : > { %v6029_v22 = vld [vmem:[#allocation17 + $0x240] sm:$0xff] }
 0x996   : > { %3028 = vmatmul.bf16.gmra.mxu1 %v2865_v23 }
 0x99a   : > { %v3050_v49 = vpop.f32.mrf.mxu2 }
 0x99b   : > { %v3054_v53 = vpack.c.bf16 %v3050_v49, %v3048_v21  ;;  %v6030_v21 = vld [vmem:[#allocation17 + $0x248] sm:$0xff]  ;;  %v6068_v49 = vld [vmem:[#allocation19 + $0x2b8] sm:$0xff] }
 0x99d   : > { %3133 = vmatmul.bf16.gmra.mxu0 %v3054_v53  ;;  %v6067_v53 = vld [vmem:[#allocation19 + $0x2b0] sm:$0xff] }
 0xa03   : > { %v3024_v61 = vpop.f32.mrf.mxu1 }
 0xa04   : > { %v3025_v0 = vadd.f32 %v3024_v61, %v2957_v38 }
 0xa0a   : > { %v3129_v63 = vpop.f32.mrf.mxu0 }
 0xa0b   : > { %v3026_v1 = vpop.f32.mrf.mxu1  ;;  %v3139_v36 = vadd.f32 %v3129_v63, %v3025_v0 }
 0xa0c   : > { %v3027_v41 = vadd.f32 %v3026_v1, %v2959_v35  ;;  %v6066_v35 = vld [vmem:[#allocation19 + $0x2a8] sm:$0xff] }
 0xa0d   : > { %v3146_v40 = vadd.f32 %v6289_v39, %v3139_v36  ;;  %v6065_v36 = vld [vmem:[#allocation19 + $0x2a0] sm:$0xff] }
 0xa0f   : > { %v7209_v45 = vadd.f32 %v3146_v40, %v2524_v19  ;;  %v6063_v40 = vld [vmem:[#allocation19 + $0x290] sm:$0xff] }
 0xa11   : > { %v3154_v50 = vmax.f32 %v7209_v45, 0.0 }
 0xa12   : > { %v3131_v42 = vpop.f32.mrf.mxu0 }
 0xa13   : > { %v3140_v43 = vadd.f32 %v3131_v42, %v3027_v41  ;;  %v3029_v44 = vpop.f32.mrf.mxu1  ;;  %v6062_v41 = vld [vmem:[#allocation19 + $0x288] sm:$0xff]  ;;  %v6061_v42 = vld [vmem:[#allocation19 + $0x280] sm:$0xff] }
 0xa14   : > { %v3030_v57 = vadd.f32 %v3029_v44, %v2962_v47 }
 0xa15   : > { %v3147_v46 = vadd.f32 %v6289_v39, %v3140_v43 }
 0xa17   : > { %v7213_v48 = vadd.f32 %v3147_v46, %v2525_v20 }
 0xa19   : > { %v3155_v51 = vmax.f32 %v7213_v48, 0.0 }
 0xa1a   : > { %v3134_v55 = vpop.f32.mrf.mxu0 }
 0xa1b   : > { %v3160_v56 = vpack.c.bf16 %v3155_v51, %v3154_v50  ;;  %v3141_v7 = vadd.f32 %v3134_v55, %v3030_v57  ;;  %v3031_v19 = vpop.f32.mrf.mxu1 }
 0xa1c   : > { %v3032_v58 = vadd.f32 %v3031_v19, %v2964_v13 }
 0xa1d   : > { %3273 = vmatmul.bf16.vlgmr.msra.gmra.mxu1 %v3160_v56  ;;  %v3148_v17 = vadd.f32 %v6289_v39, %v3141_v7  ;;  %v6290_v7 = vld [vmem:[%s7368_s10 + $0x3] ss:$0 sm:$0xff] }
 0xa1f   : > { %v7223_v59 = vadd.f32 %v3148_v17, %v2526_v30  ;;  %v6036_v30 = vld [vmem:[#allocation17 + $0x278] sm:$0xff] }
 0xa20   : > { %3332 = vmatpush.bf16.msra.mxu2 %v6036_v30 }
 0xa21   : > { %v3156_v18 = vmax.f32 %v7223_v59, 0.0  ;;  %v7285_v59 = vld [vmem:[#allocation5] sm:$0xff] }
 0xa22   : > { %v3136_v8 = vpop.f32.mrf.mxu0 }
 0xa23   : > { %v3142_v20 = vadd.f32 %v3136_v8, %v3032_v58 }
 0xa24   : > { %3333 = vmatpush.bf16.msra.mxu2 %v6035_v31 }
 0xa25   : > { %v3149_v60 = vadd.f32 %v6289_v39, %v3142_v20  ;;  %v6064_v39 = vld [vmem:[#allocation19 + $0x298] sm:$0xff] }
 0xa27   : > { %v7227_v16 = vadd.f32 %v3149_v60, %v2527_v32  ;;  %v6050_v32 = vld [vmem:[#allocation17 + $0x2e8] sm:$0xff] }
 0xa28   : > { %3334 = vmatpush.bf16.msra.mxu2 %v6034_v34 }
 0xa29   : > { %v3157_v62 = vmax.f32 %v7227_v16, 0.0  ;;  %v7289_v16 = vld [vmem:[#allocation7] sm:$0xff] }
 0xa2b   : > { %v3161_v2 = vpack.c.bf16 %v3157_v62, %v3156_v18 }
 0xa2c   : > { %3335 = vmatpush.bf16.msra.mxu2 %v6033_v3 }
 0xa2d   : > { %3168 = vmatpush.bf16.msrb.mxu3 %v3161_v2  ;;  %3278 = vmatmul.bf16.gmra.mxu1 %v3161_v2 }
 0xa2e   : > { %3357 = vmatpush.bf16.msrb.mxu0 %v3161_v2 }
 0xa30   : > { %3336 = vmatpush.bf16.msra.mxu2 %v6032_v6 }
 0xa31   : > { %3169 = vmatpush.bf16.msrb.mxu3 %v3160_v56 }
 0xa32   : > { %3358 = vmatpush.bf16.msrb.mxu0 %v3160_v56 }
 0xa34   : > { %5432 = vmatmul.msk.bf16.vlgmr.msrb.gmra.mxu3 %vm648_vm0, %v7138_v11  ;;  %3337 = vmatpush.bf16.msra.mxu2 %v6031_v5 }
 0xa35   : > { %5498 = vmatmul.msk.bf16.vlgmr.msrb.gmra.mxu0 %vm648_vm0, %v7142_v12  ;;  %3437 = vmatpush.bf16.msra.mxu3 %v6052_v27 }
 0xa38   : > { %3338 = vmatpush.bf16.msra.mxu2 %v6030_v21 }
 0xa39   : > { %3438 = vmatpush.bf16.msra.mxu3 %v6051_v29 }
 0xa3c   : > { %3339 = vmatpush.bf16.msra.mxu2 %v6029_v22 }
 0xa3d   : > { %3439 = vmatpush.bf16.msra.mxu3 %v6050_v32 }
 0xa40   : > { %3578 = vmatpush.bf16.msrb.mxu2 %v6068_v49  ;;  %v6076_v49 = vld [vmem:[#allocation19 + $0x2f8] sm:$0xff] }
 0xa41   : > { %3440 = vmatpush.bf16.msra.mxu3 %v6049_v33 }
 0xa44   : > { %5433 = vmatmul.msk.bf16.gmra.mxu3 %vm648_vm0, %v7146_v14  ;;  %3579 = vmatpush.bf16.msrb.mxu2 %v6067_v53  ;;  %v6058_v53 = vld [vmem:[#allocation19 + $0x268] sm:$0xff] }
 0xa45   : > { %5499 = vmatmul.msk.bf16.gmra.mxu0 %vm648_vm0, %v7150_v15  ;;  %3441 = vmatpush.bf16.msra.mxu3 %v6048_v37 }
 0xa48   : > { %3580 = vmatpush.bf16.msrb.mxu2 %v6066_v35 }
 0xa49   : > { %3442 = vmatpush.bf16.msra.mxu3 %v6047_v4 }
 0xa4c   : > { %3581 = vmatpush.bf16.msrb.mxu2 %v6065_v36 }
 0xa4d   : > { %3443 = vmatpush.bf16.msra.mxu3 %v6046_v9  ;;  %v6060_v9 = vld [vmem:[#allocation19 + $0x278] sm:$0xff] }
 0xa4e   : > { %3645 = vmatpush.bf16.msra.mxu0 %v6060_v9 }
 0xa50   : > { %3582 = vmatpush.bf16.msrb.mxu2 %v6064_v39 }
 0xa51   : > { %3444 = vmatpush.bf16.msra.mxu3 %v6045_v10 }
 0xa54   : > { %3583 = vmatpush.bf16.msrb.mxu2 %v6063_v40 }
 0xa58   : > { %3584 = vmatpush.bf16.msrb.mxu2 %v6062_v41 }
 0xa5c   : > { %3585 = vmatpush.bf16.msrb.mxu2 %v6061_v42 }
 0xa9a   : > { %v3274_v43 = vpop.f32.mrf.mxu1 }
 0xaa2   : > { %v3276_v55 = vpop.f32.mrf.mxu1 }
 0xaaa   : > { %v3279_v20 = vpop.f32.mrf.mxu1 }
 0xab2   : > { %v3360_v23 = vpop.f32.mrf.mxu0  ;;  %v3281_v33 = vpop.f32.mrf.mxu1 }
 0xab7   : > { %v3171_v24 = vpop.f32.mrf.mxu3 }
 0xaba   : > { %v3362_v25 = vpop.f32.mrf.mxu0 }
 0xabb   : > { %v3370_v26 = vpack.c.bf16 %v3362_v25, %v3360_v23  ;;  %v6059_v23 = vld [vmem:[#allocation19 + $0x270] sm:$0xff]  ;;  %v6057_v25 = vld [vmem:[#allocation19 + $0x260] sm:$0xff] }
 0xabc   : > { %3646 = vmatpush.bf16.msra.mxu0 %v6059_v23 }
 0xabd   : > { %3445 = vmatmul.bf16.vlgmr.msra.gmra.mxu3 %v3370_v26  ;;  %v6074_v26 = vld [vmem:[#allocation19 + $0x2e8] sm:$0xff] }
 0xabf   : > { %v3173_v52 = vpop.f32.mrf.mxu3 }
 0xac0   : > { %v3181_v54 = vpack.c.bf16 %v3173_v52, %v3171_v24  ;;  %v6075_v24 = vld [vmem:[#allocation19 + $0x2f0] sm:$0xff]  ;;  %3647 = vmatpush.bf16.msra.mxu0 %v6058_v53  ;;  %v6072_v52 = vld [vmem:[#allocation19 + $0x2d8] sm:$0xff] }
 0xac2   : > { %v3365_v28 = vpop.f32.mrf.mxu0  ;;  %3340 = vmatmul.bf16.vlgmr.msra.gmra.mxu2 %v3181_v54  ;;  %v6071_v54 = vld [vmem:[#allocation19 + $0x2d0] sm:$0xff] }
 0xac4   : > { %3648 = vmatpush.bf16.msra.mxu0 %v6057_v25 }
 0xac7   : > { %v3176_v38 = vpop.f32.mrf.mxu3 }
 0xaca   : > { %v3367_v61 = vpop.f32.mrf.mxu0 }
 0xacb   : > { %v3371_v63 = vpack.c.bf16 %v3367_v61, %v3365_v28  ;;  %v6053_v28 = vld [vmem:[#allocation19 + $0x240] sm:$0xff] }
 0xacc   : > { %v6069_v61 = vld [vmem:[#allocation19 + $0x2c0] sm:$0xff] }
 0xacd   : > { %3450 = vmatmul.bf16.gmra.mxu3 %v3371_v63 }
 0xacf   : > { %v3178_v0 = vpop.f32.mrf.mxu3 }
 0xad0   : > { %v3182_v1 = vpack.c.bf16 %v3178_v0, %v3176_v38  ;;  %v6070_v38 = vld [vmem:[#allocation19 + $0x2c8] sm:$0xff]  ;;  %v6092_v0 = vld [vmem:[#allocation17 + $0x378] sm:$0xff] }
 0xad2   : > { %3345 = vmatmul.bf16.gmra.mxu2 %v3182_v1  ;;  %v6091_v1 = vld [vmem:[#allocation17 + $0x370] sm:$0xff] }
 0xb40   : > { %v3446_v44 = vpop.f32.mrf.mxu3 }
 0xb45   : > { %v3341_v46 = vpop.f32.mrf.mxu2 }
 0xb46   : > { %v3342_v47 = vadd.f32 %v3341_v46, %v3274_v43 }
 0xb48   : > { %v3448_v56 = vpop.f32.mrf.mxu3  ;;  %v3456_v57 = vadd.f32 %v3446_v44, %v3342_v47 }
 0xb4a   : > { %v3463_v17 = vadd.f32 %v6290_v7, %v3456_v57  ;;  %v6089_v57 = vld [vmem:[#allocation17 + $0x360] sm:$0xff] }
 0xb4c   : > { %v3467_v60 = vmax.f32 %v3463_v17, 0.0  ;;  %v6085_v17 = vld [vmem:[#allocation17 + $0x340] sm:$0xff] }
 0xb4d   : > { %v3343_v19 = vpop.f32.mrf.mxu2 }
 0xb4e   : > { %v3344_v13 = vadd.f32 %v3343_v19, %v3276_v55  ;;  %v6087_v19 = vld [vmem:[#allocation17 + $0x350] sm:$0xff] }
 0xb50   : > { %v3457_v58 = vadd.f32 %v3448_v56, %v3344_v13  ;;  %v3451_v27 = vpop.f32.mrf.mxu3  ;;  %v6090_v56 = vld [vmem:[#allocation17 + $0x368] sm:$0xff] }
 0xb51   : > { %v6086_v13 = vld [vmem:[#allocation17 + $0x348] sm:$0xff] }
 0xb52   : > { %v3464_v8 = vadd.f32 %v6290_v7, %v3457_v58 }
 0xb54   : > { %v3468_v2 = vmax.f32 %v3464_v8, 0.0 }
 0xb55   : > { %v3346_v29 = vpop.f32.mrf.mxu2 }
 0xb56   : > { %v3473_v30 = vpack.c.bf16 %v3468_v2, %v3467_v60  ;;  %v3347_v32 = vadd.f32 %v3346_v29, %v3279_v20 }
 0xb58   : > { %3586 = vmatmul.bf16.vlgmr.msrb.gmra.mxu2 %v3473_v30  ;;  %v3458_v31 = vadd.f32 %v3451_v27, %v3347_v32  ;;  %v3453_v3 = vpop.f32.mrf.mxu3 }
 0xb5a   : > { %v3465_v4 = vadd.f32 %v6290_v7, %v3458_v31 }
 0xb5c   : > { %v3469_v10 = vmax.f32 %v3465_v4, 0.0 }
 0xb5d   : > { %v3348_v34 = vpop.f32.mrf.mxu2 }
 0xb5e   : > { %v3349_v37 = vadd.f32 %v3348_v34, %v3281_v33 }
 0xb60   : > { %v3459_v6 = vadd.f32 %v3453_v3, %v3349_v37 }
 0xb62   : > { %v3466_v5 = vadd.f32 %v6290_v7, %v3459_v6  ;;  %v6088_v7 = vld [vmem:[#allocation17 + $0x358] sm:$0xff] }
 0xb64   : > { %v3470_v21 = vmax.f32 %v3466_v5, 0.0 }
 0xb66   : > { %v3474_v22 = vpack.c.bf16 %v3470_v21, %v3469_v10 }
 0xb68   : > { %3481 = vmatpush.bf16.msrb.mxu1 %v3474_v22  ;;  %3591 = vmatmul.bf16.gmra.mxu2 %v3474_v22 }
 0xb69   : > { %3670 = vmatpush.bf16.msrb.mxu3 %v3474_v22 }
 0xb6c   : > { %3482 = vmatpush.bf16.msrb.mxu1 %v3473_v30 }
 0xb6d   : > { %3671 = vmatpush.bf16.msrb.mxu3 %v3473_v30  ;;  %v6291_v30 = vld [vmem:[%s7370_s12 + $0x3] ss:$0 sm:$0xff] }
 0xb6f   : > { %5533 = vmatmul.msk.bf16.vlgmr.msrb.gmra.mxu1 %vm648_vm0, %v7138_v11  ;;  %v6056_v11 = vld [vmem:[#allocation19 + $0x258] sm:$0xff] }
 0xb70   : > { %5599 = vmatmul.msk.bf16.vlgmr.msrb.gmra.mxu3 %vm648_vm0, %v7142_v12  ;;  %3750 = vmatpush.bf16.msra.mxu1 %v6076_v49  ;;  %v6073_v12 = vld [vmem:[#allocation19 + $0x2e0] sm:$0xff] }
 0xb71   : > { %3649 = vmatpush.bf16.msra.mxu0 %v6056_v11 }
 0xb74   : > { %3751 = vmatpush.bf16.msra.mxu1 %v6075_v24 }
 0xb78   : > { %3752 = vmatpush.bf16.msra.mxu1 %v6074_v26 }
 0xb7c   : > { %3753 = vmatpush.bf16.msra.mxu1 %v6073_v12 }
 0xb7f   : > { %5534 = vmatmul.msk.bf16.gmra.mxu1 %vm648_vm0, %v7146_v14  ;;  %v6055_v14 = vld [vmem:[#allocation19 + $0x250] sm:$0xff] }
 0xb80   : > { %5600 = vmatmul.msk.bf16.gmra.mxu3 %vm648_vm0, %v7150_v15  ;;  %3650 = vmatpush.bf16.msra.mxu0 %v6055_v14  ;;  %v6054_v15 = vld [vmem:[#allocation19 + $0x248] sm:$0xff] }
 0xb81   : > { %3754 = vmatpush.bf16.msra.mxu1 %v6072_v52 }
 0xb84   : > { %3651 = vmatpush.bf16.msra.mxu0 %v6054_v15  ;;  %v6100_v15 = vld [vmem:[#allocation17 + $0x3b8] sm:$0xff] }
 0xb85   : > { %3755 = vmatpush.bf16.msra.mxu1 %v6071_v54  ;;  %v6099_v54 = vld [vmem:[#allocation17 + $0x3b0] sm:$0xff] }
 0xb88   : > { %3652 = vmatpush.bf16.msra.mxu0 %v6053_v28  ;;  %v6084_v28 = vld [vmem:[#allocation17 + $0x338] sm:$0xff] }
 0xb89   : > { %3756 = vmatpush.bf16.msra.mxu1 %v6070_v38  ;;  %v6098_v38 = vld [vmem:[#allocation17 + $0x3a8] sm:$0xff]  ;;  %3962 = vmatpush.bf16.msra.mxu3 %v6084_v28 }
 0xb8c   : > { %3895 = vmatpush.bf16.msrb.mxu0 %v6092_v0  ;;  %v6082_v0 = vld [vmem:[#allocation17 + $0x328] sm:$0xff] }
 0xb8d   : > { %3757 = vmatpush.bf16.msra.mxu1 %v6069_v61  ;;  %v6083_v61 = vld [vmem:[#allocation17 + $0x330] sm:$0xff] }
 0xb8e   : > { %3963 = vmatpush.bf16.msra.mxu3 %v6083_v61 }
 0xb90   : > { %3896 = vmatpush.bf16.msrb.mxu0 %v6091_v1  ;;  %v6096_v1 = vld [vmem:[#allocation17 + $0x398] sm:$0xff] }
 0xb92   : > { %3964 = vmatpush.bf16.msra.mxu3 %v6082_v0 }
 0xb94   : > { %3897 = vmatpush.bf16.msrb.mxu0 %v6090_v56 }
 0xb98   : > { %3898 = vmatpush.bf16.msrb.mxu0 %v6089_v57 }
 0xb9c   : > { %3899 = vmatpush.bf16.msrb.mxu0 %v6088_v7 }
 0xba0   : > { %3900 = vmatpush.bf16.msrb.mxu0 %v6087_v19 }
 0xba4   : > { %3901 = vmatpush.bf16.msrb.mxu0 %v6086_v13 }
 0xba8   : > { %3902 = vmatpush.bf16.msrb.mxu0 %v6085_v17 }
 0xbdb   : > { %v3587_v58 = vpop.f32.mrf.mxu2 }
 0xbe3   : > { %v3589_v27 = vpop.f32.mrf.mxu2 }
 0xbeb   : > { %v3592_v6 = vpop.f32.mrf.mxu2 }
 0xbec   : > { %v3484_v63 = vpop.f32.mrf.mxu1 }
 0xbf3   : > { %v3673_v35 = vpop.f32.mrf.mxu3  ;;  %v3594_v49 = vpop.f32.mrf.mxu2 }
 0xbf4   : > { %v3486_v36 = vpop.f32.mrf.mxu1 }
 0xbf5   : > { %v3494_v39 = vpack.c.bf16 %v3486_v36, %v3484_v63  ;;  %v6097_v63 = vld [vmem:[#allocation17 + $0x3a0] sm:$0xff]  ;;  %v6095_v36 = vld [vmem:[#allocation17 + $0x390] sm:$0xff] }
 0xbf7   : > { %3653 = vmatmul.bf16.vlgmr.msra.gmra.mxu0 %v3494_v39  ;;  %v6080_v39 = vld [vmem:[#allocation17 + $0x318] sm:$0xff] }
 0xbfb   : > { %v3675_v40 = vpop.f32.mrf.mxu3 }
 0xbfc   : > { %v3683_v41 = vpack.c.bf16 %v3675_v40, %v3673_v35  ;;  %v3489_v42 = vpop.f32.mrf.mxu1  ;;  %v6081_v35 = vld [vmem:[#allocation17 + $0x320] sm:$0xff]  ;;  %v6094_v40 = vld [vmem:[#allocation17 + $0x388] sm:$0xff] }
 0xbfd   : > { %3965 = vmatpush.bf16.msra.mxu3 %v6081_v35 }
 0xbfe   : > { %3758 = vmatmul.bf16.vlgmr.msra.gmra.mxu1 %v3683_v41  ;;  %v6079_v41 = vld [vmem:[#allocation17 + $0x310] sm:$0xff] }
 0xc01   : > { %3966 = vmatpush.bf16.msra.mxu3 %v6080_v39 }
 0xc03   : > { %v3678_v43 = vpop.f32.mrf.mxu3 }
 0xc04   : > { %v3491_v44 = vpop.f32.mrf.mxu1 }
 0xc05   : > { %v3495_v46 = vpack.c.bf16 %v3491_v44, %v3489_v42  ;;  %3967 = vmatpush.bf16.msra.mxu3 %v6079_v41  ;;  %v6093_v42 = vld [vmem:[#allocation17 + $0x380] sm:$0xff] }
 0xc06   : > { %v6077_v44 = vld [vmem:[#allocation17 + $0x300] sm:$0xff] }
 0xc07   : > { %3658 = vmatmul.bf16.gmra.mxu0 %v3495_v46 }
 0xc0b   : > { %v3680_v47 = vpop.f32.mrf.mxu3 }
 0xc0c   : > { %v3684_v55 = vpack.c.bf16 %v3680_v47, %v3678_v43  ;;  %v6078_v43 = vld [vmem:[#allocation17 + $0x308] sm:$0xff]  ;;  %v6116_v47 = vld [vmem:[#allocation19 + $0x378] sm:$0xff] }
 0xc0d   : > { %3968 = vmatpush.bf16.msra.mxu3 %v6078_v43 }
 0xc0e   : > { %3763 = vmatmul.bf16.gmra.mxu1 %v3684_v55  ;;  %v6115_v55 = vld [vmem:[#allocation19 + $0x370] sm:$0xff] }
 0xc11   : > { %3969 = vmatpush.bf16.msra.mxu3 %v6077_v44 }
 0xc15   : > { %4208 = vmatpush.bf16.msrb.mxu3 %v6116_v47  ;;  %v6124_v47 = vld [vmem:[#allocation19 + $0x3b8] sm:$0xff] }
 0xc19   : > { %4209 = vmatpush.bf16.msrb.mxu3 %v6115_v55  ;;  %v6106_v55 = vld [vmem:[#allocation19 + $0x328] sm:$0xff] }
 0xc74   : > { %v3654_v8 = vpop.f32.mrf.mxu0 }
 0xc75   : > { %v3655_v60 = vadd.f32 %v3654_v8, %v3587_v58 }
 0xc7b   : > { %v3759_v20 = vpop.f32.mrf.mxu1 }
 0xc7c   : > { %v3656_v2 = vpop.f32.mrf.mxu0  ;;  %v3769_v29 = vadd.f32 %v3759_v20, %v3655_v60 }
 0xc7d   : > { %v3657_v31 = vadd.f32 %v3656_v2, %v3589_v27  ;;  %v6114_v27 = vld [vmem:[#allocation19 + $0x368] sm:$0xff] }
 0xc7e   : > { %v3776_v32 = vadd.f32 %v6291_v30, %v3769_v29  ;;  %4210 = vmatpush.bf16.msrb.mxu3 %v6114_v27  ;;  %v6113_v29 = vld [vmem:[#allocation19 + $0x360] sm:$0xff] }
 0xc80   : > { %v7259_v3 = vadd.f32 %v3776_v32, %v3154_v50  ;;  %v6111_v32 = vld [vmem:[#allocation19 + $0x350] sm:$0xff] }
 0xc82   : > { %v3784_v5 = vmax.f32 %v7259_v3, 0.0  ;;  %4211 = vmatpush.bf16.msrb.mxu3 %v6113_v29 }
 0xc83   : > { %v3761_v33 = vpop.f32.mrf.mxu1 }
 0xc84   : > { %v3770_v34 = vadd.f32 %v3761_v33, %v3657_v31  ;;  %v3659_v37 = vpop.f32.mrf.mxu0  ;;  %v6110_v31 = vld [vmem:[#allocation19 + $0x348] sm:$0xff]  ;;  %v6109_v33 = vld [vmem:[#allocation19 + $0x340] sm:$0xff] }
 0xc85   : > { %v3660_v23 = vadd.f32 %v3659_v37, %v3592_v6 }
 0xc86   : > { %v3777_v4 = vadd.f32 %v6291_v30, %v3770_v34 }
 0xc88   : > { %v7263_v9 = vadd.f32 %v3777_v4, %v3155_v51 }
 0xc8a   : > { %v3785_v10 = vmax.f32 %v7263_v9, 0.0 }
 0xc8b   : > { %v3764_v21 = vpop.f32.mrf.mxu1 }
 0xc8c   : > { %v3790_v22 = vpack.c.bf16 %v3785_v10, %v3784_v5  ;;  %v3771_v45 = vadd.f32 %v3764_v21, %v3660_v23  ;;  %v3661_v50 = vpop.f32.mrf.mxu0 }
 0xc8d   : > { %v3662_v24 = vadd.f32 %v3661_v50, %v3594_v49 }
 0xc8e   : > { %3903 = vmatmul.bf16.vlgmr.msrb.gmra.mxu0 %v3790_v22  ;;  %v3778_v53 = vadd.f32 %v6291_v30, %v3771_v45  ;;  %v6292_v45 = vld [vmem:[%s7368_s10 + $0x4] ss:$0 sm:$0xff] }
 0xc90   : > { %v7273_v25 = vadd.f32 %v3778_v53, %v3156_v18  ;;  %v7293_v18 = vld [vmem:[#allocation5 + $0x8] sm:$0xff] }
 0xc92   : > { %v3786_v12 = vmax.f32 %v7273_v25, 0.0 }
 0xc93   : > { %v3766_v48 = vpop.f32.mrf.mxu1 }
 0xc94   : > { %v3772_v51 = vadd.f32 %v3766_v48, %v3662_v24 }
 0xc96   : > { %v3779_v26 = vadd.f32 %v6291_v30, %v3772_v51  ;;  %v6112_v30 = vld [vmem:[#allocation19 + $0x358] sm:$0xff] }
 0xc97   : > { %4212 = vmatpush.bf16.msrb.mxu3 %v6112_v30 }
 0xc98   : > { %v7277_v11 = vadd.f32 %v3779_v26, %v3157_v62  ;;  %v7297_v62 = vld [vmem:[#allocation7 + $0x8] sm:$0xff] }
 0xc9a   : > { %v3787_v14 = vmax.f32 %v7277_v11, 0.0 }
 0xc9b   : > { %4213 = vmatpush.bf16.msrb.mxu3 %v6111_v32 }
 0xc9c   : > { %v3791_v52 = vpack.c.bf16 %v3787_v14, %v3786_v12 }
 0xc9e   : > { %3798 = vmatpush.bf16.msra.mxu2 %v3791_v52  ;;  %3908 = vmatmul.bf16.gmra.mxu0 %v3791_v52 }
 0xc9f   : > { %3987 = vmatpush.bf16.msrb.mxu1 %v3791_v52  ;;  %4214 = vmatpush.bf16.msrb.mxu3 %v6110_v31 }
 0xca2   : > { %3799 = vmatpush.bf16.msra.mxu2 %v3790_v22 }
 0xca3   : > { %3988 = vmatpush.bf16.msrb.mxu1 %v3790_v22  ;;  %4215 = vmatpush.bf16.msrb.mxu3 %v6109_v33 }
 0xca5   : > { %5634 = vmatmul.msk.bf16.vlgmr.msra.gmra.mxu2 %vm648_vm0, %v7285_v59 }
 0xca6   : > { %5700 = vmatmul.msk.bf16.vlgmr.msrb.gmra.mxu1 %vm648_vm0, %v7289_v16  ;;  %4067 = vmatpush.bf16.msrb.mxu2 %v6100_v15 }
 0xcaa   : > { %4068 = vmatpush.bf16.msrb.mxu2 %v6099_v54 }
 0xcae   : > { %4069 = vmatpush.bf16.msrb.mxu2 %v6098_v38 }
 0xcb2   : > { %4070 = vmatpush.bf16.msrb.mxu2 %v6097_v63 }
 0xcb5   : > { %5635 = vmatmul.msk.bf16.gmra.mxu2 %vm648_vm0, %v7293_v18 }
 0xcb6   : > { %5701 = vmatmul.msk.bf16.gmra.mxu1 %vm648_vm0, %v7297_v62  ;;  %4071 = vmatpush.bf16.msrb.mxu2 %v6096_v1 }
 0xcba   : > { %4072 = vmatpush.bf16.msrb.mxu2 %v6095_v36 }
 0xcbe   : > { %4073 = vmatpush.bf16.msrb.mxu2 %v6094_v40  ;;  %v6108_v40 = vld [vmem:[#allocation19 + $0x338] sm:$0xff] }
 0xcbf   : > { %4275 = vmatpush.bf16.msra.mxu1 %v6108_v40 }
 0xcc2   : > { %4074 = vmatpush.bf16.msrb.mxu2 %v6093_v42 }
 0xd0b   : > { %v3904_v34 = vpop.f32.mrf.mxu0 }
 0xd13   : > { %v3906_v21 = vpop.f32.mrf.mxu0 }
 0xd1b   : > { %v3909_v51 = vpop.f32.mrf.mxu0 }
 0xd23   : > { %v3990_v46 = vpop.f32.mrf.mxu1  ;;  %v3911_v63 = vpop.f32.mrf.mxu0 }
 0xd28   : > { %v3801_v56 = vpop.f32.mrf.mxu2 }
 0xd2b   : > { %v3992_v57 = vpop.f32.mrf.mxu1 }
 0xd2c   : > { %v4000_v7 = vpack.c.bf16 %v3992_v57, %v3990_v46  ;;  %v6107_v46 = vld [vmem:[#allocation19 + $0x330] sm:$0xff]  ;;  %v6105_v57 = vld [vmem:[#allocation19 + $0x320] sm:$0xff] }
 0xd2d   : > { %4276 = vmatpush.bf16.msra.mxu1 %v6107_v46 }
 0xd2e   : > { %4075 = vmatmul.bf16.vlgmr.msrb.gmra.mxu2 %v4000_v7  ;;  %v6122_v7 = vld [vmem:[#allocation19 + $0x3a8] sm:$0xff] }
 0xd30   : > { %v3803_v19 = vpop.f32.mrf.mxu2 }
 0xd31   : > { %v3811_v13 = vpack.c.bf16 %v3803_v19, %v3801_v56  ;;  %v6123_v56 = vld [vmem:[#allocation19 + $0x3b0] sm:$0xff]  ;;  %4277 = vmatpush.bf16.msra.mxu1 %v6106_v55  ;;  %v6120_v19 = vld [vmem:[#allocation19 + $0x398] sm:$0xff] }
 0xd33   : > { %v3995_v17 = vpop.f32.mrf.mxu1  ;;  %3970 = vmatmul.bf16.vlgmr.msra.gmra.mxu3 %v3811_v13  ;;  %v6119_v13 = vld [vmem:[#allocation19 + $0x390] sm:$0xff] }
 0xd35   : > { %4278 = vmatpush.bf16.msra.mxu1 %v6105_v57 }
 0xd38   : > { %v3806_v58 = vpop.f32.mrf.mxu2 }
 0xd3b   : > { %v3997_v8 = vpop.f32.mrf.mxu1 }
 0xd3c   : > { %v4001_v20 = vpack.c.bf16 %v3997_v8, %v3995_v17  ;;  %v6101_v17 = vld [vmem:[#allocation19 + $0x300] sm:$0xff] }
 0xd3d   : > { %v6117_v8 = vld [vmem:[#allocation19 + $0x380] sm:$0xff] }
 0xd3e   : > { %4080 = vmatmul.bf16.gmra.mxu2 %v4001_v20 }
 0xd40   : > { %v3808_v60 = vpop.f32.mrf.mxu2 }
 0xd41   : > { %v3812_v2 = vpack.c.bf16 %v3808_v60, %v3806_v58  ;;  %v6118_v58 = vld [vmem:[#allocation19 + $0x388] sm:$0xff] }
 0xd43   : > { %3975 = vmatmul.bf16.gmra.mxu3 %v3812_v2 }
 0xdb1   : > { %v4076_v37 = vpop.f32.mrf.mxu2 }
 0xdb6   : > { %v3971_v4 = vpop.f32.mrf.mxu3 }
 0xdb7   : > { %v3972_v6 = vadd.f32 %v3971_v4, %v3904_v34 }
 0xdb9   : > { %v4078_v22 = vpop.f32.mrf.mxu2  ;;  %v4086_v23 = vadd.f32 %v4076_v37, %v3972_v6 }
 0xdbb   : > { %v4093_v53 = vadd.f32 %v6292_v45, %v4086_v23  ;;  %v6293_v23 = vld [vmem:[%s7370_s12 + $0x4] ss:$0 sm:$0xff] }
 0xdbd   : > { %v4097_v26 = vmax.f32 %v4093_v53, 0.0 }
 0xdbe   : > { %v3973_v50 = vpop.f32.mrf.mxu3 }
 0xdbf   : > { %v3974_v49 = vadd.f32 %v3973_v50, %v3906_v21 }
 0xdc1   : > { %v4087_v24 = vadd.f32 %v4078_v22, %v3974_v49  ;;  %v4081_v15 = vpop.f32.mrf.mxu2 }
 0xdc3   : > { %v4094_v48 = vadd.f32 %v6292_v45, %v4087_v24 }
 0xdc5   : > { %v4098_v52 = vmax.f32 %v4094_v48, 0.0 }
 0xdc6   : > { %v3976_v54 = vpop.f32.mrf.mxu3 }
 0xdc7   : > { %v4103_v28 = vpack.c.bf16 %v4098_v52, %v4097_v26  ;;  %v3977_v38 = vadd.f32 %v3976_v54, %v3909_v51 }
 0xdc9   : > { %4216 = vmatmul.bf16.vlgmr.msrb.gmra.mxu3 %v4103_v28  ;;  %v4088_v61 = vadd.f32 %v4081_v15, %v3977_v38  ;;  %v4083_v35 = vpop.f32.mrf.mxu2 }
 0xdcb   : > { %v4095_v36 = vadd.f32 %v6292_v45, %v4088_v61 }
 0xdcd   : > { %v4099_v42 = vmax.f32 %v4095_v36, 0.0 }
 0xdce   : > { %v3978_v0 = vpop.f32.mrf.mxu3 }
 0xdcf   : > { %v3979_v1 = vadd.f32 %v3978_v0, %v3911_v63 }
 0xdd1   : > { %v4089_v39 = vadd.f32 %v4083_v35, %v3979_v1 }
 0xdd3   : > { %v4096_v41 = vadd.f32 %v6292_v45, %v4089_v39 }
 0xdd5   : > { %v4100_v43 = vmax.f32 %v4096_v41, 0.0 }
 0xdd7   : > { %v4104_v44 = vpack.c.bf16 %v4100_v43, %v4099_v42 }
 0xdd9   : > { %4111 = vmatpush.bf16.msra.mxu0 %v4104_v44  ;;  %4221 = vmatmul.bf16.gmra.mxu3 %v4104_v44 }
 0xdda   : > { %4300 = vmatpush.bf16.msra.mxu2 %v4104_v44 }
 0xddd   : > { %4112 = vmatpush.bf16.msra.mxu0 %v4103_v28 }
 0xdde   : > { %4301 = vmatpush.bf16.msra.mxu2 %v4103_v28 }
 0xde0   : > { %5735 = vmatmul.msk.bf16.vlgmr.msra.gmra.mxu0 %vm648_vm0, %v7285_v59  ;;  %v6104_v59 = vld [vmem:[#allocation19 + $0x318] sm:$0xff] }
 0xde1   : > { %5801 = vmatmul.msk.bf16.vlgmr.msra.gmra.mxu2 %vm648_vm0, %v7289_v16  ;;  %4380 = vmatpush.bf16.msrb.mxu0 %v6124_v47  ;;  %v6121_v16 = vld [vmem:[#allocation19 + $0x3a0] sm:$0xff] }
 0xde2   : > { %4279 = vmatpush.bf16.msra.mxu1 %v6104_v59 }
 0xde5   : > { %4381 = vmatpush.bf16.msrb.mxu0 %v6123_v56 }
 0xde9   : > { %4382 = vmatpush.bf16.msrb.mxu0 %v6122_v7 }
 0xded   : > { %4383 = vmatpush.bf16.msrb.mxu0 %v6121_v16 }
 0xdf0   : > { %5736 = vmatmul.msk.bf16.gmra.mxu0 %vm648_vm0, %v7293_v18  ;;  %v6103_v18 = vld [vmem:[#allocation19 + $0x310] sm:$0xff] }
 0xdf1   : > { %5802 = vmatmul.msk.bf16.gmra.mxu2 %vm648_vm0, %v7297_v62  ;;  %4280 = vmatpush.bf16.msra.mxu1 %v6103_v18  ;;  %v6102_v62 = vld [vmem:[#allocation19 + $0x308] sm:$0xff] }
 0xdf2   : > { %4384 = vmatpush.bf16.msrb.mxu0 %v6120_v19 }
 0xdf5   : > { %4281 = vmatpush.bf16.msra.mxu1 %v6102_v62 }
 0xdf6   : > { %4385 = vmatpush.bf16.msrb.mxu0 %v6119_v13 }
 0xdf9   : > { %4282 = vmatpush.bf16.msra.mxu1 %v6101_v17 }
 0xdfa   : > { %4386 = vmatpush.bf16.msrb.mxu0 %v6118_v58 }
 0xdfe   : > { %4387 = vmatpush.bf16.msrb.mxu0 %v6117_v8 }
 0xe4c   : > { %v4217_v6 = vpop.f32.mrf.mxu3 }
 0xe54   : > { %v4219_v53 = vpop.f32.mrf.mxu3 }
 0xe5c   : > { %v4222_v38 = vpop.f32.mrf.mxu3 }
 0xe5d   : > { %v4114_v20 = vpop.f32.mrf.mxu0 }
 0xe64   : > { %v4303_v60 = vpop.f32.mrf.mxu2  ;;  %v4224_v39 = vpop.f32.mrf.mxu3 }
 0xe65   : > { %v4116_v2 = vpop.f32.mrf.mxu0 }
 0xe66   : > { %v4124_v27 = vpack.c.bf16 %v4116_v2, %v4114_v20 }
 0xe68   : > { %4283 = vmatmul.bf16.vlgmr.msra.gmra.mxu1 %v4124_v27 }
 0xe6c   : > { %v4305_v29 = vpop.f32.mrf.mxu2 }
 0xe6d   : > { %v4313_v30 = vpack.c.bf16 %v4305_v29, %v4303_v60  ;;  %v4119_v32 = vpop.f32.mrf.mxu0 }
 0xe6f   : > { %4388 = vmatmul.bf16.vlgmr.msrb.gmra.mxu0 %v4313_v30 }
 0xe74   : > { %v4308_v31 = vpop.f32.mrf.mxu2 }
 0xe75   : > { %v4121_v33 = vpop.f32.mrf.mxu0 }
 0xe76   : > { %v4125_v34 = vpack.c.bf16 %v4121_v33, %v4119_v32 }
 0xe78   : > { %4288 = vmatmul.bf16.gmra.mxu1 %v4125_v34 }
 0xe7c   : > { %v4310_v37 = vpop.f32.mrf.mxu2 }
 0xe7d   : > { %v4314_v4 = vpack.c.bf16 %v4310_v37, %v4308_v31 }
 0xe7f   : > { %4393 = vmatmul.bf16.gmra.mxu0 %v4314_v4 }
 0xee5   : > { %v4284_v21 = vpop.f32.mrf.mxu1 }
 0xee6   : > { %v4285_v22 = vadd.f32 %v4284_v21, %v4217_v6 }
 0xeec   : > { %v4389_v45 = vpop.f32.mrf.mxu0 }
 0xeed   : > { %v4399_v50 = vadd.f32 %v4389_v45, %v4285_v22  ;;  %v4286_v49 = vpop.f32.mrf.mxu1 }
 0xeee   : > { %v4287_v26 = vadd.f32 %v4286_v49, %v4219_v53 }
 0xeef   : > { %v4406_v24 = vadd.f32 %v6293_v23, %v4399_v50 }
 0xef1   : > { %v4410_v48 = vadd.f32 %v4406_v24, %v3784_v5 }
 0xef3   : > { %v4414_v51 = vmax.f32 %v4410_v48, 0.0 }
 0xef4   : > { %v4391_v52 = vpop.f32.mrf.mxu0 }
 0xef5   : > { %4418 = vst [vmem:[%s619_s17] sm:$0xff] %v4414_v51  ;;  %v4400_v15 = vadd.f32 %v4391_v52, %v4287_v26  ;;  %v4289_v54 = vpop.f32.mrf.mxu1 }
 0xef6   : > { %v4290_v0 = vadd.f32 %v4289_v54, %v4222_v38 }
 0xef7   : > { %v4407_v28 = vadd.f32 %v6293_v23, %v4400_v15 }
 0xef9   : > { %v4411_v61 = vadd.f32 %v4407_v28, %v3785_v10 }
 0xefb   : > { %v4415_v63 = vmax.f32 %v4411_v61, 0.0 }
 0xefc   : > { %v4394_v1 = vpop.f32.mrf.mxu0 }
 0xefd   : > { %4419 = vst [vmem:[%s619_s17 + $0x8] sm:$0xff] %v4415_v63  ;;  %v4401_v3 = vadd.f32 %v4394_v1, %v4290_v0  ;;  %v4291_v35 = vpop.f32.mrf.mxu1 }
 0xefe   : > { %v4292_v41 = vadd.f32 %v4291_v35, %v4224_v39 }
 0xeff   : > { %v4408_v5 = vadd.f32 %v6293_v23, %v4401_v3 }
 0xf01   : > { %v4412_v36 = vadd.f32 %v4408_v5, %v3786_v12 }
 0xf03   : > { %v4416_v40 = vmax.f32 %v4412_v36, 0.0 }
 0xf04   : > { %v4396_v42 = vpop.f32.mrf.mxu0 }
 0xf05   : > { %4420 = vst [vmem:[%s619_s17 + $0x10] sm:$0xff] %v4416_v40  ;;  %v4402_v9 = vadd.f32 %v4396_v42, %v4292_v41 }
 0xf07   : > { %v4409_v10 = vadd.f32 %v6293_v23, %v4402_v9 }
 0xf09   : > { %v4413_v25 = vadd.f32 %v4409_v10, %v3787_v14 }
 0xf0b   : > { %v4417_v12 = vmax.f32 %v4413_v25, 0.0 }
 0xf0d   : > { %4421 = vst [vmem:[%s619_s17 + $0x18] sm:$0xff] %v4417_v12 }
 0xf0e   : > { %6659 = shalt.err (!%p6656_p9)
}
 0xf0f   : > { %s6734_s30 = smov 128   ;;  %s6735_s17 = smov 8  }
 0xf10   : > { %6170 = dma.vmem_to_hbm [thread:$0]  (%p6944_p4), %s4436_s19, 512, %s4438_s7, %s4423_s15, %s6734_s30, %s6734_s30, %s6735_s17  }
 0xf11 PF: > { %s4452_s24 = sand.u32 1, %s6706_s25   ;;  %p7396_p10 = scmp.ge.s32.totalorder %s6718_s28, 2 }
 0xf12   : > { %s4453_s6 = scalar_lea.sflag [#allocation4], %s4452_s24 }
 0xf13   : > { %p6208_p13 = pnand %p7396_p10, %p6948_p6 }
 0xf15   : > { %p6209_p11 = pneg %p6208_p13 }
 0xf17   : > { %6701 = dma.done.wait (%p6209_p11), %s4453_s6, 512  }
 0xf18   : > { %6703 = vsyncadd (%p6209_p11), %s4453_s6, 4294966784  ;;  %p31_p0 = scmp.ge.s32.totalorder %s6918_s3, 4   ;;  %s7397_s25 = smov %s6710_s26 }
 0xf19   : > { %s7398_s26 = smov %s6714_s27  ;;  %s7399_s27 = smov %s6929_s20 }
 0xf1a   : > { %s7400_s28 = smov %s6918_s3  ;;  %33 = sbr.rel (!%p31_p0) target bundleno = 19 (0x13), region = 197 }
 0xf1f   :  { %4459 = vsyncpa [#allocation3], 1 }
 0xf20   :  { %4461 = vsyncpa [#allocation3 + $0x1], 1 }
 0xf21   :  { %4462 = vsyncpa [#allocation6], 1 }
 0xf22   :  { %4463 = vsyncpa [#allocation9], 1 }
 0xf23   :  { %4464 = vsyncpa [#allocation12], 1 }
 0xf24   :  { %4465 = vsyncpa [#allocation15], 1 }
 0xf25   :  { %4466 = vsyncpa [#allocation18], 1 }
 0xf26   :  { %4467 = vsyncpa [#allocation4], 1 }
 0xf27   :  { %4469 = vsyncpa [#allocation4 + $0x1], 1 }

</bundles_post_ra>
